<compile_context>
chip_gen: v7x
topology: tpu7x:2x2x1
jax: 0.10.0
libtpu: 0.0.40
codegen_flags: <defaults>
</compile_context>

<pallas_src>
import functools

import jax
import jax.numpy as jnp
from jax import lax
from jax.experimental import pallas as pl
from jax.experimental.pallas import tpu as pltpu


# Set to jnp.bfloat16 to run all MXU operands in bf16 (f32 accumulation is kept)
# for ~2-3x matmul throughput / half the DMA bytes; None keeps the input dtype
# so numerics match the f32 reference (f32 operands run multi-pass on the MXU).
_MXU_DTYPE = None


def _maybe_cast(x):
    return x if _MXU_DTYPE is None else x.astype(_MXU_DTYPE)


@functools.lru_cache(maxsize=None)
def _hw_config():
    """Generation-gated tile targets and scoped-VMEM limit."""
    vmem_bytes = 64 * 1024 * 1024
    try:
        info = pltpu.get_tpu_info()
        vmem_bytes = int(getattr(info, "vmem_capacity_bytes", vmem_bytes))
    except Exception:
        pass
    if vmem_bytes >= 100 * 1024 * 1024:
        # v5e / v6e (128 MiB VMEM): bigger tiles cut weight re-streaming and
        # per-grid-step overhead.
        return {"vmem_limit": 96 * 1024 * 1024,
                "tm": 512, "tn": 1024, "tk": 512, "tq": 512, "tkv": 512}
    # v7x (64 MiB per TensorCore) or unknown: stay conservative; smaller q tiles
    # also give the 2 TCs more parallel grid work.
    return {"vmem_limit": 40 * 1024 * 1024,
            "tm": 256, "tn": 512, "tk": 512, "tq": 256, "tkv": 256}


def _tile(dim, target, align):
    """Largest tile <= target that divides `dim` and is a multiple of `align`;
    falls back to the full dim (full-dim blocks are always legal)."""
    if dim <= target:
        return dim
    t = (target // align) * align
    while t >= align:
        if dim % t == 0:
            return t
        t -= align
    return dim


# --------------------------- fused LN + Linear ------------------------------ #

def _ln_linear_kernel(x_ref, g_ref, b_ref, w_ref, bias_ref, o_ref, h_ref, *,
                      activation):
    # LN (VPU/EUP work + cast) is computed once per row tile, at the first
    # output-column tile, and cached in VMEM; subsequent j tiles reuse it.
    @pl.when(pl.program_id(1) == 0)
    def _():
        x = x_ref[...].astype(jnp.float32)
        mu = jnp.mean(x, axis=-1, keepdims=True)
        var = jnp.mean(jnp.square(x - mu), axis=-1, keepdims=True)
        h = (x - mu) * lax.rsqrt(var + 1e-5)
        h = h * g_ref[...].astype(jnp.float32) + b_ref[...].astype(jnp.float32)
        h_ref[...] = h.astype(h_ref.dtype)

    y = jnp.dot(h_ref[...], _maybe_cast(w_ref[...]),
                preferred_element_type=jnp.float32)
    y = y + bias_ref[...].astype(jnp.float32)
    if activation == "relu":
        y = jnp.maximum(y, 0.0)
    o_ref[...] = y.astype(o_ref.dtype)


def ln_linear(x2d, gamma, beta, w, bias, activation=None):
    """LayerNorm(x2d) @ w + bias (+relu), LN fused as a cached prologue."""
    N, D = x2d.shape
    Dout = w.shape[1]
    cfg = _hw_config()
    tm = _tile(N, cfg["tm"], 8)
    tn = _tile(Dout, cfg["tn"], 128)
    grid = (N // tm, Dout // tn)
    h_dtype = _MXU_DTYPE if _MXU_DTYPE is not None else w.dtype
    nbytes = x2d.dtype.itemsize
    cost = pl.CostEstimate(
        flops=2 * N * D * Dout + 6 * N * D,
        transcendentals=N,
        bytes_accessed=nbytes * (N * D + D * Dout + N * Dout))
    return pl.pallas_call(
        functools.partial(_ln_linear_kernel, activation=activation),
        grid=grid,
        out_shape=jax.ShapeDtypeStruct((N, Dout), x2d.dtype),
        in_specs=[
            pl.BlockSpec((tm, D), lambda i, j: (i, 0)),
            pl.BlockSpec((1, D), lambda i, j: (0, 0)),
            pl.BlockSpec((1, D), lambda i, j: (0, 0)),
            pl.BlockSpec((D, tn), lambda i, j: (0, j)),
            pl.BlockSpec((1, tn), lambda i, j: (0, j)),
        ],
        out_specs=pl.BlockSpec((tm, tn), lambda i, j: (i, j)),
        scratch_shapes=[pltpu.VMEM((tm, D), h_dtype)],
        compiler_params=pltpu.CompilerParams(
            # The column axis must stay sequential (j == 0 first) so the cached
            # LN result is valid for the remaining j tiles of the same row tile.
            dimension_semantics=("parallel", "arbitrary"),
            vmem_limit_bytes=cfg["vmem_limit"]),
        cost_estimate=cost,
    )(x2d, gamma.reshape(1, D), beta.reshape(1, D), w, bias.reshape(1, Dout))


# --------------------- tiled Linear (+ bias/ReLU/residual) ------------------ #

def _linear_kernel(*refs, activation, has_residual):
    if has_residual:
        x_ref, w_ref, bias_ref, res_ref, o_ref, acc_ref = refs
    else:
        x_ref, w_ref, bias_ref, o_ref, acc_ref = refs
        res_ref = None
    k = pl.program_id(2)

    @pl.when(k == 0)
    def _():
        acc_ref[...] = jnp.zeros_like(acc_ref)

    acc_ref[...] += jnp.dot(_maybe_cast(x_ref[...]), _maybe_cast(w_ref[...]),
                            preferred_element_type=jnp.float32)

    @pl.when(k == pl.num_programs(2) - 1)
    def _():
        y = acc_ref[...] + bias_ref[...].astype(jnp.float32)
        if activation == "relu":
            y = jnp.maximum(y, 0.0)
        if res_ref is not None:
            y = y + res_ref[...].astype(jnp.float32)
        o_ref[...] = y.astype(o_ref.dtype)


def linear(x2d, w, bias, *, activation=None, residual=None):
    """x2d @ w + bias [, +relu] [, +residual], tiled over (M, N, K)."""
    N, Din = x2d.shape
    Dout = w.shape[1]
    cfg = _hw_config()
    tm = _tile(N, cfg["tm"], 8)
    tn = _tile(Dout, cfg["tn"], 128)
    tk = _tile(Din, cfg["tk"], 128)
    grid = (N // tm, Dout // tn, Din // tk)
    has_residual = residual is not None

    in_specs = [
        pl.BlockSpec((tm, tk), lambda i, j, k: (i, k)),
        pl.BlockSpec((tk, tn), lambda i, j, k: (k, j)),
        pl.BlockSpec((1, tn), lambda i, j, k: (0, j)),
    ]
    inputs = [x2d, w, bias.reshape(1, Dout)]
    if has_residual:
        in_specs.append(pl.BlockSpec((tm, tn), lambda i, j, k: (i, j)))
        inputs.append(residual)

    nbytes = x2d.dtype.itemsize
    cost = pl.CostEstimate(
        flops=2 * N * Din * Dout,
        transcendentals=0,
        bytes_accessed=nbytes * (N * Din + Din * Dout + N * Dout
                                 + (N * Dout if has_residual else 0)))
    return pl.pallas_call(
        functools.partial(_linear_kernel, activation=activation,
                          has_residual=has_residual),
        grid=grid,
        out_shape=jax.ShapeDtypeStruct((N, Dout), x2d.dtype),
        in_specs=in_specs,
        out_specs=pl.BlockSpec((tm, tn), lambda i, j, k: (i, j)),
        scratch_shapes=[pltpu.VMEM((tm, tn), jnp.float32)],
        compiler_params=pltpu.CompilerParams(
            dimension_semantics=("parallel", "parallel", "arbitrary"),
            vmem_limit_bytes=cfg["vmem_limit"]),
        cost_estimate=cost,
    )(*inputs)


# ------------------------ flash multi-head attention ------------------------ #

def _attention_kernel(q_ref, k_ref, v_ref, o_ref, *rest,
                      num_heads, scale, causal, need_weights, q_block, kv_block):
    if need_weights:
        attn_ref = rest[0]
        m_ref, l_ref, acc_ref = rest[1:]
    else:
        attn_ref = None
        m_ref, l_ref, acc_ref = rest

    H = num_heads
    tq, E = q_ref.shape[1], q_ref.shape[2]
    tk = k_ref.shape[1]
    Dh = E // H
    ki = pl.program_id(2)
    n_kv = pl.num_programs(2)
    q_start = pl.program_id(1) * q_block
    kv_start = ki * kv_block

    @pl.when(ki == 0)
    def _():
        m_ref[...] = jnp.full_like(m_ref, -jnp.inf)
        l_ref[...] = jnp.zeros_like(l_ref)
        acc_ref[...] = jnp.zeros_like(acc_ref)

    op_dtype = _MXU_DTYPE if _MXU_DTYPE is not None else jnp.float32
    dn_qk = (((1,), (1,)), ((), ()))   # q_h (tq,Dh) . k_h (tk,Dh)^T -> (tq,tk)
    dn_pv = (((1,), (0,)), ((), ()))   # p (tq,tk) . v_h (tk,Dh)     -> (tq,Dh)

    def compute():
        q = (q_ref[0].astype(jnp.float32) * scale).astype(op_dtype)  # (tq, E)
        k = k_ref[0].astype(op_dtype)                                # (tk, E)
        v = v_ref[0].astype(op_dtype)                                # (tk, E)
        if causal:
            rows = q_start + lax.broadcasted_iota(jnp.int32, (tq, tk), 0)
            cols = kv_start + lax.broadcasted_iota(jnp.int32, (tq, tk), 1)
            masked = cols > rows
        w_acc = jnp.zeros((tq, tk), jnp.float32) if need_weights else None

        # Per-head loop (unrolled).  Partial results live in VMEM scratch slabs
        # (m/l/acc per head), so only one head's tiles are live in vregs at a
        # time; no trailing concatenate inside the kv loop.
        for h in range(H):
            sl = slice(h * Dh, (h + 1) * Dh)
            s = lax.dot_general(q[:, sl], k[:, sl], dn_qk,
                                preferred_element_type=jnp.float32)
            if causal:
                s = jnp.where(masked, jnp.float32(-1e30), s)
            m_prev = m_ref[h]                                    # (tq, 1)
            l_prev = l_ref[h]
            m_new = jnp.maximum(m_prev, jnp.max(s, axis=-1, keepdims=True))
            alpha = jnp.exp(m_prev - m_new)
            p = jnp.exp(s - m_new)                               # (tq, tk)
            l_new = alpha * l_prev + jnp.sum(p, axis=-1, keepdims=True)
            acc_ref[h] = alpha * acc_ref[h] + lax.dot_general(
                p.astype(op_dtype), v[:, sl], dn_pv,
                preferred_element_type=jnp.float32)
            m_ref[h] = m_new
            l_ref[h] = l_new
            if need_weights:
                # Single kv tile (enforced by the wrapper) => l_new is already
                # the full row normalizer; exact division for returned weights.
                w_acc = w_acc + p / l_new

        if need_weights:
            attn_ref[0] = (w_acc * (1.0 / H)).astype(attn_ref.dtype)

    if causal:
        # Skip kv tiles that are entirely above the diagonal for this q tile.
        pl.when(kv_start <= q_start + q_block - 1)(compute)
    else:
        compute()

    @pl.when(ki == n_kv - 1)
    def _():
        out = jnp.concatenate(
            [acc_ref[h] * pl.reciprocal(l_ref[h], approx=True)
             for h in range(H)], axis=-1)
        o_ref[0] = out.astype(o_ref.dtype)


def attention(q_arr, k_arr, v_arr, *, embed_dim, num_heads, causal,
              need_weights, q_col=0, k_col=0, v_col=0):
    """Batch-major flash multi-head attention.

    q_arr: (B, T, *); k_arr/v_arr: (B, S, *).  The `*_col` block indices select
    an E-wide slab of the last dim, so fused QKV / KV projection outputs are
    consumed directly without JAX-level slicing (requires E % 128 == 0).
    """
    B, T = q_arr.shape[0], q_arr.shape[1]
    S = k_arr.shape[1]
    E = embed_dim
    Dh = E // num_heads
    cfg = _hw_config()
    tq = _tile(T, cfg["tq"], 8)
    # TODO(synk): when weights are requested the kv axis is a single tile (the
    # returned probabilities need the full row normalizer); very long encoder
    # contexts would need a two-pass (stats then normalize) variant.
    tk = S if need_weights else _tile(S, cfg["tkv"], 8)
    grid = (B, T // tq, S // tk)
    scale = float(Dh) ** -0.5

    in_specs = [
        pl.BlockSpec((1, tq, E), lambda b, qi, ki, c=q_col: (b, qi, c)),
        pl.BlockSpec((1, tk, E), lambda b, qi, ki, c=k_col: (b, ki, c)),
        pl.BlockSpec((1, tk, E), lambda b, qi, ki, c=v_col: (b, ki, c)),
    ]
    if need_weights:
        out_shape = (jax.ShapeDtypeStruct((B, T, E), q_arr.dtype),
                     jax.ShapeDtypeStruct((B, T, S), jnp.float32))
        out_specs = (pl.BlockSpec((1, tq, E), lambda b, qi, ki: (b, qi, 0)),
                     pl.BlockSpec((1, tq, S), lambda b, qi, ki: (b, qi, 0)))
    else:
        out_shape = jax.ShapeDtypeStruct((B, T, E), q_arr.dtype)
        out_specs = pl.BlockSpec((1, tq, E), lambda b, qi, ki: (b, qi, 0))

    nbytes = q_arr.dtype.itemsize
    cost = pl.CostEstimate(
        flops=4 * B * T * S * E,
        transcendentals=B * T * S * num_heads,
        bytes_accessed=nbytes * (2 * B * T * E + 2 * B * S * E)
        + (4 * B * T * S if need_weights else 0))

    res = pl.pallas_call(
        functools.partial(_attention_kernel, num_heads=num_heads, scale=scale,
                          causal=causal, need_weights=need_weights,
                          q_block=tq, kv_block=tk),
        grid=grid,
        out_shape=out_shape,
        in_specs=in_specs,
        out_specs=out_specs,
        scratch_shapes=[pltpu.VMEM((num_heads, tq, 1), jnp.float32),   # m
                        pltpu.VMEM((num_heads, tq, 1), jnp.float32),   # l
                        pltpu.VMEM((num_heads, tq, Dh), jnp.float32)], # acc
        compiler_params=pltpu.CompilerParams(
            dimension_semantics=("parallel", "parallel", "arbitrary"),
            vmem_limit_bytes=cfg["vmem_limit"]),
        cost_estimate=cost,
    )(q_arr, k_arr, v_arr)
    if need_weights:
        return res[0], res[1]
    return res, None


# ------------------------------ decoder layer ------------------------------- #

def decoder_layer_forward(x, encoder_out, params, num_heads):
    """x: (T, B, E); encoder_out: (S, B, E). Returns (x, attn, None)."""
    T, B, E = x.shape
    S = encoder_out.shape[0]
    p = params

    # TODO(synk): the entry/exit (T,B,E)<->(B,T,E) transposes stay as XLA ops;
    # a block of 1 over the batch (second-minor) dim violates the (8,128) block
    # tiling rule, so they cannot be folded into the adjacent kernels' BlockSpecs.
    x2d = jnp.transpose(x, (1, 0, 2)).reshape(B * T, E)
    enc2d = jnp.transpose(encoder_out, (1, 0, 2)).reshape(B * S, E)

    # ---- self attention (pre-LN, causal); dropout == identity ----
    # TODO(synk): self_attn_mask is fixed to the standard causal mask; arbitrary
    # attn_mask / key-padding masks are not supported.
    residual = x2d
    qkv = ln_linear(x2d, p["ln_self_g"], p["ln_self_b"],
                    p["self_qkv_w"], p["self_qkv_b"])                 # (B*T, 3E)
    qkv = qkv.reshape(B, T, 3 * E)
    attn_out, _ = attention(qkv, qkv, qkv, embed_dim=E, num_heads=num_heads,
                            causal=True, need_weights=False,
                            q_col=0, k_col=1, v_col=2)
    x2d = linear(attn_out.reshape(B * T, E), p["self_out_w"], p["self_out_b"],
                 residual=residual)

    # ---- encoder attention (pre-LN); returns head-averaged weights ----
    residual = x2d
    q = ln_linear(x2d, p["ln_enc_g"], p["ln_enc_b"],
                  p["enc_q_w"], p["enc_q_b"]).reshape(B, T, E)
    kv = linear(enc2d, p["enc_kv_w"], p["enc_kv_b"]).reshape(B, S, 2 * E)
    attn_out, attn_w = attention(q, kv, kv, embed_dim=E, num_heads=num_heads,
                                 causal=False, need_weights=True,
                                 q_col=0, k_col=0, v_col=1)
    x2d = linear(attn_out.reshape(B * T, E), p["enc_out_w"], p["enc_out_b"],
                 residual=residual)

    # ---- feed-forward (pre-LN): LN+FC1+ReLU fused, FC2 with fused residual ----
    # TODO(synk): ffn_layernorm / w_resid disabled (scale_fc / scale_resids False).
    residual = x2d
    h = ln_linear(x2d, p["ln_final_g"], p["ln_final_b"],
                  p["fc1_w"], p["fc1_b"], activation="relu")
    x2d = linear(h, p["fc2_w"], p["fc2_b"], residual=residual)

    out = jnp.transpose(x2d.reshape(B, T, E), (1, 0, 2))   # back to (T, B, E)
    return out, attn_w, None


# ------------------------------- parameters --------------------------------- #

def init_params(key, embed_dim, ffn_dim):
    E, F = embed_dim, ffn_dim
    ks = jax.random.split(key, 20)

    def w(k, din, dout):
        return jax.random.normal(k, (din, dout), jnp.float32) * 0.02

    def b(k, n):
        return jax.random.normal(k, (n,), jnp.float32) * 0.01

    # QKV / KV projections are pre-fused once here (not per forward call).
    return {
        "ln_self_g": jnp.ones((E,), jnp.float32), "ln_self_b": b(ks[10], E),
        "ln_enc_g": jnp.ones((E,), jnp.float32), "ln_enc_b": b(ks[11], E),
        "ln_final_g": jnp.ones((E,), jnp.float32), "ln_final_b": b(ks[12], E),
        "self_qkv_w": jnp.concatenate(
            [w(ks[0], E, E), w(ks[1], E, E), w(ks[2], E, E)], axis=1),
        "self_qkv_b": b(ks[13], 3 * E),
        "self_out_w": w(ks[3], E, E), "self_out_b": b(ks[14], E),
        "enc_q_w": w(ks[4], E, E), "enc_q_b": b(ks[15], E),
        "enc_kv_w": jnp.concatenate([w(ks[5], E, E), w(ks[6], E, E)], axis=1),
        "enc_kv_b": b(ks[16], 2 * E),
        "enc_out_w": w(ks[7], E, E), "enc_out_b": b(ks[17], E),
        "fc1_w": w(ks[8], E, F), "fc1_b": b(ks[18], F),
        "fc2_w": w(ks[9], F, E), "fc2_b": b(ks[19], E),
    }


# --------------------------- pure-JAX reference ------------------------------ #

def _ref_attention(q, k, v, num_heads, causal):
    B, T, E = q.shape
    S = k.shape[1]
    H = num_heads
    Dh = E // H
    scale = float(Dh) ** -0.5
    qh = (q.astype(jnp.float32) * scale).reshape(B, T, H, Dh).transpose(0, 2, 1, 3)
    kh = k.astype(jnp.float32).reshape(B, S, H, Dh).transpose(0, 2, 1, 3)
    vh = v.astype(jnp.float32).reshape(B, S, H, Dh).transpose(0, 2, 1, 3)
    s = jnp.einsum("bhqd,bhkd->bhqk", qh, kh)
    if causal:
        keep = jnp.tril(jnp.ones((T, S), bool))
        s = jnp.where(keep[None, None], s, -1e30)
    p = jax.nn.softmax(s, axis=-1)
    o = jnp.einsum("bhqk,bhkd->bhqd", p, vh)
    return o.transpose(0, 2, 1, 3).reshape(B, T, E), p.mean(axis=1)


def _reference_forward(x, encoder_out, params, num_heads):
    p = params
    xb = jnp.transpose(x, (1, 0, 2)).astype(jnp.float32)        # (B, T, E)
    encb = jnp.transpose(encoder_out, (1, 0, 2)).astype(jnp.float32)
    E = xb.shape[-1]

    def ln(v, g, b):
        mu = v.mean(-1, keepdims=True)
        var = ((v - mu) ** 2).mean(-1, keepdims=True)
        return (v - mu) * jax.lax.rsqrt(var + 1e-5) * g + b

    res = xb
    h = ln(xb, p["ln_self_g"], p["ln_self_b"])
    qkv = h @ p["self_qkv_w"] + p["self_qkv_b"]
    q, k, v = jnp.split(qkv, 3, axis=-1)
    o, _ = _ref_attention(q, k, v, num_heads, True)
    xb = res + (o @ p["self_out_w"] + p["self_out_b"])

    res = xb
    h = ln(xb, p["ln_enc_g"], p["ln_enc_b"])
    q = h @ p["enc_q_w"] + p["enc_q_b"]
    kv = encb @ p["enc_kv_w"] + p["enc_kv_b"]
    k, v = jnp.split(kv, 2, axis=-1)
    o, attn_w = _ref_attention(q, k, v, num_heads, False)
    xb = res + (o @ p["enc_out_w"] + p["enc_out_b"])

    res = xb
    h = ln(xb, p["ln_final_g"], p["ln_final_b"])
    h = jnp.maximum(h @ p["fc1_w"] + p["fc1_b"], 0.0)
    xb = res + (h @ p["fc2_w"] + p["fc2_b"])
    return jnp.transpose(xb, (1, 0, 2)), attn_w


# --------------------------------- driver ------------------------------------ #

if __name__ == "__main__":
    T, S, B = 8, 16, 2            # tgt seq, src seq, batch
    E, H, F = 128, 4, 256         # embed_dim (lane-aligned), heads, ffn_dim

    key = jax.random.PRNGKey(0)
    k_x, k_enc, k_p = jax.random.split(key, 3)
    x = jax.random.normal(k_x, (T, B, E), jnp.float32)
    encoder_out = jax.random.normal(k_enc, (S, B, E), jnp.float32)
    params = init_params(k_p, E, F)

    forward = jax.jit(functools.partial(decoder_layer_forward, num_heads=H))
    out, attn, _ = forward(x, encoder_out, params)
    jax.block_until_ready(out)
    jax.block_until_ready(attn)

    assert out.shape == (T, B, E)
    assert attn.shape == (B, T, S)

    ref_out, ref_attn = _reference_forward(x, encoder_out, params, H)
    assert bool(jnp.allclose(out, ref_out, atol=2e-2, rtol=2e-2)), "output mismatch"
    assert bool(jnp.allclose(attn, ref_attn, atol=2e-2, rtol=2e-2)), "attn mismatch"

    print("KERNEL_OK")
</pallas_src>

<mosaic_0001>
module attributes {stable_mosaic.version = 11 : i64} {
  func.func @_ln_linear_kernel(%arg0: i32, %arg1: i32, %arg2: memref<16x128xf32, #tpu.memory_space<vmem>>, %arg3: memref<1x128xf32, #tpu.memory_space<vmem>>, %arg4: memref<1x128xf32, #tpu.memory_space<vmem>>, %arg5: memref<128x384xf32, #tpu.memory_space<vmem>>, %arg6: memref<1x384xf32, #tpu.memory_space<vmem>>, %arg7: memref<16x384xf32, #tpu.memory_space<vmem>>, %arg8: memref<16x128xf32, #tpu.memory_space<vmem>>) attributes {dimension_semantics = [#tpu.dimension_semantics<parallel>, #tpu.dimension_semantics<arbitrary>], iteration_bounds = array<i64: 1, 1>, scalar_prefetch = 0 : i64, scratch_operands = 1 : i64, tpu.core_type = #tpu.core_type<tc>, window_params = [{transform_indices = @transform_0, window_bounds = array<i64: 16, 128>}, {pipeline_mode = #tpu.pipeline_mode<synchronous>, transform_indices = @transform_1, window_bounds = array<i64: 1, 128>}, {pipeline_mode = #tpu.pipeline_mode<synchronous>, transform_indices = @transform_2, window_bounds = array<i64: 1, 128>}, {transform_indices = @transform_3, window_bounds = array<i64: 128, 384>}, {transform_indices = @transform_4, window_bounds = array<i64: 1, 384>}, {transform_indices = @transform_5, window_bounds = array<i64: 16, 384>}]} {
    %c0_i32 = arith.constant 0 : i32
    %0 = arith.cmpi eq, %arg1, %c0_i32 : i32
    %1 = arith.extui %0 : i1 to i32
    %c0_i32_0 = arith.constant 0 : i32
    %2 = arith.cmpi ne, %1, %c0_i32_0 : i32
    scf.if %2 {
      %c0_8 = arith.constant 0 : index
      %c0_9 = arith.constant 0 : index
      %10 = vector.load %arg2[%c0_8, %c0_9] : memref<16x128xf32, #tpu.memory_space<vmem>>, vector<16x128xf32>
      %cst_10 = arith.constant dense<0.000000e+00> : vector<16xf32>
      %11 = vector.multi_reduction <add>, %10, %cst_10 [1] : vector<16x128xf32> to vector<16xf32>
      %12 = vector.shape_cast %11 : vector<16xf32> to vector<16x1xf32>
      %cst_11 = arith.constant 1.280000e+02 : f32
      %13 = vector.broadcast %cst_11 : f32 to vector<16x1xf32>
      %14 = arith.divf %12, %13 : vector<16x1xf32>
      %15 = vector.broadcast %14 : vector<16x1xf32> to vector<16x128xf32>
      %16 = arith.subf %10, %15 : vector<16x128xf32>
      %17 = arith.mulf %16, %16 : vector<16x128xf32>
      %cst_12 = arith.constant dense<0.000000e+00> : vector<16xf32>
      %18 = vector.multi_reduction <add>, %17, %cst_12 [1] : vector<16x128xf32> to vector<16xf32>
      %19 = vector.shape_cast %18 : vector<16xf32> to vector<16x1xf32>
      %cst_13 = arith.constant 1.280000e+02 : f32
      %20 = vector.broadcast %cst_13 : f32 to vector<16x1xf32>
      %21 = arith.divf %19, %20 : vector<16x1xf32>
      %22 = vector.broadcast %14 : vector<16x1xf32> to vector<16x128xf32>
      %23 = arith.subf %10, %22 : vector<16x128xf32>
      %cst_14 = arith.constant 9.99999974E-6 : f32
      %24 = vector.broadcast %cst_14 : f32 to vector<16x1xf32>
      %25 = arith.addf %21, %24 : vector<16x1xf32>
      %26 = math.rsqrt %25 : vector<16x1xf32>
      %27 = vector.broadcast %26 : vector<16x1xf32> to vector<16x128xf32>
      %28 = arith.mulf %23, %27 : vector<16x128xf32>
      %c0_15 = arith.constant 0 : index
      %c0_16 = arith.constant 0 : index
      %29 = vector.load %arg3[%c0_15, %c0_16] : memref<1x128xf32, #tpu.memory_space<vmem>>, vector<1x128xf32>
      %30 = vector.broadcast %29 : vector<1x128xf32> to vector<16x128xf32>
      %31 = arith.mulf %28, %30 : vector<16x128xf32>
      %c0_17 = arith.constant 0 : index
      %c0_18 = arith.constant 0 : index
      %32 = vector.load %arg4[%c0_17, %c0_18] : memref<1x128xf32, #tpu.memory_space<vmem>>, vector<1x128xf32>
      %33 = vector.broadcast %32 : vector<1x128xf32> to vector<16x128xf32>
      %34 = arith.addf %31, %33 : vector<16x128xf32>
      %c0_19 = arith.constant 0 : index
      %c0_20 = arith.constant 0 : index
      %35 = vector.load %arg8[%c0_19, %c0_20] : memref<16x128xf32, #tpu.memory_space<vmem>>, vector<16x128xf32>
      tpu.vector_store %arg8[%c0_19, %c0_20], %34 {strides = array<i32>} : memref<16x128xf32, #tpu.memory_space<vmem>>, vector<16x128xf32>,
    } else {
    }
    %c0 = arith.constant 0 : index
    %c0_1 = arith.constant 0 : index
    %3 = vector.load %arg8[%c0, %c0_1] : memref<16x128xf32, #tpu.memory_space<vmem>>, vector<16x128xf32>
    %c0_2 = arith.constant 0 : index
    %c0_3 = arith.constant 0 : index
    %4 = vector.load %arg5[%c0_2, %c0_3] : memref<128x384xf32, #tpu.memory_space<vmem>>, vector<128x384xf32>
    %cst = arith.constant dense<0.000000e+00> : vector<16x384xf32>
    %5 = tpu.matmul %3, %4, %cst {dimension_numbers = #tpu.dot_dimension_numbers<[1], [0], [0], [1], [0, 0, 1, 1], [], []>} : vector<16x128xf32>, vector<128x384xf32>, vector<16x384xf32> -> vector<16x384xf32>
    %c0_4 = arith.constant 0 : index
    %c0_5 = arith.constant 0 : index
    %6 = vector.load %arg6[%c0_4, %c0_5] : memref<1x384xf32, #tpu.memory_space<vmem>>, vector<1x384xf32>
    %7 = vector.broadcast %6 : vector<1x384xf32> to vector<16x384xf32>
    %8 = arith.addf %5, %7 : vector<16x384xf32>
    %c0_6 = arith.constant 0 : index
    %c0_7 = arith.constant 0 : index
    %9 = vector.load %arg7[%c0_6, %c0_7] : memref<16x384xf32, #tpu.memory_space<vmem>>, vector<16x384xf32>
    tpu.vector_store %arg7[%c0_6, %c0_7], %8 {strides = array<i32>} : memref<16x384xf32, #tpu.memory_space<vmem>>, vector<16x384xf32>,
    return
  }
  func.func @transform_0(%arg0: i32, %arg1: i32) -> (i32, i32) {
    %c0_i32 = arith.constant 0 : i32
    %c0_i32_0 = arith.constant 0 : i32
    return %arg0, %c0_i32 : i32, i32
  }
  func.func @transform_1(%arg0: i32, %arg1: i32) -> (i32, i32) {
    %c0_i32 = arith.constant 0 : i32
    %c0_i32_0 = arith.constant 0 : i32
    %c0_i32_1 = arith.constant 0 : i32
    return %c0_i32, %c0_i32_0 : i32, i32
  }
  func.func @transform_2(%arg0: i32, %arg1: i32) -> (i32, i32) {
    %c0_i32 = arith.constant 0 : i32
    %c0_i32_0 = arith.constant 0 : i32
    %c0_i32_1 = arith.constant 0 : i32
    return %c0_i32, %c0_i32_0 : i32, i32
  }
  func.func @transform_3(%arg0: i32, %arg1: i32) -> (i32, i32) {
    %c0_i32 = arith.constant 0 : i32
    %c0_i32_0 = arith.constant 0 : i32
    return %c0_i32, %arg1 : i32, i32
  }
  func.func @transform_4(%arg0: i32, %arg1: i32) -> (i32, i32) {
    %c0_i32 = arith.constant 0 : i32
    %c0_i32_0 = arith.constant 0 : i32
    return %c0_i32, %arg1 : i32, i32
  }
  func.func @transform_5(%arg0: i32, %arg1: i32) -> (i32, i32) {
    %c0_i32 = arith.constant 0 : i32
    return %arg0, %arg1 : i32, i32
  }
}

module attributes {stable_mosaic.version = 11 : i64} {
  func.func @_attention_kernel(%arg0: i32, %arg1: i32, %arg2: i32, %arg3: memref<1x8x128xf32, #tpu.memory_space<vmem>>, %arg4: memref<1x8x128xf32, #tpu.memory_space<vmem>>, %arg5: memref<1x8x128xf32, #tpu.memory_space<vmem>>, %arg6: memref<1x8x128xf32, #tpu.memory_space<vmem>>, %arg7: memref<4x8x1xf32, #tpu.memory_space<vmem>>, %arg8: memref<4x8x1xf32, #tpu.memory_space<vmem>>, %arg9: memref<4x8x32xf32, #tpu.memory_space<vmem>>) attributes {dimension_semantics = [#tpu.dimension_semantics<parallel>, #tpu.dimension_semantics<parallel>, #tpu.dimension_semantics<arbitrary>], iteration_bounds = array<i64: 2, 1, 1>, scalar_prefetch = 0 : i64, scratch_operands = 3 : i64, tpu.core_type = #tpu.core_type<tc>, window_params = [{transform_indices = @transform_0, window_bounds = array<i64: 1, 8, 128>}, {transform_indices = @transform_1, window_bounds = array<i64: 1, 8, 128>}, {transform_indices = @transform_2, window_bounds = array<i64: 1, 8, 128>}, {transform_indices = @transform_3, window_bounds = array<i64: 1, 8, 128>}]} {
    %c8_i32 = arith.constant 8 : i32
    %0 = arith.muli %arg1, %c8_i32 : i32
    %c8_i32_0 = arith.constant 8 : i32
    %1 = arith.muli %arg2, %c8_i32_0 : i32
    %c0_i32 = arith.constant 0 : i32
    %2 = arith.cmpi eq, %arg2, %c0_i32 : i32
    %3 = arith.extui %2 : i1 to i32
    %c0_i32_1 = arith.constant 0 : i32
    %4 = arith.cmpi ne, %3, %c0_i32_1 : i32
    scf.if %4 {
      %cst = arith.constant 0xFF800000 : f32
      %13 = vector.broadcast %cst : f32 to vector<4x8x1xf32>
      %c0 = arith.constant 0 : index
      %c0_6 = arith.constant 0 : index
      %c0_7 = arith.constant 0 : index
      %14 = vector.load %arg7[%c0, %c0_6, %c0_7] : memref<4x8x1xf32, #tpu.memory_space<vmem>>, vector<4x8x1xf32>
      tpu.vector_store %arg7[%c0, %c0_6, %c0_7], %13 {strides = array<i32>} : memref<4x8x1xf32, #tpu.memory_space<vmem>>, vector<4x8x1xf32>,
      %cst_8 = arith.constant 0.000000e+00 : f32
      %15 = vector.broadcast %cst_8 : f32 to vector<4x8x1xf32>
      %c0_9 = arith.constant 0 : index
      %c0_10 = arith.constant 0 : index
      %c0_11 = arith.constant 0 : index
      %16 = vector.load %arg8[%c0_9, %c0_10, %c0_11] : memref<4x8x1xf32, #tpu.memory_space<vmem>>, vector<4x8x1xf32>
      tpu.vector_store %arg8[%c0_9, %c0_10, %c0_11], %15 {strides = array<i32>} : memref<4x8x1xf32, #tpu.memory_space<vmem>>, vector<4x8x1xf32>,
      %cst_12 = arith.constant 0.000000e+00 : f32
      %17 = vector.broadcast %cst_12 : f32 to vector<4x8x32xf32>
      %c0_13 = arith.constant 0 : index
      %c0_14 = arith.constant 0 : index
      %c0_15 = arith.constant 0 : index
      %18 = vector.load %arg9[%c0_13, %c0_14, %c0_15] : memref<4x8x32xf32, #tpu.memory_space<vmem>>, vector<4x8x32xf32>
      tpu.vector_store %arg9[%c0_13, %c0_14, %c0_15], %17 {strides = array<i32>} : memref<4x8x32xf32, #tpu.memory_space<vmem>>, vector<4x8x32xf32>,
    } else {
    }
    %c8_i32_2 = arith.constant 8 : i32
    %5 = arith.addi %0, %c8_i32_2 : i32
    %c1_i32 = arith.constant 1 : i32
    %6 = arith.subi %5, %c1_i32 : i32
    %7 = arith.cmpi sle, %1, %6 : i32
    %8 = arith.extui %7 : i1 to i32
    %c0_i32_3 = arith.constant 0 : i32
    %9 = arith.cmpi ne, %8, %c0_i32_3 : i32
    scf.if %9 {
      %c0 = arith.constant 0 : index
      %c0_6 = arith.constant 0 : index
      %c0_7 = arith.constant 0 : index
      %13 = vector.load %arg3[%c0, %c0_6, %c0_7] : memref<1x8x128xf32, #tpu.memory_space<vmem>>, vector<1x8x128xf32>
      %14 = vector.shape_cast %13 : vector<1x8x128xf32> to vector<8x128xf32>
      %cst = arith.constant 0.176776692 : f32
      %15 = vector.broadcast %cst : f32 to vector<8x128xf32>
      %16 = arith.mulf %14, %15 : vector<8x128xf32>
      %c0_8 = arith.constant 0 : index
      %c0_9 = arith.constant 0 : index
      %c0_10 = arith.constant 0 : index
      %17 = vector.load %arg4[%c0_8, %c0_9, %c0_10] : memref<1x8x128xf32, #tpu.memory_space<vmem>>, vector<1x8x128xf32>
      %18 = vector.shape_cast %17 : vector<1x8x128xf32> to vector<8x128xf32>
      %c0_11 = arith.constant 0 : index
      %c0_12 = arith.constant 0 : index
      %c0_13 = arith.constant 0 : index
      %19 = vector.load %arg5[%c0_11, %c0_12, %c0_13] : memref<1x8x128xf32, #tpu.memory_space<vmem>>, vector<1x8x128xf32>
      %20 = vector.shape_cast %19 : vector<1x8x128xf32> to vector<8x128xf32>
      %21 = tpu.iota {dimensions = array<i32: 0>} : vector<8x8xi32>
      %22 = vector.broadcast %0 : i32 to vector<8x8xi32>
      %23 = arith.addi %22, %21 : vector<8x8xi32>
      %24 = tpu.iota {dimensions = array<i32: 1>} : vector<8x8xi32>
      %25 = vector.broadcast %1 : i32 to vector<8x8xi32>
      %26 = arith.addi %25, %24 : vector<8x8xi32>
      %27 = arith.cmpi sgt, %26, %23 : vector<8x8xi32>
      %28 = vector.extract_strided_slice %16 {offsets = [0, 0], sizes = [8, 32], strides = [1, 1]} : vector<8x128xf32> to vector<8x32xf32>
      %29 = vector.extract_strided_slice %18 {offsets = [0, 0], sizes = [8, 32], strides = [1, 1]} : vector<8x128xf32> to vector<8x32xf32>
      %cst_14 = arith.constant dense<0.000000e+00> : vector<8x8xf32>
      %30 = tpu.matmul %28, %29, %cst_14 {dimension_numbers = #tpu.dot_dimension_numbers<[1], [1], [0], [0], [0, 0, 1, 0], [], []>} : vector<8x32xf32>, vector<8x32xf32>, vector<8x8xf32> -> vector<8x8xf32>
      %cst_15 = arith.constant -1.000000e+30 : f32
      %31 = vector.broadcast %cst_15 : f32 to vector<8x8xf32>
      %32 = arith.select %27, %31, %30 : vector<8x8xi1>, vector<8x8xf32>
      %c0_16 = arith.constant 0 : index
      %c0_17 = arith.constant 0 : index
      %c0_18 = arith.constant 0 : index
      %33 = vector.load %arg7[%c0_16, %c0_17, %c0_18] : memref<4x8x1xf32, #tpu.memory_space<vmem>>, vector<1x8x1xf32>
      %34 = vector.shape_cast %33 : vector<1x8x1xf32> to vector<8x1xf32>
      %c0_19 = arith.constant 0 : index
      %c0_20 = arith.constant 0 : index
      %c0_21 = arith.constant 0 : index
      %35 = vector.load %arg8[%c0_19, %c0_20, %c0_21] : memref<4x8x1xf32, #tpu.memory_space<vmem>>, vector<1x8x1xf32>
      %36 = vector.shape_cast %35 : vector<1x8x1xf32> to vector<8x1xf32>
      %cst_22 = arith.constant dense<0xFF800000> : vector<8xf32>
      %37 = vector.multi_reduction <maximumf>, %32, %cst_22 [1] : vector<8x8xf32> to vector<8xf32>
      %38 = vector.shape_cast %37 : vector<8xf32> to vector<8x1xf32>
      %39 = arith.maximumf %34, %38 : vector<8x1xf32>
      %40 = arith.subf %34, %39 : vector<8x1xf32>
      %41 = math.exp %40 : vector<8x1xf32>
      %42 = vector.broadcast %39 : vector<8x1xf32> to vector<8x8xf32>
      %43 = arith.subf %32, %42 : vector<8x8xf32>
      %44 = math.exp %43 : vector<8x8xf32>
      %45 = arith.mulf %41, %36 : vector<8x1xf32>
      %cst_23 = arith.constant dense<0.000000e+00> : vector<8xf32>
      %46 = vector.multi_reduction <add>, %44, %cst_23 [1] : vector<8x8xf32> to vector<8xf32>
      %47 = vector.shape_cast %46 : vector<8xf32> to vector<8x1xf32>
      %48 = arith.addf %45, %47 : vector<8x1xf32>
      %c0_24 = arith.constant 0 : index
      %c0_25 = arith.constant 0 : index
      %c0_26 = arith.constant 0 : index
      %49 = vector.load %arg9[%c0_24, %c0_25, %c0_26] : memref<4x8x32xf32, #tpu.memory_space<vmem>>, vector<1x8x32xf32>
      %50 = vector.shape_cast %49 : vector<1x8x32xf32> to vector<8x32xf32>
      %51 = vector.broadcast %41 : vector<8x1xf32> to vector<8x32xf32>
      %52 = arith.mulf %51, %50 : vector<8x32xf32>
      %53 = vector.extract_strided_slice %20 {offsets = [0, 0], sizes = [8, 32], strides = [1, 1]} : vector<8x128xf32> to vector<8x32xf32>
      %cst_27 = arith.constant dense<0.000000e+00> : vector<8x32xf32>
      %54 = tpu.matmul %44, %53, %cst_27 {dimension_numbers = #tpu.dot_dimension_numbers<[1], [0], [0], [1], [0, 0, 1, 1], [], []>} : vector<8x8xf32>, vector<8x32xf32>, vector<8x32xf32> -> vector<8x32xf32>
      %55 = arith.addf %52, %54 : vector<8x32xf32>
      %c0_28 = arith.constant 0 : index
      %c0_29 = arith.constant 0 : index
      %c0_30 = arith.constant 0 : index
      %56 = vector.load %arg9[%c0_28, %c0_29, %c0_30] : memref<4x8x32xf32, #tpu.memory_space<vmem>>, vector<1x8x32xf32>
      %57 = vector.shape_cast %56 : vector<1x8x32xf32> to vector<8x32xf32>
      %58 = vector.shape_cast %55 : vector<8x32xf32> to vector<1x8x32xf32>
      tpu.vector_store %arg9[%c0_28, %c0_29, %c0_30], %58 {strides = array<i32>} : memref<4x8x32xf32, #tpu.memory_space<vmem>>, vector<1x8x32xf32>,
      %c0_31 = arith.constant 0 : index
      %c0_32 = arith.constant 0 : index
      %c0_33 = arith.constant 0 : index
      %59 = vector.load %arg7[%c0_31, %c0_32, %c0_33] : memref<4x8x1xf32, #tpu.memory_space<vmem>>, vector<1x8x1xf32>
      %60 = vector.shape_cast %59 : vector<1x8x1xf32> to vector<8x1xf32>
      %61 = vector.shape_cast %39 : vector<8x1xf32> to vector<1x8x1xf32>
      tpu.vector_store %arg7[%c0_31, %c0_32, %c0_33], %61 {strides = array<i32>} : memref<4x8x1xf32, #tpu.memory_space<vmem>>, vector<1x8x1xf32>,
      %c0_34 = arith.constant 0 : index
      %c0_35 = arith.constant 0 : index
      %c0_36 = arith.constant 0 : index
      %62 = vector.load %arg8[%c0_34, %c0_35, %c0_36] : memref<4x8x1xf32, #tpu.memory_space<vmem>>, vector<1x8x1xf32>
      %63 = vector.shape_cast %62 : vector<1x8x1xf32> to vector<8x1xf32>
      %64 = vector.shape_cast %48 : vector<8x1xf32> to vector<1x8x1xf32>
      tpu.vector_store %arg8[%c0_34, %c0_35, %c0_36], %64 {strides = array<i32>} : memref<4x8x1xf32, #tpu.memory_space<vmem>>, vector<1x8x1xf32>,
      %65 = vector.extract_strided_slice %16 {offsets = [0, 32], sizes = [8, 32], strides = [1, 1]} : vector<8x128xf32> to vector<8x32xf32>
      %66 = vector.extract_strided_slice %18 {offsets = [0, 32], sizes = [8, 32], strides = [1, 1]} : vector<8x128xf32> to vector<8x32xf32>
      %cst_37 = arith.constant dense<0.000000e+00> : vector<8x8xf32>
      %67 = tpu.matmul %65, %66, %cst_37 {dimension_numbers = #tpu.dot_dimension_numbers<[1], [1], [0], [0], [0, 0, 1, 0], [], []>} : vector<8x32xf32>, vector<8x32xf32>, vector<8x8xf32> -> vector<8x8xf32>
      %cst_38 = arith.constant -1.000000e+30 : f32
      %68 = vector.broadcast %cst_38 : f32 to vector<8x8xf32>
      %69 = arith.select %27, %68, %67 : vector<8x8xi1>, vector<8x8xf32>
      %c1 = arith.constant 1 : index
      %c0_39 = arith.constant 0 : index
      %c0_40 = arith.constant 0 : index
      %70 = vector.load %arg7[%c1, %c0_39, %c0_40] : memref<4x8x1xf32, #tpu.memory_space<vmem>>, vector<1x8x1xf32>
      %71 = vector.shape_cast %70 : vector<1x8x1xf32> to vector<8x1xf32>
      %c1_41 = arith.constant 1 : index
      %c0_42 = arith.constant 0 : index
      %c0_43 = arith.constant 0 : index
      %72 = vector.load %arg8[%c1_41, %c0_42, %c0_43] : memref<4x8x1xf32, #tpu.memory_space<vmem>>, vector<1x8x1xf32>
      %73 = vector.shape_cast %72 : vector<1x8x1xf32> to vector<8x1xf32>
      %cst_44 = arith.constant dense<0xFF800000> : vector<8xf32>
      %74 = vector.multi_reduction <maximumf>, %69, %cst_44 [1] : vector<8x8xf32> to vector<8xf32>
      %75 = vector.shape_cast %74 : vector<8xf32> to vector<8x1xf32>
      %76 = arith.maximumf %71, %75 : vector<8x1xf32>
      %77 = arith.subf %71, %76 : vector<8x1xf32>
      %78 = math.exp %77 : vector<8x1xf32>
      %79 = vector.broadcast %76 : vector<8x1xf32> to vector<8x8xf32>
      %80 = arith.subf %69, %79 : vector<8x8xf32>
      %81 = math.exp %80 : vector<8x8xf32>
      %82 = arith.mulf %78, %73 : vector<8x1xf32>
      %cst_45 = arith.constant dense<0.000000e+00> : vector<8xf32>
      %83 = vector.multi_reduction <add>, %81, %cst_45 [1] : vector<8x8xf32> to vector<8xf32>
      %84 = vector.shape_cast %83 : vector<8xf32> to vector<8x1xf32>
      %85 = arith.addf %82, %84 : vector<8x1xf32>
      %c1_46 = arith.constant 1 : index
      %c0_47 = arith.constant 0 : index
      %c0_48 = arith.constant 0 : index
      %86 = vector.load %arg9[%c1_46, %c0_47, %c0_48] : memref<4x8x32xf32, #tpu.memory_space<vmem>>, vector<1x8x32xf32>
      %87 = vector.shape_cast %86 : vector<1x8x32xf32> to vector<8x32xf32>
      %88 = vector.broadcast %78 : vector<8x1xf32> to vector<8x32xf32>
      %89 = arith.mulf %88, %87 : vector<8x32xf32>
      %90 = vector.extract_strided_slice %20 {offsets = [0, 32], sizes = [8, 32], strides = [1, 1]} : vector<8x128xf32> to vector<8x32xf32>
      %cst_49 = arith.constant dense<0.000000e+00> : vector<8x32xf32>
      %91 = tpu.matmul %81, %90, %cst_49 {dimension_numbers = #tpu.dot_dimension_numbers<[1], [0], [0], [1], [0, 0, 1, 1], [], []>} : vector<8x8xf32>, vector<8x32xf32>, vector<8x32xf32> -> vector<8x32xf32>
      %92 = arith.addf %89, %91 : vector<8x32xf32>
      %c1_50 = arith.constant 1 : index
      %c0_51 = arith.constant 0 : index
      %c0_52 = arith.constant 0 : index
      %93 = vector.load %arg9[%c1_50, %c0_51, %c0_52] : memref<4x8x32xf32, #tpu.memory_space<vmem>>, vector<1x8x32xf32>
      %94 = vector.shape_cast %93 : vector<1x8x32xf32> to vector<8x32xf32>
      %95 = vector.shape_cast %92 : vector<8x32xf32> to vector<1x8x32xf32>
      tpu.vector_store %arg9[%c1_50, %c0_51, %c0_52], %95 {strides = array<i32>} : memref<4x8x32xf32, #tpu.memory_space<vmem>>, vector<1x8x32xf32>,
      %c1_53 = arith.constant 1 : index
      %c0_54 = arith.constant 0 : index
      %c0_55 = arith.constant 0 : index
      %96 = vector.load %arg7[%c1_53, %c0_54, %c0_55] : memref<4x8x1xf32, #tpu.memory_space<vmem>>, vector<1x8x1xf32>
      %97 = vector.shape_cast %96 : vector<1x8x1xf32> to vector<8x1xf32>
      %98 = vector.shape_cast %76 : vector<8x1xf32> to vector<1x8x1xf32>
      tpu.vector_store %arg7[%c1_53, %c0_54, %c0_55], %98 {strides = array<i32>} : memref<4x8x1xf32, #tpu.memory_space<vmem>>, vector<1x8x1xf32>,
      %c1_56 = arith.constant 1 : index
      %c0_57 = arith.constant 0 : index
      %c0_58 = arith.constant 0 : index
      %99 = vector.load %arg8[%c1_56, %c0_57, %c0_58] : memref<4x8x1xf32, #tpu.memory_space<vmem>>, vector<1x8x1xf32>
      %100 = vector.shape_cast %99 : vector<1x8x1xf32> to vector<8x1xf32>
      %101 = vector.shape_cast %85 : vector<8x1xf32> to vector<1x8x1xf32>
      tpu.vector_store %arg8[%c1_56, %c0_57, %c0_58], %101 {strides = array<i32>} : memref<4x8x1xf32, #tpu.memory_space<vmem>>, vector<1x8x1xf32>,
      %102 = vector.extract_strided_slice %16 {offsets = [0, 64], sizes = [8, 32], strides = [1, 1]} : vector<8x128xf32> to vector<8x32xf32>
      %103 = vector.extract_strided_slice %18 {offsets = [0, 64], sizes = [8, 32], strides = [1, 1]} : vector<8x128xf32> to vector<8x32xf32>
      %cst_59 = arith.constant dense<0.000000e+00> : vector<8x8xf32>
      %104 = tpu.matmul %102, %103, %cst_59 {dimension_numbers = #tpu.dot_dimension_numbers<[1], [1], [0], [0], [0, 0, 1, 0], [], []>} : vector<8x32xf32>, vector<8x32xf32>, vector<8x8xf32> -> vector<8x8xf32>
      %cst_60 = arith.constant -1.000000e+30 : f32
      %105 = vector.broadcast %cst_60 : f32 to vector<8x8xf32>
      %106 = arith.select %27, %105, %104 : vector<8x8xi1>, vector<8x8xf32>
      %c2 = arith.constant 2 : index
      %c0_61 = arith.constant 0 : index
      %c0_62 = arith.constant 0 : index
      %107 = vector.load %arg7[%c2, %c0_61, %c0_62] : memref<4x8x1xf32, #tpu.memory_space<vmem>>, vector<1x8x1xf32>
      %108 = vector.shape_cast %107 : vector<1x8x1xf32> to vector<8x1xf32>
      %c2_63 = arith.constant 2 : index
      %c0_64 = arith.constant 0 : index
      %c0_65 = arith.constant 0 : index
      %109 = vector.load %arg8[%c2_63, %c0_64, %c0_65] : memref<4x8x1xf32, #tpu.memory_space<vmem>>, vector<1x8x1xf32>
      %110 = vector.shape_cast %109 : vector<1x8x1xf32> to vector<8x1xf32>
      %cst_66 = arith.constant dense<0xFF800000> : vector<8xf32>
      %111 = vector.multi_reduction <maximumf>, %106, %cst_66 [1] : vector<8x8xf32> to vector<8xf32>
      %112 = vector.shape_cast %111 : vector<8xf32> to vector<8x1xf32>
      %113 = arith.maximumf %108, %112 : vector<8x1xf32>
      %114 = arith.subf %108, %113 : vector<8x1xf32>
      %115 = math.exp %114 : vector<8x1xf32>
      %116 = vector.broadcast %113 : vector<8x1xf32> to vector<8x8xf32>
      %117 = arith.subf %106, %116 : vector<8x8xf32>
      %118 = math.exp %117 : vector<8x8xf32>
      %119 = arith.mulf %115, %110 : vector<8x1xf32>
      %cst_67 = arith.constant dense<0.000000e+00> : vector<8xf32>
      %120 = vector.multi_reduction <add>, %118, %cst_67 [1] : vector<8x8xf32> to vector<8xf32>
      %121 = vector.shape_cast %120 : vector<8xf32> to vector<8x1xf32>
      %122 = arith.addf %119, %121 : vector<8x1xf32>
      %c2_68 = arith.constant 2 : index
      %c0_69 = arith.constant 0 : index
      %c0_70 = arith.constant 0 : index
      %123 = vector.load %arg9[%c2_68, %c0_69, %c0_70] : memref<4x8x32xf32, #tpu.memory_space<vmem>>, vector<1x8x32xf32>
      %124 = vector.shape_cast %123 : vector<1x8x32xf32> to vector<8x32xf32>
      %125 = vector.broadcast %115 : vector<8x1xf32> to vector<8x32xf32>
      %126 = arith.mulf %125, %124 : vector<8x32xf32>
      %127 = vector.extract_strided_slice %20 {offsets = [0, 64], sizes = [8, 32], strides = [1, 1]} : vector<8x128xf32> to vector<8x32xf32>
      %cst_71 = arith.constant dense<0.000000e+00> : vector<8x32xf32>
      %128 = tpu.matmul %118, %127, %cst_71 {dimension_numbers = #tpu.dot_dimension_numbers<[1], [0], [0], [1], [0, 0, 1, 1], [], []>} : vector<8x8xf32>, vector<8x32xf32>, vector<8x32xf32> -> vector<8x32xf32>
      %129 = arith.addf %126, %128 : vector<8x32xf32>
      %c2_72 = arith.constant 2 : index
      %c0_73 = arith.constant 0 : index
      %c0_74 = arith.constant 0 : index
      %130 = vector.load %arg9[%c2_72, %c0_73, %c0_74] : memref<4x8x32xf32, #tpu.memory_space<vmem>>, vector<1x8x32xf32>
      %131 = vector.shape_cast %130 : vector<1x8x32xf32> to vector<8x32xf32>
      %132 = vector.shape_cast %129 : vector<8x32xf32> to vector<1x8x32xf32>
      tpu.vector_store %arg9[%c2_72, %c0_73, %c0_74], %132 {strides = array<i32>} : memref<4x8x32xf32, #tpu.memory_space<vmem>>, vector<1x8x32xf32>,
      %c2_75 = arith.constant 2 : index
      %c0_76 = arith.constant 0 : index
      %c0_77 = arith.constant 0 : index
      %133 = vector.load %arg7[%c2_75, %c0_76, %c0_77] : memref<4x8x1xf32, #tpu.memory_space<vmem>>, vector<1x8x1xf32>
      %134 = vector.shape_cast %133 : vector<1x8x1xf32> to vector<8x1xf32>
      %135 = vector.shape_cast %113 : vector<8x1xf32> to vector<1x8x1xf32>
      tpu.vector_store %arg7[%c2_75, %c0_76, %c0_77], %135 {strides = array<i32>} : memref<4x8x1xf32, #tpu.memory_space<vmem>>, vector<1x8x1xf32>,
      %c2_78 = arith.constant 2 : index
      %c0_79 = arith.constant 0 : index
      %c0_80 = arith.constant 0 : index
      %136 = vector.load %arg8[%c2_78, %c0_79, %c0_80] : memref<4x8x1xf32, #tpu.memory_space<vmem>>, vector<1x8x1xf32>
      %137 = vector.shape_cast %136 : vector<1x8x1xf32> to vector<8x1xf32>
      %138 = vector.shape_cast %122 : vector<8x1xf32> to vector<1x8x1xf32>
      tpu.vector_store %arg8[%c2_78, %c0_79, %c0_80], %138 {strides = array<i32>} : memref<4x8x1xf32, #tpu.memory_space<vmem>>, vector<1x8x1xf32>,
      %139 = vector.extract_strided_slice %16 {offsets = [0, 96], sizes = [8, 32], strides = [1, 1]} : vector<8x128xf32> to vector<8x32xf32>
      %140 = vector.extract_strided_slice %18 {offsets = [0, 96], sizes = [8, 32], strides = [1, 1]} : vector<8x128xf32> to vector<8x32xf32>
      %cst_81 = arith.constant dense<0.000000e+00> : vector<8x8xf32>
      %141 = tpu.matmul %139, %140, %cst_81 {dimension_numbers = #tpu.dot_dimension_numbers<[1], [1], [0], [0], [0, 0, 1, 0], [], []>} : vector<8x32xf32>, vector<8x32xf32>, vector<8x8xf32> -> vector<8x8xf32>
      %cst_82 = arith.constant -1.000000e+30 : f32
      %142 = vector.broadcast %cst_82 : f32 to vector<8x8xf32>
      %143 = arith.select %27, %142, %141 : vector<8x8xi1>, vector<8x8xf32>
      %c3 = arith.constant 3 : index
      %c0_83 = arith.constant 0 : index
      %c0_84 = arith.constant 0 : index
      %144 = vector.load %arg7[%c3, %c0_83, %c0_84] : memref<4x8x1xf32, #tpu.memory_space<vmem>>, vector<1x8x1xf32>
      %145 = vector.shape_cast %144 : vector<1x8x1xf32> to vector<8x1xf32>
      %c3_85 = arith.constant 3 : index
      %c0_86 = arith.constant 0 : index
      %c0_87 = arith.constant 0 : index
      %146 = vector.load %arg8[%c3_85, %c0_86, %c0_87] : memref<4x8x1xf32, #tpu.memory_space<vmem>>, vector<1x8x1xf32>
      %147 = vector.shape_cast %146 : vector<1x8x1xf32> to vector<8x1xf32>
      %cst_88 = arith.constant dense<0xFF800000> : vector<8xf32>
      %148 = vector.multi_reduction <maximumf>, %143, %cst_88 [1] : vector<8x8xf32> to vector<8xf32>
      %149 = vector.shape_cast %148 : vector<8xf32> to vector<8x1xf32>
      %150 = arith.maximumf %145, %149 : vector<8x1xf32>
      %151 = arith.subf %145, %150 : vector<8x1xf32>
      %152 = math.exp %151 : vector<8x1xf32>
      %153 = vector.broadcast %150 : vector<8x1xf32> to vector<8x8xf32>
      %154 = arith.subf %143, %153 : vector<8x8xf32>
      %155 = math.exp %154 : vector<8x8xf32>
      %156 = arith.mulf %152, %147 : vector<8x1xf32>
      %cst_89 = arith.constant dense<0.000000e+00> : vector<8xf32>
      %157 = vector.multi_reduction <add>, %155, %cst_89 [1] : vector<8x8xf32> to vector<8xf32>
      %158 = vector.shape_cast %157 : vector<8xf32> to vector<8x1xf32>
      %159 = arith.addf %156, %158 : vector<8x1xf32>
      %c3_90 = arith.constant 3 : index
      %c0_91 = arith.constant 0 : index
      %c0_92 = arith.constant 0 : index
      %160 = vector.load %arg9[%c3_90, %c0_91, %c0_92] : memref<4x8x32xf32, #tpu.memory_space<vmem>>, vector<1x8x32xf32>
      %161 = vector.shape_cast %160 : vector<1x8x32xf32> to vector<8x32xf32>
      %162 = vector.broadcast %152 : vector<8x1xf32> to vector<8x32xf32>
      %163 = arith.mulf %162, %161 : vector<8x32xf32>
      %164 = vector.extract_strided_slice %20 {offsets = [0, 96], sizes = [8, 32], strides = [1, 1]} : vector<8x128xf32> to vector<8x32xf32>
      %cst_93 = arith.constant dense<0.000000e+00> : vector<8x32xf32>
      %165 = tpu.matmul %155, %164, %cst_93 {dimension_numbers = #tpu.dot_dimension_numbers<[1], [0], [0], [1], [0, 0, 1, 1], [], []>} : vector<8x8xf32>, vector<8x32xf32>, vector<8x32xf32> -> vector<8x32xf32>
      %166 = arith.addf %163, %165 : vector<8x32xf32>
      %c3_94 = arith.constant 3 : index
      %c0_95 = arith.constant 0 : index
      %c0_96 = arith.constant 0 : index
      %167 = vector.load %arg9[%c3_94, %c0_95, %c0_96] : memref<4x8x32xf32, #tpu.memory_space<vmem>>, vector<1x8x32xf32>
      %168 = vector.shape_cast %167 : vector<1x8x32xf32> to vector<8x32xf32>
      %169 = vector.shape_cast %166 : vector<8x32xf32> to vector<1x8x32xf32>
      tpu.vector_store %arg9[%c3_94, %c0_95, %c0_96], %169 {strides = array<i32>} : memref<4x8x32xf32, #tpu.memory_space<vmem>>, vector<1x8x32xf32>,
      %c3_97 = arith.constant 3 : index
      %c0_98 = arith.constant 0 : index
      %c0_99 = arith.constant 0 : index
      %170 = vector.load %arg7[%c3_97, %c0_98, %c0_99] : memref<4x8x1xf32, #tpu.memory_space<vmem>>, vector<1x8x1xf32>
      %171 = vector.shape_cast %170 : vector<1x8x1xf32> to vector<8x1xf32>
      %172 = vector.shape_cast %150 : vector<8x1xf32> to vector<1x8x1xf32>
      tpu.vector_store %arg7[%c3_97, %c0_98, %c0_99], %172 {strides = array<i32>} : memref<4x8x1xf32, #tpu.memory_space<vmem>>, vector<1x8x1xf32>,
      %c3_100 = arith.constant 3 : index
      %c0_101 = arith.constant 0 : index
      %c0_102 = arith.constant 0 : index
      %173 = vector.load %arg8[%c3_100, %c0_101, %c0_102] : memref<4x8x1xf32, #tpu.memory_space<vmem>>, vector<1x8x1xf32>
      %174 = vector.shape_cast %173 : vector<1x8x1xf32> to vector<8x1xf32>
      %175 = vector.shape_cast %159 : vector<8x1xf32> to vector<1x8x1xf32>
      tpu.vector_store %arg8[%c3_100, %c0_101, %c0_102], %175 {strides = array<i32>} : memref<4x8x1xf32, #tpu.memory_space<vmem>>, vector<1x8x1xf32>,
    } else {
    }
    %c0_i32_4 = arith.constant 0 : i32
    %10 = arith.cmpi eq, %arg2, %c0_i32_4 : i32
    %11 = arith.extui %10 : i1 to i32
    %c0_i32_5 = arith.constant 0 : i32
    %12 = arith.cmpi ne, %11, %c0_i32_5 : i32
    scf.if %12 {
      %c0 = arith.constant 0 : index
      %c0_6 = arith.constant 0 : index
      %c0_7 = arith.constant 0 : index
      %13 = vector.load %arg9[%c0, %c0_6, %c0_7] : memref<4x8x32xf32, #tpu.memory_space<vmem>>, vector<1x8x32xf32>
      %14 = vector.shape_cast %13 : vector<1x8x32xf32> to vector<8x32xf32>
      %c0_8 = arith.constant 0 : index
      %c0_9 = arith.constant 0 : index
      %c0_10 = arith.constant 0 : index
      %15 = vector.load %arg8[%c0_8, %c0_9, %c0_10] : memref<4x8x1xf32, #tpu.memory_space<vmem>>, vector<1x8x1xf32>
      %16 = vector.shape_cast %15 : vector<1x8x1xf32> to vector<8x1xf32>
      %17 = tpu.reciprocal %16 {approx = true} : vector<8x1xf32> -> vector<8x1xf32>
      %18 = vector.broadcast %17 : vector<8x1xf32> to vector<8x32xf32>
      %19 = arith.mulf %14, %18 : vector<8x32xf32>
      %c1 = arith.constant 1 : index
      %c0_11 = arith.constant 0 : index
      %c0_12 = arith.constant 0 : index
      %20 = vector.load %arg9[%c1, %c0_11, %c0_12] : memref<4x8x32xf32, #tpu.memory_space<vmem>>, vector<1x8x32xf32>
      %21 = vector.shape_cast %20 : vector<1x8x32xf32> to vector<8x32xf32>
      %c1_13 = arith.constant 1 : index
      %c0_14 = arith.constant 0 : index
      %c0_15 = arith.constant 0 : index
      %22 = vector.load %arg8[%c1_13, %c0_14, %c0_15] : memref<4x8x1xf32, #tpu.memory_space<vmem>>, vector<1x8x1xf32>
      %23 = vector.shape_cast %22 : vector<1x8x1xf32> to vector<8x1xf32>
      %24 = tpu.reciprocal %23 {approx = true} : vector<8x1xf32> -> vector<8x1xf32>
      %25 = vector.broadcast %24 : vector<8x1xf32> to vector<8x32xf32>
      %26 = arith.mulf %21, %25 : vector<8x32xf32>
      %c2 = arith.constant 2 : index
      %c0_16 = arith.constant 0 : index
      %c0_17 = arith.constant 0 : index
      %27 = vector.load %arg9[%c2, %c0_16, %c0_17] : memref<4x8x32xf32, #tpu.memory_space<vmem>>, vector<1x8x32xf32>
      %28 = vector.shape_cast %27 : vector<1x8x32xf32> to vector<8x32xf32>
      %c2_18 = arith.constant 2 : index
      %c0_19 = arith.constant 0 : index
      %c0_20 = arith.constant 0 : index
      %29 = vector.load %arg8[%c2_18, %c0_19, %c0_20] : memref<4x8x1xf32, #tpu.memory_space<vmem>>, vector<1x8x1xf32>
      %30 = vector.shape_cast %29 : vector<1x8x1xf32> to vector<8x1xf32>
      %31 = tpu.reciprocal %30 {approx = true} : vector<8x1xf32> -> vector<8x1xf32>
      %32 = vector.broadcast %31 : vector<8x1xf32> to vector<8x32xf32>
      %33 = arith.mulf %28, %32 : vector<8x32xf32>
      %c3 = arith.constant 3 : index
      %c0_21 = arith.constant 0 : index
      %c0_22 = arith.constant 0 : index
      %34 = vector.load %arg9[%c3, %c0_21, %c0_22] : memref<4x8x32xf32, #tpu.memory_space<vmem>>, vector<1x8x32xf32>
      %35 = vector.shape_cast %34 : vector<1x8x32xf32> to vector<8x32xf32>
      %c3_23 = arith.constant 3 : index
      %c0_24 = arith.constant 0 : index
      %c0_25 = arith.constant 0 : index
      %36 = vector.load %arg8[%c3_23, %c0_24, %c0_25] : memref<4x8x1xf32, #tpu.memory_space<vmem>>, vector<1x8x1xf32>
      %37 = vector.shape_cast %36 : vector<1x8x1xf32> to vector<8x1xf32>
      %38 = tpu.reciprocal %37 {approx = true} : vector<8x1xf32> -> vector<8x1xf32>
      %39 = vector.broadcast %38 : vector<8x1xf32> to vector<8x32xf32>
      %40 = arith.mulf %35, %39 : vector<8x32xf32>
      %41 = tpu.concatenate %19, %26, %33, %40 in 1 : vector<8x32xf32>, vector<8x32xf32>, vector<8x32xf32>, vector<8x32xf32> -> vector<8x128xf32>
      %c0_26 = arith.constant 0 : index
      %c0_27 = arith.constant 0 : index
      %c0_28 = arith.constant 0 : index
      %42 = vector.load %arg6[%c0_26, %c0_27, %c0_28] : memref<1x8x128xf32, #tpu.memory_space<vmem>>, vector<1x8x128xf32>
      %43 = vector.shape_cast %42 : vector<1x8x128xf32> to vector<8x128xf32>
      %44 = vector.shape_cast %41 : vector<8x128xf32> to vector<1x8x128xf32>
      tpu.vector_store %arg6[%c0_26, %c0_27, %c0_28], %44 {strides = array<i32>} : memref<1x8x128xf32, #tpu.memory_space<vmem>>, vector<1x8x128xf32>,
    } else {
    }
    return
  }
  func.func @transform_0(%arg0: i32, %arg1: i32, %arg2: i32) -> (i32, i32, i32) {
    %c0_i32 = arith.constant 0 : i32
    %c0_i32_0 = arith.constant 0 : i32
    return %arg0, %arg1, %c0_i32 : i32, i32, i32
  }
  func.func @transform_1(%arg0: i32, %arg1: i32, %arg2: i32) -> (i32, i32, i32) {
    %c1_i32 = arith.constant 1 : i32
    %c0_i32 = arith.constant 0 : i32
    return %arg0, %arg2, %c1_i32 : i32, i32, i32
  }
  func.func @transform_2(%arg0: i32, %arg1: i32, %arg2: i32) -> (i32, i32, i32) {
    %c2_i32 = arith.constant 2 : i32
    %c0_i32 = arith.constant 0 : i32
    return %arg0, %arg2, %c2_i32 : i32, i32, i32
  }
  func.func @transform_3(%arg0: i32, %arg1: i32, %arg2: i32) -> (i32, i32, i32) {
    %c0_i32 = arith.constant 0 : i32
    %c0_i32_0 = arith.constant 0 : i32
    return %arg0, %arg1, %c0_i32 : i32, i32, i32
  }
}

module attributes {stable_mosaic.version = 11 : i64} {
  func.func @_linear_kernel(%arg0: i32, %arg1: i32, %arg2: i32, %arg3: memref<16x128xf32, #tpu.memory_space<vmem>>, %arg4: memref<128x128xf32, #tpu.memory_space<vmem>>, %arg5: memref<1x128xf32, #tpu.memory_space<vmem>>, %arg6: memref<16x128xf32, #tpu.memory_space<vmem>>, %arg7: memref<16x128xf32, #tpu.memory_space<vmem>>, %arg8: memref<16x128xf32, #tpu.memory_space<vmem>>) attributes {dimension_semantics = [#tpu.dimension_semantics<parallel>, #tpu.dimension_semantics<parallel>, #tpu.dimension_semantics<arbitrary>], iteration_bounds = array<i64: 1, 1, 1>, scalar_prefetch = 0 : i64, scratch_operands = 1 : i64, tpu.core_type = #tpu.core_type<tc>, window_params = [{transform_indices = @transform_0, window_bounds = array<i64: 16, 128>}, {transform_indices = @transform_1, window_bounds = array<i64: 128, 128>}, {transform_indices = @transform_2, window_bounds = array<i64: 1, 128>}, {transform_indices = @transform_3, window_bounds = array<i64: 16, 128>}, {transform_indices = @transform_4, window_bounds = array<i64: 16, 128>}]} {
    %c0_i32 = arith.constant 0 : i32
    %0 = arith.cmpi eq, %arg2, %c0_i32 : i32
    %1 = arith.extui %0 : i1 to i32
    %c0_i32_0 = arith.constant 0 : i32
    %2 = arith.cmpi ne, %1, %c0_i32_0 : i32
    scf.if %2 {
      %cst_10 = arith.constant 0.000000e+00 : f32
      %12 = vector.broadcast %cst_10 : f32 to vector<16x128xf32>
      %c0_11 = arith.constant 0 : index
      %c0_12 = arith.constant 0 : index
      %13 = vector.load %arg8[%c0_11, %c0_12] : memref<16x128xf32, #tpu.memory_space<vmem>>, vector<16x128xf32>
      tpu.vector_store %arg8[%c0_11, %c0_12], %12 {strides = array<i32>} : memref<16x128xf32, #tpu.memory_space<vmem>>, vector<16x128xf32>,
    } else {
    }
    %c0 = arith.constant 0 : index
    %c0_1 = arith.constant 0 : index
    %3 = vector.load %arg8[%c0, %c0_1] : memref<16x128xf32, #tpu.memory_space<vmem>>, vector<16x128xf32>
    %c0_2 = arith.constant 0 : index
    %c0_3 = arith.constant 0 : index
    %4 = vector.load %arg3[%c0_2, %c0_3] : memref<16x128xf32, #tpu.memory_space<vmem>>, vector<16x128xf32>
    %c0_4 = arith.constant 0 : index
    %c0_5 = arith.constant 0 : index
    %5 = vector.load %arg4[%c0_4, %c0_5] : memref<128x128xf32, #tpu.memory_space<vmem>>, vector<128x128xf32>
    %cst = arith.constant dense<0.000000e+00> : vector<16x128xf32>
    %6 = tpu.matmul %4, %5, %cst {dimension_numbers = #tpu.dot_dimension_numbers<[1], [0], [0], [1], [0, 0, 1, 1], [], []>} : vector<16x128xf32>, vector<128x128xf32>, vector<16x128xf32> -> vector<16x128xf32>
    %7 = arith.addf %3, %6 : vector<16x128xf32>
    %c0_6 = arith.constant 0 : index
    %c0_7 = arith.constant 0 : index
    %8 = vector.load %arg8[%c0_6, %c0_7] : memref<16x128xf32, #tpu.memory_space<vmem>>, vector<16x128xf32>
    tpu.vector_store %arg8[%c0_6, %c0_7], %7 {strides = array<i32>} : memref<16x128xf32, #tpu.memory_space<vmem>>, vector<16x128xf32>,
    %c0_i32_8 = arith.constant 0 : i32
    %9 = arith.cmpi eq, %arg2, %c0_i32_8 : i32
    %10 = arith.extui %9 : i1 to i32
    %c0_i32_9 = arith.constant 0 : i32
    %11 = arith.cmpi ne, %10, %c0_i32_9 : i32
    scf.if %11 {
      %c0_10 = arith.constant 0 : index
      %c0_11 = arith.constant 0 : index
      %12 = vector.load %arg8[%c0_10, %c0_11] : memref<16x128xf32, #tpu.memory_space<vmem>>, vector<16x128xf32>
      %c0_12 = arith.constant 0 : index
      %c0_13 = arith.constant 0 : index
      %13 = vector.load %arg5[%c0_12, %c0_13] : memref<1x128xf32, #tpu.memory_space<vmem>>, vector<1x128xf32>
      %14 = vector.broadcast %13 : vector<1x128xf32> to vector<16x128xf32>
      %15 = arith.addf %12, %14 : vector<16x128xf32>
      %c0_14 = arith.constant 0 : index
      %c0_15 = arith.constant 0 : index
      %16 = vector.load %arg6[%c0_14, %c0_15] : memref<16x128xf32, #tpu.memory_space<vmem>>, vector<16x128xf32>
      %17 = arith.addf %15, %16 : vector<16x128xf32>
      %c0_16 = arith.constant 0 : index
      %c0_17 = arith.constant 0 : index
      %18 = vector.load %arg7[%c0_16, %c0_17] : memref<16x128xf32, #tpu.memory_space<vmem>>, vector<16x128xf32>
      tpu.vector_store %arg7[%c0_16, %c0_17], %17 {strides = array<i32>} : memref<16x128xf32, #tpu.memory_space<vmem>>, vector<16x128xf32>,
    } else {
    }
    return
  }
  func.func @transform_0(%arg0: i32, %arg1: i32, %arg2: i32) -> (i32, i32) {
    %c0_i32 = arith.constant 0 : i32
    return %arg0, %arg2 : i32, i32
  }
  func.func @transform_1(%arg0: i32, %arg1: i32, %arg2: i32) -> (i32, i32) {
    %c0_i32 = arith.constant 0 : i32
    return %arg2, %arg1 : i32, i32
  }
  func.func @transform_2(%arg0: i32, %arg1: i32, %arg2: i32) -> (i32, i32) {
    %c0_i32 = arith.constant 0 : i32
    %c0_i32_0 = arith.constant 0 : i32
    return %c0_i32, %arg1 : i32, i32
  }
  func.func @transform_3(%arg0: i32, %arg1: i32, %arg2: i32) -> (i32, i32) {
    %c0_i32 = arith.constant 0 : i32
    return %arg0, %arg1 : i32, i32
  }
  func.func @transform_4(%arg0: i32, %arg1: i32, %arg2: i32) -> (i32, i32) {
    %c0_i32 = arith.constant 0 : i32
    return %arg0, %arg1 : i32, i32
  }
}

module attributes {stable_mosaic.version = 11 : i64} {
  func.func @_ln_linear_kernel(%arg0: i32, %arg1: i32, %arg2: memref<16x128xf32, #tpu.memory_space<vmem>>, %arg3: memref<1x128xf32, #tpu.memory_space<vmem>>, %arg4: memref<1x128xf32, #tpu.memory_space<vmem>>, %arg5: memref<128x128xf32, #tpu.memory_space<vmem>>, %arg6: memref<1x128xf32, #tpu.memory_space<vmem>>, %arg7: memref<16x128xf32, #tpu.memory_space<vmem>>, %arg8: memref<16x128xf32, #tpu.memory_space<vmem>>) attributes {dimension_semantics = [#tpu.dimension_semantics<parallel>, #tpu.dimension_semantics<arbitrary>], iteration_bounds = array<i64: 1, 1>, scalar_prefetch = 0 : i64, scratch_operands = 1 : i64, tpu.core_type = #tpu.core_type<tc>, window_params = [{transform_indices = @transform_0, window_bounds = array<i64: 16, 128>}, {pipeline_mode = #tpu.pipeline_mode<synchronous>, transform_indices = @transform_1, window_bounds = array<i64: 1, 128>}, {pipeline_mode = #tpu.pipeline_mode<synchronous>, transform_indices = @transform_2, window_bounds = array<i64: 1, 128>}, {transform_indices = @transform_3, window_bounds = array<i64: 128, 128>}, {transform_indices = @transform_4, window_bounds = array<i64: 1, 128>}, {transform_indices = @transform_5, window_bounds = array<i64: 16, 128>}]} {
    %c0_i32 = arith.constant 0 : i32
    %0 = arith.cmpi eq, %arg1, %c0_i32 : i32
    %1 = arith.extui %0 : i1 to i32
    %c0_i32_0 = arith.constant 0 : i32
    %2 = arith.cmpi ne, %1, %c0_i32_0 : i32
    scf.if %2 {
      %c0_8 = arith.constant 0 : index
      %c0_9 = arith.constant 0 : index
      %10 = vector.load %arg2[%c0_8, %c0_9] : memref<16x128xf32, #tpu.memory_space<vmem>>, vector<16x128xf32>
      %cst_10 = arith.constant dense<0.000000e+00> : vector<16xf32>
      %11 = vector.multi_reduction <add>, %10, %cst_10 [1] : vector<16x128xf32> to vector<16xf32>
      %12 = vector.shape_cast %11 : vector<16xf32> to vector<16x1xf32>
      %cst_11 = arith.constant 1.280000e+02 : f32
      %13 = vector.broadcast %cst_11 : f32 to vector<16x1xf32>
      %14 = arith.divf %12, %13 : vector<16x1xf32>
      %15 = vector.broadcast %14 : vector<16x1xf32> to vector<16x128xf32>
      %16 = arith.subf %10, %15 : vector<16x128xf32>
      %17 = arith.mulf %16, %16 : vector<16x128xf32>
      %cst_12 = arith.constant dense<0.000000e+00> : vector<16xf32>
      %18 = vector.multi_reduction <add>, %17, %cst_12 [1] : vector<16x128xf32> to vector<16xf32>
      %19 = vector.shape_cast %18 : vector<16xf32> to vector<16x1xf32>
      %cst_13 = arith.constant 1.280000e+02 : f32
      %20 = vector.broadcast %cst_13 : f32 to vector<16x1xf32>
      %21 = arith.divf %19, %20 : vector<16x1xf32>
      %22 = vector.broadcast %14 : vector<16x1xf32> to vector<16x128xf32>
      %23 = arith.subf %10, %22 : vector<16x128xf32>
      %cst_14 = arith.constant 9.99999974E-6 : f32
      %24 = vector.broadcast %cst_14 : f32 to vector<16x1xf32>
      %25 = arith.addf %21, %24 : vector<16x1xf32>
      %26 = math.rsqrt %25 : vector<16x1xf32>
      %27 = vector.broadcast %26 : vector<16x1xf32> to vector<16x128xf32>
      %28 = arith.mulf %23, %27 : vector<16x128xf32>
      %c0_15 = arith.constant 0 : index
      %c0_16 = arith.constant 0 : index
      %29 = vector.load %arg3[%c0_15, %c0_16] : memref<1x128xf32, #tpu.memory_space<vmem>>, vector<1x128xf32>
      %30 = vector.broadcast %29 : vector<1x128xf32> to vector<16x128xf32>
      %31 = arith.mulf %28, %30 : vector<16x128xf32>
      %c0_17 = arith.constant 0 : index
      %c0_18 = arith.constant 0 : index
      %32 = vector.load %arg4[%c0_17, %c0_18] : memref<1x128xf32, #tpu.memory_space<vmem>>, vector<1x128xf32>
      %33 = vector.broadcast %32 : vector<1x128xf32> to vector<16x128xf32>
      %34 = arith.addf %31, %33 : vector<16x128xf32>
      %c0_19 = arith.constant 0 : index
      %c0_20 = arith.constant 0 : index
      %35 = vector.load %arg8[%c0_19, %c0_20] : memref<16x128xf32, #tpu.memory_space<vmem>>, vector<16x128xf32>
      tpu.vector_store %arg8[%c0_19, %c0_20], %34 {strides = array<i32>} : memref<16x128xf32, #tpu.memory_space<vmem>>, vector<16x128xf32>,
    } else {
    }
    %c0 = arith.constant 0 : index
    %c0_1 = arith.constant 0 : index
    %3 = vector.load %arg8[%c0, %c0_1] : memref<16x128xf32, #tpu.memory_space<vmem>>, vector<16x128xf32>
    %c0_2 = arith.constant 0 : index
    %c0_3 = arith.constant 0 : index
    %4 = vector.load %arg5[%c0_2, %c0_3] : memref<128x128xf32, #tpu.memory_space<vmem>>, vector<128x128xf32>
    %cst = arith.constant dense<0.000000e+00> : vector<16x128xf32>
    %5 = tpu.matmul %3, %4, %cst {dimension_numbers = #tpu.dot_dimension_numbers<[1], [0], [0], [1], [0, 0, 1, 1], [], []>} : vector<16x128xf32>, vector<128x128xf32>, vector<16x128xf32> -> vector<16x128xf32>
    %c0_4 = arith.constant 0 : index
    %c0_5 = arith.constant 0 : index
    %6 = vector.load %arg6[%c0_4, %c0_5] : memref<1x128xf32, #tpu.memory_space<vmem>>, vector<1x128xf32>
    %7 = vector.broadcast %6 : vector<1x128xf32> to vector<16x128xf32>
    %8 = arith.addf %5, %7 : vector<16x128xf32>
    %c0_6 = arith.constant 0 : index
    %c0_7 = arith.constant 0 : index
    %9 = vector.load %arg7[%c0_6, %c0_7] : memref<16x128xf32, #tpu.memory_space<vmem>>, vector<16x128xf32>
    tpu.vector_store %arg7[%c0_6, %c0_7], %8 {strides = array<i32>} : memref<16x128xf32, #tpu.memory_space<vmem>>, vector<16x128xf32>,
    return
  }
  func.func @transform_0(%arg0: i32, %arg1: i32) -> (i32, i32) {
    %c0_i32 = arith.constant 0 : i32
    %c0_i32_0 = arith.constant 0 : i32
    return %arg0, %c0_i32 : i32, i32
  }
  func.func @transform_1(%arg0: i32, %arg1: i32) -> (i32, i32) {
    %c0_i32 = arith.constant 0 : i32
    %c0_i32_0 = arith.constant 0 : i32
    %c0_i32_1 = arith.constant 0 : i32
    return %c0_i32, %c0_i32_0 : i32, i32
  }
  func.func @transform_2(%arg0: i32, %arg1: i32) -> (i32, i32) {
    %c0_i32 = arith.constant 0 : i32
    %c0_i32_0 = arith.constant 0 : i32
    %c0_i32_1 = arith.constant 0 : i32
    return %c0_i32, %c0_i32_0 : i32, i32
  }
  func.func @transform_3(%arg0: i32, %arg1: i32) -> (i32, i32) {
    %c0_i32 = arith.constant 0 : i32
    %c0_i32_0 = arith.constant 0 : i32
    return %c0_i32, %arg1 : i32, i32
  }
  func.func @transform_4(%arg0: i32, %arg1: i32) -> (i32, i32) {
    %c0_i32 = arith.constant 0 : i32
    %c0_i32_0 = arith.constant 0 : i32
    return %c0_i32, %arg1 : i32, i32
  }
  func.func @transform_5(%arg0: i32, %arg1: i32) -> (i32, i32) {
    %c0_i32 = arith.constant 0 : i32
    return %arg0, %arg1 : i32, i32
  }
}

module attributes {stable_mosaic.version = 11 : i64} {
  func.func @_linear_kernel(%arg0: i32, %arg1: i32, %arg2: i32, %arg3: memref<32x128xf32, #tpu.memory_space<vmem>>, %arg4: memref<128x256xf32, #tpu.memory_space<vmem>>, %arg5: memref<1x256xf32, #tpu.memory_space<vmem>>, %arg6: memref<32x256xf32, #tpu.memory_space<vmem>>, %arg7: memref<32x256xf32, #tpu.memory_space<vmem>>) attributes {dimension_semantics = [#tpu.dimension_semantics<parallel>, #tpu.dimension_semantics<parallel>, #tpu.dimension_semantics<arbitrary>], iteration_bounds = array<i64: 1, 1, 1>, scalar_prefetch = 0 : i64, scratch_operands = 1 : i64, tpu.core_type = #tpu.core_type<tc>, window_params = [{transform_indices = @transform_0, window_bounds = array<i64: 32, 128>}, {transform_indices = @transform_1, window_bounds = array<i64: 128, 256>}, {transform_indices = @transform_2, window_bounds = array<i64: 1, 256>}, {transform_indices = @transform_3, window_bounds = array<i64: 32, 256>}]} {
    %c0_i32 = arith.constant 0 : i32
    %0 = arith.cmpi eq, %arg2, %c0_i32 : i32
    %1 = arith.extui %0 : i1 to i32
    %c0_i32_0 = arith.constant 0 : i32
    %2 = arith.cmpi ne, %1, %c0_i32_0 : i32
    scf.if %2 {
      %cst_10 = arith.constant 0.000000e+00 : f32
      %12 = vector.broadcast %cst_10 : f32 to vector<32x256xf32>
      %c0_11 = arith.constant 0 : index
      %c0_12 = arith.constant 0 : index
      %13 = vector.load %arg7[%c0_11, %c0_12] : memref<32x256xf32, #tpu.memory_space<vmem>>, vector<32x256xf32>
      tpu.vector_store %arg7[%c0_11, %c0_12], %12 {strides = array<i32>} : memref<32x256xf32, #tpu.memory_space<vmem>>, vector<32x256xf32>,
    } else {
    }
    %c0 = arith.constant 0 : index
    %c0_1 = arith.constant 0 : index
    %3 = vector.load %arg7[%c0, %c0_1] : memref<32x256xf32, #tpu.memory_space<vmem>>, vector<32x256xf32>
    %c0_2 = arith.constant 0 : index
    %c0_3 = arith.constant 0 : index
    %4 = vector.load %arg3[%c0_2, %c0_3] : memref<32x128xf32, #tpu.memory_space<vmem>>, vector<32x128xf32>
    %c0_4 = arith.constant 0 : index
    %c0_5 = arith.constant 0 : index
    %5 = vector.load %arg4[%c0_4, %c0_5] : memref<128x256xf32, #tpu.memory_space<vmem>>, vector<128x256xf32>
    %cst = arith.constant dense<0.000000e+00> : vector<32x256xf32>
    %6 = tpu.matmul %4, %5, %cst {dimension_numbers = #tpu.dot_dimension_numbers<[1], [0], [0], [1], [0, 0, 1, 1], [], []>} : vector<32x128xf32>, vector<128x256xf32>, vector<32x256xf32> -> vector<32x256xf32>
    %7 = arith.addf %3, %6 : vector<32x256xf32>
    %c0_6 = arith.constant 0 : index
    %c0_7 = arith.constant 0 : index
    %8 = vector.load %arg7[%c0_6, %c0_7] : memref<32x256xf32, #tpu.memory_space<vmem>>, vector<32x256xf32>
    tpu.vector_store %arg7[%c0_6, %c0_7], %7 {strides = array<i32>} : memref<32x256xf32, #tpu.memory_space<vmem>>, vector<32x256xf32>,
    %c0_i32_8 = arith.constant 0 : i32
    %9 = arith.cmpi eq, %arg2, %c0_i32_8 : i32
    %10 = arith.extui %9 : i1 to i32
    %c0_i32_9 = arith.constant 0 : i32
    %11 = arith.cmpi ne, %10, %c0_i32_9 : i32
    scf.if %11 {
      %c0_10 = arith.constant 0 : index
      %c0_11 = arith.constant 0 : index
      %12 = vector.load %arg7[%c0_10, %c0_11] : memref<32x256xf32, #tpu.memory_space<vmem>>, vector<32x256xf32>
      %c0_12 = arith.constant 0 : index
      %c0_13 = arith.constant 0 : index
      %13 = vector.load %arg5[%c0_12, %c0_13] : memref<1x256xf32, #tpu.memory_space<vmem>>, vector<1x256xf32>
      %14 = vector.broadcast %13 : vector<1x256xf32> to vector<32x256xf32>
      %15 = arith.addf %12, %14 : vector<32x256xf32>
      %c0_14 = arith.constant 0 : index
      %c0_15 = arith.constant 0 : index
      %16 = vector.load %arg6[%c0_14, %c0_15] : memref<32x256xf32, #tpu.memory_space<vmem>>, vector<32x256xf32>
      tpu.vector_store %arg6[%c0_14, %c0_15], %15 {strides = array<i32>} : memref<32x256xf32, #tpu.memory_space<vmem>>, vector<32x256xf32>,
    } else {
    }
    return
  }
  func.func @transform_0(%arg0: i32, %arg1: i32, %arg2: i32) -> (i32, i32) {
    %c0_i32 = arith.constant 0 : i32
    return %arg0, %arg2 : i32, i32
  }
  func.func @transform_1(%arg0: i32, %arg1: i32, %arg2: i32) -> (i32, i32) {
    %c0_i32 = arith.constant 0 : i32
    return %arg2, %arg1 : i32, i32
  }
  func.func @transform_2(%arg0: i32, %arg1: i32, %arg2: i32) -> (i32, i32) {
    %c0_i32 = arith.constant 0 : i32
    %c0_i32_0 = arith.constant 0 : i32
    return %c0_i32, %arg1 : i32, i32
  }
  func.func @transform_3(%arg0: i32, %arg1: i32, %arg2: i32) -> (i32, i32) {
    %c0_i32 = arith.constant 0 : i32
    return %arg0, %arg1 : i32, i32
  }
}

module attributes {stable_mosaic.version = 11 : i64} {
  func.func @_ln_linear_kernel(%arg0: i32, %arg1: i32, %arg2: memref<16x128xf32, #tpu.memory_space<vmem>>, %arg3: memref<1x128xf32, #tpu.memory_space<vmem>>, %arg4: memref<1x128xf32, #tpu.memory_space<vmem>>, %arg5: memref<128x256xf32, #tpu.memory_space<vmem>>, %arg6: memref<1x256xf32, #tpu.memory_space<vmem>>, %arg7: memref<16x256xf32, #tpu.memory_space<vmem>>, %arg8: memref<16x128xf32, #tpu.memory_space<vmem>>) attributes {dimension_semantics = [#tpu.dimension_semantics<parallel>, #tpu.dimension_semantics<arbitrary>], iteration_bounds = array<i64: 1, 1>, scalar_prefetch = 0 : i64, scratch_operands = 1 : i64, tpu.core_type = #tpu.core_type<tc>, window_params = [{transform_indices = @transform_0, window_bounds = array<i64: 16, 128>}, {pipeline_mode = #tpu.pipeline_mode<synchronous>, transform_indices = @transform_1, window_bounds = array<i64: 1, 128>}, {pipeline_mode = #tpu.pipeline_mode<synchronous>, transform_indices = @transform_2, window_bounds = array<i64: 1, 128>}, {transform_indices = @transform_3, window_bounds = array<i64: 128, 256>}, {transform_indices = @transform_4, window_bounds = array<i64: 1, 256>}, {transform_indices = @transform_5, window_bounds = array<i64: 16, 256>}]} {
    %c0_i32 = arith.constant 0 : i32
    %0 = arith.cmpi eq, %arg1, %c0_i32 : i32
    %1 = arith.extui %0 : i1 to i32
    %c0_i32_0 = arith.constant 0 : i32
    %2 = arith.cmpi ne, %1, %c0_i32_0 : i32
    scf.if %2 {
      %c0_9 = arith.constant 0 : index
      %c0_10 = arith.constant 0 : index
      %12 = vector.load %arg2[%c0_9, %c0_10] : memref<16x128xf32, #tpu.memory_space<vmem>>, vector<16x128xf32>
      %cst_11 = arith.constant dense<0.000000e+00> : vector<16xf32>
      %13 = vector.multi_reduction <add>, %12, %cst_11 [1] : vector<16x128xf32> to vector<16xf32>
      %14 = vector.shape_cast %13 : vector<16xf32> to vector<16x1xf32>
      %cst_12 = arith.constant 1.280000e+02 : f32
      %15 = vector.broadcast %cst_12 : f32 to vector<16x1xf32>
      %16 = arith.divf %14, %15 : vector<16x1xf32>
      %17 = vector.broadcast %16 : vector<16x1xf32> to vector<16x128xf32>
      %18 = arith.subf %12, %17 : vector<16x128xf32>
      %19 = arith.mulf %18, %18 : vector<16x128xf32>
      %cst_13 = arith.constant dense<0.000000e+00> : vector<16xf32>
      %20 = vector.multi_reduction <add>, %19, %cst_13 [1] : vector<16x128xf32> to vector<16xf32>
      %21 = vector.shape_cast %20 : vector<16xf32> to vector<16x1xf32>
      %cst_14 = arith.constant 1.280000e+02 : f32
      %22 = vector.broadcast %cst_14 : f32 to vector<16x1xf32>
      %23 = arith.divf %21, %22 : vector<16x1xf32>
      %24 = vector.broadcast %16 : vector<16x1xf32> to vector<16x128xf32>
      %25 = arith.subf %12, %24 : vector<16x128xf32>
      %cst_15 = arith.constant 9.99999974E-6 : f32
      %26 = vector.broadcast %cst_15 : f32 to vector<16x1xf32>
      %27 = arith.addf %23, %26 : vector<16x1xf32>
      %28 = math.rsqrt %27 : vector<16x1xf32>
      %29 = vector.broadcast %28 : vector<16x1xf32> to vector<16x128xf32>
      %30 = arith.mulf %25, %29 : vector<16x128xf32>
      %c0_16 = arith.constant 0 : index
      %c0_17 = arith.constant 0 : index
      %31 = vector.load %arg3[%c0_16, %c0_17] : memref<1x128xf32, #tpu.memory_space<vmem>>, vector<1x128xf32>
      %32 = vector.broadcast %31 : vector<1x128xf32> to vector<16x128xf32>
      %33 = arith.mulf %30, %32 : vector<16x128xf32>
      %c0_18 = arith.constant 0 : index
      %c0_19 = arith.constant 0 : index
      %34 = vector.load %arg4[%c0_18, %c0_19] : memref<1x128xf32, #tpu.memory_space<vmem>>, vector<1x128xf32>
      %35 = vector.broadcast %34 : vector<1x128xf32> to vector<16x128xf32>
      %36 = arith.addf %33, %35 : vector<16x128xf32>
      %c0_20 = arith.constant 0 : index
      %c0_21 = arith.constant 0 : index
      %37 = vector.load %arg8[%c0_20, %c0_21] : memref<16x128xf32, #tpu.memory_space<vmem>>, vector<16x128xf32>
      tpu.vector_store %arg8[%c0_20, %c0_21], %36 {strides = array<i32>} : memref<16x128xf32, #tpu.memory_space<vmem>>, vector<16x128xf32>,
    } else {
    }
    %c0 = arith.constant 0 : index
    %c0_1 = arith.constant 0 : index
    %3 = vector.load %arg8[%c0, %c0_1] : memref<16x128xf32, #tpu.memory_space<vmem>>, vector<16x128xf32>
    %c0_2 = arith.constant 0 : index
    %c0_3 = arith.constant 0 : index
    %4 = vector.load %arg5[%c0_2, %c0_3] : memref<128x256xf32, #tpu.memory_space<vmem>>, vector<128x256xf32>
    %cst = arith.constant dense<0.000000e+00> : vector<16x256xf32>
    %5 = tpu.matmul %3, %4, %cst {dimension_numbers = #tpu.dot_dimension_numbers<[1], [0], [0], [1], [0, 0, 1, 1], [], []>} : vector<16x128xf32>, vector<128x256xf32>, vector<16x256xf32> -> vector<16x256xf32>
    %c0_4 = arith.constant 0 : index
    %c0_5 = arith.constant 0 : index
    %6 = vector.load %arg6[%c0_4, %c0_5] : memref<1x256xf32, #tpu.memory_space<vmem>>, vector<1x256xf32>
    %7 = vector.broadcast %6 : vector<1x256xf32> to vector<16x256xf32>
    %8 = arith.addf %5, %7 : vector<16x256xf32>
    %cst_6 = arith.constant 0.000000e+00 : f32
    %9 = vector.broadcast %cst_6 : f32 to vector<16x256xf32>
    %10 = arith.maximumf %8, %9 : vector<16x256xf32>
    %c0_7 = arith.constant 0 : index
    %c0_8 = arith.constant 0 : index
    %11 = vector.load %arg7[%c0_7, %c0_8] : memref<16x256xf32, #tpu.memory_space<vmem>>, vector<16x256xf32>
    tpu.vector_store %arg7[%c0_7, %c0_8], %10 {strides = array<i32>} : memref<16x256xf32, #tpu.memory_space<vmem>>, vector<16x256xf32>,
    return
  }
  func.func @transform_0(%arg0: i32, %arg1: i32) -> (i32, i32) {
    %c0_i32 = arith.constant 0 : i32
    %c0_i32_0 = arith.constant 0 : i32
    return %arg0, %c0_i32 : i32, i32
  }
  func.func @transform_1(%arg0: i32, %arg1: i32) -> (i32, i32) {
    %c0_i32 = arith.constant 0 : i32
    %c0_i32_0 = arith.constant 0 : i32
    %c0_i32_1 = arith.constant 0 : i32
    return %c0_i32, %c0_i32_0 : i32, i32
  }
  func.func @transform_2(%arg0: i32, %arg1: i32) -> (i32, i32) {
    %c0_i32 = arith.constant 0 : i32
    %c0_i32_0 = arith.constant 0 : i32
    %c0_i32_1 = arith.constant 0 : i32
    return %c0_i32, %c0_i32_0 : i32, i32
  }
  func.func @transform_3(%arg0: i32, %arg1: i32) -> (i32, i32) {
    %c0_i32 = arith.constant 0 : i32
    %c0_i32_0 = arith.constant 0 : i32
    return %c0_i32, %arg1 : i32, i32
  }
  func.func @transform_4(%arg0: i32, %arg1: i32) -> (i32, i32) {
    %c0_i32 = arith.constant 0 : i32
    %c0_i32_0 = arith.constant 0 : i32
    return %c0_i32, %arg1 : i32, i32
  }
  func.func @transform_5(%arg0: i32, %arg1: i32) -> (i32, i32) {
    %c0_i32 = arith.constant 0 : i32
    return %arg0, %arg1 : i32, i32
  }
}

module attributes {stable_mosaic.version = 11 : i64} {
  func.func @_attention_kernel(%arg0: i32, %arg1: i32, %arg2: i32, %arg3: memref<1x8x128xf32, #tpu.memory_space<vmem>>, %arg4: memref<1x16x128xf32, #tpu.memory_space<vmem>>, %arg5: memref<1x16x128xf32, #tpu.memory_space<vmem>>, %arg6: memref<1x8x128xf32, #tpu.memory_space<vmem>>, %arg7: memref<1x8x16xf32, #tpu.memory_space<vmem>>, %arg8: memref<4x8x1xf32, #tpu.memory_space<vmem>>, %arg9: memref<4x8x1xf32, #tpu.memory_space<vmem>>, %arg10: memref<4x8x32xf32, #tpu.memory_space<vmem>>) attributes {dimension_semantics = [#tpu.dimension_semantics<parallel>, #tpu.dimension_semantics<parallel>, #tpu.dimension_semantics<arbitrary>], iteration_bounds = array<i64: 2, 1, 1>, scalar_prefetch = 0 : i64, scratch_operands = 3 : i64, tpu.core_type = #tpu.core_type<tc>, window_params = [{transform_indices = @transform_0, window_bounds = array<i64: 1, 8, 128>}, {transform_indices = @transform_1, window_bounds = array<i64: 1, 16, 128>}, {transform_indices = @transform_2, window_bounds = array<i64: 1, 16, 128>}, {transform_indices = @transform_3, window_bounds = array<i64: 1, 8, 128>}, {transform_indices = @transform_4, window_bounds = array<i64: 1, 8, 16>}]} {
    %c0_i32 = arith.constant 0 : i32
    %0 = arith.cmpi eq, %arg2, %c0_i32 : i32
    %1 = arith.extui %0 : i1 to i32
    %c0_i32_0 = arith.constant 0 : i32
    %2 = arith.cmpi ne, %1, %c0_i32_0 : i32
    scf.if %2 {
      %cst_101 = arith.constant 0xFF800000 : f32
      %172 = vector.broadcast %cst_101 : f32 to vector<4x8x1xf32>
      %c0_102 = arith.constant 0 : index
      %c0_103 = arith.constant 0 : index
      %c0_104 = arith.constant 0 : index
      %173 = vector.load %arg8[%c0_102, %c0_103, %c0_104] : memref<4x8x1xf32, #tpu.memory_space<vmem>>, vector<4x8x1xf32>
      tpu.vector_store %arg8[%c0_102, %c0_103, %c0_104], %172 {strides = array<i32>} : memref<4x8x1xf32, #tpu.memory_space<vmem>>, vector<4x8x1xf32>,
      %cst_105 = arith.constant 0.000000e+00 : f32
      %174 = vector.broadcast %cst_105 : f32 to vector<4x8x1xf32>
      %c0_106 = arith.constant 0 : index
      %c0_107 = arith.constant 0 : index
      %c0_108 = arith.constant 0 : index
      %175 = vector.load %arg9[%c0_106, %c0_107, %c0_108] : memref<4x8x1xf32, #tpu.memory_space<vmem>>, vector<4x8x1xf32>
      tpu.vector_store %arg9[%c0_106, %c0_107, %c0_108], %174 {strides = array<i32>} : memref<4x8x1xf32, #tpu.memory_space<vmem>>, vector<4x8x1xf32>,
      %cst_109 = arith.constant 0.000000e+00 : f32
      %176 = vector.broadcast %cst_109 : f32 to vector<4x8x32xf32>
      %c0_110 = arith.constant 0 : index
      %c0_111 = arith.constant 0 : index
      %c0_112 = arith.constant 0 : index
      %177 = vector.load %arg10[%c0_110, %c0_111, %c0_112] : memref<4x8x32xf32, #tpu.memory_space<vmem>>, vector<4x8x32xf32>
      tpu.vector_store %arg10[%c0_110, %c0_111, %c0_112], %176 {strides = array<i32>} : memref<4x8x32xf32, #tpu.memory_space<vmem>>, vector<4x8x32xf32>,
    } else {
    }
    %c0 = arith.constant 0 : index
    %c0_1 = arith.constant 0 : index
    %c0_2 = arith.constant 0 : index
    %3 = vector.load %arg3[%c0, %c0_1, %c0_2] : memref<1x8x128xf32, #tpu.memory_space<vmem>>, vector<1x8x128xf32>
    %4 = vector.shape_cast %3 : vector<1x8x128xf32> to vector<8x128xf32>
    %cst = arith.constant 0.176776692 : f32
    %5 = vector.broadcast %cst : f32 to vector<8x128xf32>
    %6 = arith.mulf %4, %5 : vector<8x128xf32>
    %c0_3 = arith.constant 0 : index
    %c0_4 = arith.constant 0 : index
    %c0_5 = arith.constant 0 : index
    %7 = vector.load %arg4[%c0_3, %c0_4, %c0_5] : memref<1x16x128xf32, #tpu.memory_space<vmem>>, vector<1x16x128xf32>
    %8 = vector.shape_cast %7 : vector<1x16x128xf32> to vector<16x128xf32>
    %c0_6 = arith.constant 0 : index
    %c0_7 = arith.constant 0 : index
    %c0_8 = arith.constant 0 : index
    %9 = vector.load %arg5[%c0_6, %c0_7, %c0_8] : memref<1x16x128xf32, #tpu.memory_space<vmem>>, vector<1x16x128xf32>
    %10 = vector.shape_cast %9 : vector<1x16x128xf32> to vector<16x128xf32>
    %cst_9 = arith.constant 0.000000e+00 : f32
    %11 = vector.broadcast %cst_9 : f32 to vector<8x16xf32>
    %12 = vector.extract_strided_slice %6 {offsets = [0, 0], sizes = [8, 32], strides = [1, 1]} : vector<8x128xf32> to vector<8x32xf32>
    %13 = vector.extract_strided_slice %8 {offsets = [0, 0], sizes = [16, 32], strides = [1, 1]} : vector<16x128xf32> to vector<16x32xf32>
    %cst_10 = arith.constant dense<0.000000e+00> : vector<8x16xf32>
    %14 = tpu.matmul %12, %13, %cst_10 {dimension_numbers = #tpu.dot_dimension_numbers<[1], [1], [0], [0], [0, 0, 1, 0], [], []>} : vector<8x32xf32>, vector<16x32xf32>, vector<8x16xf32> -> vector<8x16xf32>
    %c0_11 = arith.constant 0 : index
    %c0_12 = arith.constant 0 : index
    %c0_13 = arith.constant 0 : index
    %15 = vector.load %arg8[%c0_11, %c0_12, %c0_13] : memref<4x8x1xf32, #tpu.memory_space<vmem>>, vector<1x8x1xf32>
    %16 = vector.shape_cast %15 : vector<1x8x1xf32> to vector<8x1xf32>
    %c0_14 = arith.constant 0 : index
    %c0_15 = arith.constant 0 : index
    %c0_16 = arith.constant 0 : index
    %17 = vector.load %arg9[%c0_14, %c0_15, %c0_16] : memref<4x8x1xf32, #tpu.memory_space<vmem>>, vector<1x8x1xf32>
    %18 = vector.shape_cast %17 : vector<1x8x1xf32> to vector<8x1xf32>
    %cst_17 = arith.constant dense<0xFF800000> : vector<8xf32>
    %19 = vector.multi_reduction <maximumf>, %14, %cst_17 [1] : vector<8x16xf32> to vector<8xf32>
    %20 = vector.shape_cast %19 : vector<8xf32> to vector<8x1xf32>
    %21 = arith.maximumf %16, %20 : vector<8x1xf32>
    %22 = arith.subf %16, %21 : vector<8x1xf32>
    %23 = math.exp %22 : vector<8x1xf32>
    %24 = vector.broadcast %21 : vector<8x1xf32> to vector<8x16xf32>
    %25 = arith.subf %14, %24 : vector<8x16xf32>
    %26 = math.exp %25 : vector<8x16xf32>
    %27 = arith.mulf %23, %18 : vector<8x1xf32>
    %cst_18 = arith.constant dense<0.000000e+00> : vector<8xf32>
    %28 = vector.multi_reduction <add>, %26, %cst_18 [1] : vector<8x16xf32> to vector<8xf32>
    %29 = vector.shape_cast %28 : vector<8xf32> to vector<8x1xf32>
    %30 = arith.addf %27, %29 : vector<8x1xf32>
    %c0_19 = arith.constant 0 : index
    %c0_20 = arith.constant 0 : index
    %c0_21 = arith.constant 0 : index
    %31 = vector.load %arg10[%c0_19, %c0_20, %c0_21] : memref<4x8x32xf32, #tpu.memory_space<vmem>>, vector<1x8x32xf32>
    %32 = vector.shape_cast %31 : vector<1x8x32xf32> to vector<8x32xf32>
    %33 = vector.broadcast %23 : vector<8x1xf32> to vector<8x32xf32>
    %34 = arith.mulf %33, %32 : vector<8x32xf32>
    %35 = vector.extract_strided_slice %10 {offsets = [0, 0], sizes = [16, 32], strides = [1, 1]} : vector<16x128xf32> to vector<16x32xf32>
    %cst_22 = arith.constant dense<0.000000e+00> : vector<8x32xf32>
    %36 = tpu.matmul %26, %35, %cst_22 {dimension_numbers = #tpu.dot_dimension_numbers<[1], [0], [0], [1], [0, 0, 1, 1], [], []>} : vector<8x16xf32>, vector<16x32xf32>, vector<8x32xf32> -> vector<8x32xf32>
    %37 = arith.addf %34, %36 : vector<8x32xf32>
    %c0_23 = arith.constant 0 : index
    %c0_24 = arith.constant 0 : index
    %c0_25 = arith.constant 0 : index
    %38 = vector.load %arg10[%c0_23, %c0_24, %c0_25] : memref<4x8x32xf32, #tpu.memory_space<vmem>>, vector<1x8x32xf32>
    %39 = vector.shape_cast %38 : vector<1x8x32xf32> to vector<8x32xf32>
    %40 = vector.shape_cast %37 : vector<8x32xf32> to vector<1x8x32xf32>
    tpu.vector_store %arg10[%c0_23, %c0_24, %c0_25], %40 {strides = array<i32>} : memref<4x8x32xf32, #tpu.memory_space<vmem>>, vector<1x8x32xf32>,
    %c0_26 = arith.constant 0 : index
    %c0_27 = arith.constant 0 : index
    %c0_28 = arith.constant 0 : index
    %41 = vector.load %arg8[%c0_26, %c0_27, %c0_28] : memref<4x8x1xf32, #tpu.memory_space<vmem>>, vector<1x8x1xf32>
    %42 = vector.shape_cast %41 : vector<1x8x1xf32> to vector<8x1xf32>
    %43 = vector.shape_cast %21 : vector<8x1xf32> to vector<1x8x1xf32>
    tpu.vector_store %arg8[%c0_26, %c0_27, %c0_28], %43 {strides = array<i32>} : memref<4x8x1xf32, #tpu.memory_space<vmem>>, vector<1x8x1xf32>,
    %c0_29 = arith.constant 0 : index
    %c0_30 = arith.constant 0 : index
    %c0_31 = arith.constant 0 : index
    %44 = vector.load %arg9[%c0_29, %c0_30, %c0_31] : memref<4x8x1xf32, #tpu.memory_space<vmem>>, vector<1x8x1xf32>
    %45 = vector.shape_cast %44 : vector<1x8x1xf32> to vector<8x1xf32>
    %46 = vector.shape_cast %30 : vector<8x1xf32> to vector<1x8x1xf32>
    tpu.vector_store %arg9[%c0_29, %c0_30, %c0_31], %46 {strides = array<i32>} : memref<4x8x1xf32, #tpu.memory_space<vmem>>, vector<1x8x1xf32>,
    %47 = vector.broadcast %30 : vector<8x1xf32> to vector<8x16xf32>
    %48 = arith.divf %26, %47 : vector<8x16xf32>
    %49 = arith.addf %11, %48 : vector<8x16xf32>
    %50 = vector.extract_strided_slice %6 {offsets = [0, 32], sizes = [8, 32], strides = [1, 1]} : vector<8x128xf32> to vector<8x32xf32>
    %51 = vector.extract_strided_slice %8 {offsets = [0, 32], sizes = [16, 32], strides = [1, 1]} : vector<16x128xf32> to vector<16x32xf32>
    %cst_32 = arith.constant dense<0.000000e+00> : vector<8x16xf32>
    %52 = tpu.matmul %50, %51, %cst_32 {dimension_numbers = #tpu.dot_dimension_numbers<[1], [1], [0], [0], [0, 0, 1, 0], [], []>} : vector<8x32xf32>, vector<16x32xf32>, vector<8x16xf32> -> vector<8x16xf32>
    %c1 = arith.constant 1 : index
    %c0_33 = arith.constant 0 : index
    %c0_34 = arith.constant 0 : index
    %53 = vector.load %arg8[%c1, %c0_33, %c0_34] : memref<4x8x1xf32, #tpu.memory_space<vmem>>, vector<1x8x1xf32>
    %54 = vector.shape_cast %53 : vector<1x8x1xf32> to vector<8x1xf32>
    %c1_35 = arith.constant 1 : index
    %c0_36 = arith.constant 0 : index
    %c0_37 = arith.constant 0 : index
    %55 = vector.load %arg9[%c1_35, %c0_36, %c0_37] : memref<4x8x1xf32, #tpu.memory_space<vmem>>, vector<1x8x1xf32>
    %56 = vector.shape_cast %55 : vector<1x8x1xf32> to vector<8x1xf32>
    %cst_38 = arith.constant dense<0xFF800000> : vector<8xf32>
    %57 = vector.multi_reduction <maximumf>, %52, %cst_38 [1] : vector<8x16xf32> to vector<8xf32>
    %58 = vector.shape_cast %57 : vector<8xf32> to vector<8x1xf32>
    %59 = arith.maximumf %54, %58 : vector<8x1xf32>
    %60 = arith.subf %54, %59 : vector<8x1xf32>
    %61 = math.exp %60 : vector<8x1xf32>
    %62 = vector.broadcast %59 : vector<8x1xf32> to vector<8x16xf32>
    %63 = arith.subf %52, %62 : vector<8x16xf32>
    %64 = math.exp %63 : vector<8x16xf32>
    %65 = arith.mulf %61, %56 : vector<8x1xf32>
    %cst_39 = arith.constant dense<0.000000e+00> : vector<8xf32>
    %66 = vector.multi_reduction <add>, %64, %cst_39 [1] : vector<8x16xf32> to vector<8xf32>
    %67 = vector.shape_cast %66 : vector<8xf32> to vector<8x1xf32>
    %68 = arith.addf %65, %67 : vector<8x1xf32>
    %c1_40 = arith.constant 1 : index
    %c0_41 = arith.constant 0 : index
    %c0_42 = arith.constant 0 : index
    %69 = vector.load %arg10[%c1_40, %c0_41, %c0_42] : memref<4x8x32xf32, #tpu.memory_space<vmem>>, vector<1x8x32xf32>
    %70 = vector.shape_cast %69 : vector<1x8x32xf32> to vector<8x32xf32>
    %71 = vector.broadcast %61 : vector<8x1xf32> to vector<8x32xf32>
    %72 = arith.mulf %71, %70 : vector<8x32xf32>
    %73 = vector.extract_strided_slice %10 {offsets = [0, 32], sizes = [16, 32], strides = [1, 1]} : vector<16x128xf32> to vector<16x32xf32>
    %cst_43 = arith.constant dense<0.000000e+00> : vector<8x32xf32>
    %74 = tpu.matmul %64, %73, %cst_43 {dimension_numbers = #tpu.dot_dimension_numbers<[1], [0], [0], [1], [0, 0, 1, 1], [], []>} : vector<8x16xf32>, vector<16x32xf32>, vector<8x32xf32> -> vector<8x32xf32>
    %75 = arith.addf %72, %74 : vector<8x32xf32>
    %c1_44 = arith.constant 1 : index
    %c0_45 = arith.constant 0 : index
    %c0_46 = arith.constant 0 : index
    %76 = vector.load %arg10[%c1_44, %c0_45, %c0_46] : memref<4x8x32xf32, #tpu.memory_space<vmem>>, vector<1x8x32xf32>
    %77 = vector.shape_cast %76 : vector<1x8x32xf32> to vector<8x32xf32>
    %78 = vector.shape_cast %75 : vector<8x32xf32> to vector<1x8x32xf32>
    tpu.vector_store %arg10[%c1_44, %c0_45, %c0_46], %78 {strides = array<i32>} : memref<4x8x32xf32, #tpu.memory_space<vmem>>, vector<1x8x32xf32>,
    %c1_47 = arith.constant 1 : index
    %c0_48 = arith.constant 0 : index
    %c0_49 = arith.constant 0 : index
    %79 = vector.load %arg8[%c1_47, %c0_48, %c0_49] : memref<4x8x1xf32, #tpu.memory_space<vmem>>, vector<1x8x1xf32>
    %80 = vector.shape_cast %79 : vector<1x8x1xf32> to vector<8x1xf32>
    %81 = vector.shape_cast %59 : vector<8x1xf32> to vector<1x8x1xf32>
    tpu.vector_store %arg8[%c1_47, %c0_48, %c0_49], %81 {strides = array<i32>} : memref<4x8x1xf32, #tpu.memory_space<vmem>>, vector<1x8x1xf32>,
    %c1_50 = arith.constant 1 : index
    %c0_51 = arith.constant 0 : index
    %c0_52 = arith.constant 0 : index
    %82 = vector.load %arg9[%c1_50, %c0_51, %c0_52] : memref<4x8x1xf32, #tpu.memory_space<vmem>>, vector<1x8x1xf32>
    %83 = vector.shape_cast %82 : vector<1x8x1xf32> to vector<8x1xf32>
    %84 = vector.shape_cast %68 : vector<8x1xf32> to vector<1x8x1xf32>
    tpu.vector_store %arg9[%c1_50, %c0_51, %c0_52], %84 {strides = array<i32>} : memref<4x8x1xf32, #tpu.memory_space<vmem>>, vector<1x8x1xf32>,
    %85 = vector.broadcast %68 : vector<8x1xf32> to vector<8x16xf32>
    %86 = arith.divf %64, %85 : vector<8x16xf32>
    %87 = arith.addf %49, %86 : vector<8x16xf32>
    %88 = vector.extract_strided_slice %6 {offsets = [0, 64], sizes = [8, 32], strides = [1, 1]} : vector<8x128xf32> to vector<8x32xf32>
    %89 = vector.extract_strided_slice %8 {offsets = [0, 64], sizes = [16, 32], strides = [1, 1]} : vector<16x128xf32> to vector<16x32xf32>
    %cst_53 = arith.constant dense<0.000000e+00> : vector<8x16xf32>
    %90 = tpu.matmul %88, %89, %cst_53 {dimension_numbers = #tpu.dot_dimension_numbers<[1], [1], [0], [0], [0, 0, 1, 0], [], []>} : vector<8x32xf32>, vector<16x32xf32>, vector<8x16xf32> -> vector<8x16xf32>
    %c2 = arith.constant 2 : index
    %c0_54 = arith.constant 0 : index
    %c0_55 = arith.constant 0 : index
    %91 = vector.load %arg8[%c2, %c0_54, %c0_55] : memref<4x8x1xf32, #tpu.memory_space<vmem>>, vector<1x8x1xf32>
    %92 = vector.shape_cast %91 : vector<1x8x1xf32> to vector<8x1xf32>
    %c2_56 = arith.constant 2 : index
    %c0_57 = arith.constant 0 : index
    %c0_58 = arith.constant 0 : index
    %93 = vector.load %arg9[%c2_56, %c0_57, %c0_58] : memref<4x8x1xf32, #tpu.memory_space<vmem>>, vector<1x8x1xf32>
    %94 = vector.shape_cast %93 : vector<1x8x1xf32> to vector<8x1xf32>
    %cst_59 = arith.constant dense<0xFF800000> : vector<8xf32>
    %95 = vector.multi_reduction <maximumf>, %90, %cst_59 [1] : vector<8x16xf32> to vector<8xf32>
    %96 = vector.shape_cast %95 : vector<8xf32> to vector<8x1xf32>
    %97 = arith.maximumf %92, %96 : vector<8x1xf32>
    %98 = arith.subf %92, %97 : vector<8x1xf32>
    %99 = math.exp %98 : vector<8x1xf32>
    %100 = vector.broadcast %97 : vector<8x1xf32> to vector<8x16xf32>
    %101 = arith.subf %90, %100 : vector<8x16xf32>
    %102 = math.exp %101 : vector<8x16xf32>
    %103 = arith.mulf %99, %94 : vector<8x1xf32>
    %cst_60 = arith.constant dense<0.000000e+00> : vector<8xf32>
    %104 = vector.multi_reduction <add>, %102, %cst_60 [1] : vector<8x16xf32> to vector<8xf32>
    %105 = vector.shape_cast %104 : vector<8xf32> to vector<8x1xf32>
    %106 = arith.addf %103, %105 : vector<8x1xf32>
    %c2_61 = arith.constant 2 : index
    %c0_62 = arith.constant 0 : index
    %c0_63 = arith.constant 0 : index
    %107 = vector.load %arg10[%c2_61, %c0_62, %c0_63] : memref<4x8x32xf32, #tpu.memory_space<vmem>>, vector<1x8x32xf32>
    %108 = vector.shape_cast %107 : vector<1x8x32xf32> to vector<8x32xf32>
    %109 = vector.broadcast %99 : vector<8x1xf32> to vector<8x32xf32>
    %110 = arith.mulf %109, %108 : vector<8x32xf32>
    %111 = vector.extract_strided_slice %10 {offsets = [0, 64], sizes = [16, 32], strides = [1, 1]} : vector<16x128xf32> to vector<16x32xf32>
    %cst_64 = arith.constant dense<0.000000e+00> : vector<8x32xf32>
    %112 = tpu.matmul %102, %111, %cst_64 {dimension_numbers = #tpu.dot_dimension_numbers<[1], [0], [0], [1], [0, 0, 1, 1], [], []>} : vector<8x16xf32>, vector<16x32xf32>, vector<8x32xf32> -> vector<8x32xf32>
    %113 = arith.addf %110, %112 : vector<8x32xf32>
    %c2_65 = arith.constant 2 : index
    %c0_66 = arith.constant 0 : index
    %c0_67 = arith.constant 0 : index
    %114 = vector.load %arg10[%c2_65, %c0_66, %c0_67] : memref<4x8x32xf32, #tpu.memory_space<vmem>>, vector<1x8x32xf32>
    %115 = vector.shape_cast %114 : vector<1x8x32xf32> to vector<8x32xf32>
    %116 = vector.shape_cast %113 : vector<8x32xf32> to vector<1x8x32xf32>
    tpu.vector_store %arg10[%c2_65, %c0_66, %c0_67], %116 {strides = array<i32>} : memref<4x8x32xf32, #tpu.memory_space<vmem>>, vector<1x8x32xf32>,
    %c2_68 = arith.constant 2 : index
    %c0_69 = arith.constant 0 : index
    %c0_70 = arith.constant 0 : index
    %117 = vector.load %arg8[%c2_68, %c0_69, %c0_70] : memref<4x8x1xf32, #tpu.memory_space<vmem>>, vector<1x8x1xf32>
    %118 = vector.shape_cast %117 : vector<1x8x1xf32> to vector<8x1xf32>
    %119 = vector.shape_cast %97 : vector<8x1xf32> to vector<1x8x1xf32>
    tpu.vector_store %arg8[%c2_68, %c0_69, %c0_70], %119 {strides = array<i32>} : memref<4x8x1xf32, #tpu.memory_space<vmem>>, vector<1x8x1xf32>,
    %c2_71 = arith.constant 2 : index
    %c0_72 = arith.constant 0 : index
    %c0_73 = arith.constant 0 : index
    %120 = vector.load %arg9[%c2_71, %c0_72, %c0_73] : memref<4x8x1xf32, #tpu.memory_space<vmem>>, vector<1x8x1xf32>
    %121 = vector.shape_cast %120 : vector<1x8x1xf32> to vector<8x1xf32>
    %122 = vector.shape_cast %106 : vector<8x1xf32> to vector<1x8x1xf32>
    tpu.vector_store %arg9[%c2_71, %c0_72, %c0_73], %122 {strides = array<i32>} : memref<4x8x1xf32, #tpu.memory_space<vmem>>, vector<1x8x1xf32>,
    %123 = vector.broadcast %106 : vector<8x1xf32> to vector<8x16xf32>
    %124 = arith.divf %102, %123 : vector<8x16xf32>
    %125 = arith.addf %87, %124 : vector<8x16xf32>
    %126 = vector.extract_strided_slice %6 {offsets = [0, 96], sizes = [8, 32], strides = [1, 1]} : vector<8x128xf32> to vector<8x32xf32>
    %127 = vector.extract_strided_slice %8 {offsets = [0, 96], sizes = [16, 32], strides = [1, 1]} : vector<16x128xf32> to vector<16x32xf32>
    %cst_74 = arith.constant dense<0.000000e+00> : vector<8x16xf32>
    %128 = tpu.matmul %126, %127, %cst_74 {dimension_numbers = #tpu.dot_dimension_numbers<[1], [1], [0], [0], [0, 0, 1, 0], [], []>} : vector<8x32xf32>, vector<16x32xf32>, vector<8x16xf32> -> vector<8x16xf32>
    %c3 = arith.constant 3 : index
    %c0_75 = arith.constant 0 : index
    %c0_76 = arith.constant 0 : index
    %129 = vector.load %arg8[%c3, %c0_75, %c0_76] : memref<4x8x1xf32, #tpu.memory_space<vmem>>, vector<1x8x1xf32>
    %130 = vector.shape_cast %129 : vector<1x8x1xf32> to vector<8x1xf32>
    %c3_77 = arith.constant 3 : index
    %c0_78 = arith.constant 0 : index
    %c0_79 = arith.constant 0 : index
    %131 = vector.load %arg9[%c3_77, %c0_78, %c0_79] : memref<4x8x1xf32, #tpu.memory_space<vmem>>, vector<1x8x1xf32>
    %132 = vector.shape_cast %131 : vector<1x8x1xf32> to vector<8x1xf32>
    %cst_80 = arith.constant dense<0xFF800000> : vector<8xf32>
    %133 = vector.multi_reduction <maximumf>, %128, %cst_80 [1] : vector<8x16xf32> to vector<8xf32>
    %134 = vector.shape_cast %133 : vector<8xf32> to vector<8x1xf32>
    %135 = arith.maximumf %130, %134 : vector<8x1xf32>
    %136 = arith.subf %130, %135 : vector<8x1xf32>
    %137 = math.exp %136 : vector<8x1xf32>
    %138 = vector.broadcast %135 : vector<8x1xf32> to vector<8x16xf32>
    %139 = arith.subf %128, %138 : vector<8x16xf32>
    %140 = math.exp %139 : vector<8x16xf32>
    %141 = arith.mulf %137, %132 : vector<8x1xf32>
    %cst_81 = arith.constant dense<0.000000e+00> : vector<8xf32>
    %142 = vector.multi_reduction <add>, %140, %cst_81 [1] : vector<8x16xf32> to vector<8xf32>
    %143 = vector.shape_cast %142 : vector<8xf32> to vector<8x1xf32>
    %144 = arith.addf %141, %143 : vector<8x1xf32>
    %c3_82 = arith.constant 3 : index
    %c0_83 = arith.constant 0 : index
    %c0_84 = arith.constant 0 : index
    %145 = vector.load %arg10[%c3_82, %c0_83, %c0_84] : memref<4x8x32xf32, #tpu.memory_space<vmem>>, vector<1x8x32xf32>
    %146 = vector.shape_cast %145 : vector<1x8x32xf32> to vector<8x32xf32>
    %147 = vector.broadcast %137 : vector<8x1xf32> to vector<8x32xf32>
    %148 = arith.mulf %147, %146 : vector<8x32xf32>
    %149 = vector.extract_strided_slice %10 {offsets = [0, 96], sizes = [16, 32], strides = [1, 1]} : vector<16x128xf32> to vector<16x32xf32>
    %cst_85 = arith.constant dense<0.000000e+00> : vector<8x32xf32>
    %150 = tpu.matmul %140, %149, %cst_85 {dimension_numbers = #tpu.dot_dimension_numbers<[1], [0], [0], [1], [0, 0, 1, 1], [], []>} : vector<8x16xf32>, vector<16x32xf32>, vector<8x32xf32> -> vector<8x32xf32>
    %151 = arith.addf %148, %150 : vector<8x32xf32>
    %c3_86 = arith.constant 3 : index
    %c0_87 = arith.constant 0 : index
    %c0_88 = arith.constant 0 : index
    %152 = vector.load %arg10[%c3_86, %c0_87, %c0_88] : memref<4x8x32xf32, #tpu.memory_space<vmem>>, vector<1x8x32xf32>
    %153 = vector.shape_cast %152 : vector<1x8x32xf32> to vector<8x32xf32>
    %154 = vector.shape_cast %151 : vector<8x32xf32> to vector<1x8x32xf32>
    tpu.vector_store %arg10[%c3_86, %c0_87, %c0_88], %154 {strides = array<i32>} : memref<4x8x32xf32, #tpu.memory_space<vmem>>, vector<1x8x32xf32>,
    %c3_89 = arith.constant 3 : index
    %c0_90 = arith.constant 0 : index
    %c0_91 = arith.constant 0 : index
    %155 = vector.load %arg8[%c3_89, %c0_90, %c0_91] : memref<4x8x1xf32, #tpu.memory_space<vmem>>, vector<1x8x1xf32>
    %156 = vector.shape_cast %155 : vector<1x8x1xf32> to vector<8x1xf32>
    %157 = vector.shape_cast %135 : vector<8x1xf32> to vector<1x8x1xf32>
    tpu.vector_store %arg8[%c3_89, %c0_90, %c0_91], %157 {strides = array<i32>} : memref<4x8x1xf32, #tpu.memory_space<vmem>>, vector<1x8x1xf32>,
    %c3_92 = arith.constant 3 : index
    %c0_93 = arith.constant 0 : index
    %c0_94 = arith.constant 0 : index
    %158 = vector.load %arg9[%c3_92, %c0_93, %c0_94] : memref<4x8x1xf32, #tpu.memory_space<vmem>>, vector<1x8x1xf32>
    %159 = vector.shape_cast %158 : vector<1x8x1xf32> to vector<8x1xf32>
    %160 = vector.shape_cast %144 : vector<8x1xf32> to vector<1x8x1xf32>
    tpu.vector_store %arg9[%c3_92, %c0_93, %c0_94], %160 {strides = array<i32>} : memref<4x8x1xf32, #tpu.memory_space<vmem>>, vector<1x8x1xf32>,
    %161 = vector.broadcast %144 : vector<8x1xf32> to vector<8x16xf32>
    %162 = arith.divf %140, %161 : vector<8x16xf32>
    %163 = arith.addf %125, %162 : vector<8x16xf32>
    %cst_95 = arith.constant 2.500000e-01 : f32
    %164 = vector.broadcast %cst_95 : f32 to vector<8x16xf32>
    %165 = arith.mulf %163, %164 : vector<8x16xf32>
    %c0_96 = arith.constant 0 : index
    %c0_97 = arith.constant 0 : index
    %c0_98 = arith.constant 0 : index
    %166 = vector.load %arg7[%c0_96, %c0_97, %c0_98] : memref<1x8x16xf32, #tpu.memory_space<vmem>>, vector<1x8x16xf32>
    %167 = vector.shape_cast %166 : vector<1x8x16xf32> to vector<8x16xf32>
    %168 = vector.shape_cast %165 : vector<8x16xf32> to vector<1x8x16xf32>
    tpu.vector_store %arg7[%c0_96, %c0_97, %c0_98], %168 {strides = array<i32>} : memref<1x8x16xf32, #tpu.memory_space<vmem>>, vector<1x8x16xf32>,
    %c0_i32_99 = arith.constant 0 : i32
    %169 = arith.cmpi eq, %arg2, %c0_i32_99 : i32
    %170 = arith.extui %169 : i1 to i32
    %c0_i32_100 = arith.constant 0 : i32
    %171 = arith.cmpi ne, %170, %c0_i32_100 : i32
    scf.if %171 {
      %c0_101 = arith.constant 0 : index
      %c0_102 = arith.constant 0 : index
      %c0_103 = arith.constant 0 : index
      %172 = vector.load %arg10[%c0_101, %c0_102, %c0_103] : memref<4x8x32xf32, #tpu.memory_space<vmem>>, vector<1x8x32xf32>
      %173 = vector.shape_cast %172 : vector<1x8x32xf32> to vector<8x32xf32>
      %c0_104 = arith.constant 0 : index
      %c0_105 = arith.constant 0 : index
      %c0_106 = arith.constant 0 : index
      %174 = vector.load %arg9[%c0_104, %c0_105, %c0_106] : memref<4x8x1xf32, #tpu.memory_space<vmem>>, vector<1x8x1xf32>
      %175 = vector.shape_cast %174 : vector<1x8x1xf32> to vector<8x1xf32>
      %176 = tpu.reciprocal %175 {approx = true} : vector<8x1xf32> -> vector<8x1xf32>
      %177 = vector.broadcast %176 : vector<8x1xf32> to vector<8x32xf32>
      %178 = arith.mulf %173, %177 : vector<8x32xf32>
      %c1_107 = arith.constant 1 : index
      %c0_108 = arith.constant 0 : index
      %c0_109 = arith.constant 0 : index
      %179 = vector.load %arg10[%c1_107, %c0_108, %c0_109] : memref<4x8x32xf32, #tpu.memory_space<vmem>>, vector<1x8x32xf32>
      %180 = vector.shape_cast %179 : vector<1x8x32xf32> to vector<8x32xf32>
      %c1_110 = arith.constant 1 : index
      %c0_111 = arith.constant 0 : index
      %c0_112 = arith.constant 0 : index
      %181 = vector.load %arg9[%c1_110, %c0_111, %c0_112] : memref<4x8x1xf32, #tpu.memory_space<vmem>>, vector<1x8x1xf32>
      %182 = vector.shape_cast %181 : vector<1x8x1xf32> to vector<8x1xf32>
      %183 = tpu.reciprocal %182 {approx = true} : vector<8x1xf32> -> vector<8x1xf32>
      %184 = vector.broadcast %183 : vector<8x1xf32> to vector<8x32xf32>
      %185 = arith.mulf %180, %184 : vector<8x32xf32>
      %c2_113 = arith.constant 2 : index
      %c0_114 = arith.constant 0 : index
      %c0_115 = arith.constant 0 : index
      %186 = vector.load %arg10[%c2_113, %c0_114, %c0_115] : memref<4x8x32xf32, #tpu.memory_space<vmem>>, vector<1x8x32xf32>
      %187 = vector.shape_cast %186 : vector<1x8x32xf32> to vector<8x32xf32>
      %c2_116 = arith.constant 2 : index
      %c0_117 = arith.constant 0 : index
      %c0_118 = arith.constant 0 : index
      %188 = vector.load %arg9[%c2_116, %c0_117, %c0_118] : memref<4x8x1xf32, #tpu.memory_space<vmem>>, vector<1x8x1xf32>
      %189 = vector.shape_cast %188 : vector<1x8x1xf32> to vector<8x1xf32>
      %190 = tpu.reciprocal %189 {approx = true} : vector<8x1xf32> -> vector<8x1xf32>
      %191 = vector.broadcast %190 : vector<8x1xf32> to vector<8x32xf32>
      %192 = arith.mulf %187, %191 : vector<8x32xf32>
      %c3_119 = arith.constant 3 : index
      %c0_120 = arith.constant 0 : index
      %c0_121 = arith.constant 0 : index
      %193 = vector.load %arg10[%c3_119, %c0_120, %c0_121] : memref<4x8x32xf32, #tpu.memory_space<vmem>>, vector<1x8x32xf32>
      %194 = vector.shape_cast %193 : vector<1x8x32xf32> to vector<8x32xf32>
      %c3_122 = arith.constant 3 : index
      %c0_123 = arith.constant 0 : index
      %c0_124 = arith.constant 0 : index
      %195 = vector.load %arg9[%c3_122, %c0_123, %c0_124] : memref<4x8x1xf32, #tpu.memory_space<vmem>>, vector<1x8x1xf32>
      %196 = vector.shape_cast %195 : vector<1x8x1xf32> to vector<8x1xf32>
      %197 = tpu.reciprocal %196 {approx = true} : vector<8x1xf32> -> vector<8x1xf32>
      %198 = vector.broadcast %197 : vector<8x1xf32> to vector<8x32xf32>
      %199 = arith.mulf %194, %198 : vector<8x32xf32>
      %200 = tpu.concatenate %178, %185, %192, %199 in 1 : vector<8x32xf32>, vector<8x32xf32>, vector<8x32xf32>, vector<8x32xf32> -> vector<8x128xf32>
      %c0_125 = arith.constant 0 : index
      %c0_126 = arith.constant 0 : index
      %c0_127 = arith.constant 0 : index
      %201 = vector.load %arg6[%c0_125, %c0_126, %c0_127] : memref<1x8x128xf32, #tpu.memory_space<vmem>>, vector<1x8x128xf32>
      %202 = vector.shape_cast %201 : vector<1x8x128xf32> to vector<8x128xf32>
      %203 = vector.shape_cast %200 : vector<8x128xf32> to vector<1x8x128xf32>
      tpu.vector_store %arg6[%c0_125, %c0_126, %c0_127], %203 {strides = array<i32>} : memref<1x8x128xf32, #tpu.memory_space<vmem>>, vector<1x8x128xf32>,
    } else {
    }
    return
  }
  func.func @transform_0(%arg0: i32, %arg1: i32, %arg2: i32) -> (i32, i32, i32) {
    %c0_i32 = arith.constant 0 : i32
    %c0_i32_0 = arith.constant 0 : i32
    return %arg0, %arg1, %c0_i32 : i32, i32, i32
  }
  func.func @transform_1(%arg0: i32, %arg1: i32, %arg2: i32) -> (i32, i32, i32) {
    %c0_i32 = arith.constant 0 : i32
    %c0_i32_0 = arith.constant 0 : i32
    return %arg0, %arg2, %c0_i32 : i32, i32, i32
  }
  func.func @transform_2(%arg0: i32, %arg1: i32, %arg2: i32) -> (i32, i32, i32) {
    %c1_i32 = arith.constant 1 : i32
    %c0_i32 = arith.constant 0 : i32
    return %arg0, %arg2, %c1_i32 : i32, i32, i32
  }
  func.func @transform_3(%arg0: i32, %arg1: i32, %arg2: i32) -> (i32, i32, i32) {
    %c0_i32 = arith.constant 0 : i32
    %c0_i32_0 = arith.constant 0 : i32
    return %arg0, %arg1, %c0_i32 : i32, i32, i32
  }
  func.func @transform_4(%arg0: i32, %arg1: i32, %arg2: i32) -> (i32, i32, i32) {
    %c0_i32 = arith.constant 0 : i32
    %c0_i32_0 = arith.constant 0 : i32
    return %arg0, %arg1, %c0_i32 : i32, i32, i32
  }
}

module attributes {stable_mosaic.version = 11 : i64} {
  func.func @_linear_kernel(%arg0: i32, %arg1: i32, %arg2: i32, %arg3: memref<16x256xf32, #tpu.memory_space<vmem>>, %arg4: memref<256x128xf32, #tpu.memory_space<vmem>>, %arg5: memref<1x128xf32, #tpu.memory_space<vmem>>, %arg6: memref<16x128xf32, #tpu.memory_space<vmem>>, %arg7: memref<16x128xf32, #tpu.memory_space<vmem>>, %arg8: memref<16x128xf32, #tpu.memory_space<vmem>>) attributes {dimension_semantics = [#tpu.dimension_semantics<parallel>, #tpu.dimension_semantics<parallel>, #tpu.dimension_semantics<arbitrary>], iteration_bounds = array<i64: 1, 1, 1>, scalar_prefetch = 0 : i64, scratch_operands = 1 : i64, tpu.core_type = #tpu.core_type<tc>, window_params = [{transform_indices = @transform_0, window_bounds = array<i64: 16, 256>}, {transform_indices = @transform_1, window_bounds = array<i64: 256, 128>}, {transform_indices = @transform_2, window_bounds = array<i64: 1, 128>}, {transform_indices = @transform_3, window_bounds = array<i64: 16, 128>}, {transform_indices = @transform_4, window_bounds = array<i64: 16, 128>}]} {
    %c0_i32 = arith.constant 0 : i32
    %0 = arith.cmpi eq, %arg2, %c0_i32 : i32
    %1 = arith.extui %0 : i1 to i32
    %c0_i32_0 = arith.constant 0 : i32
    %2 = arith.cmpi ne, %1, %c0_i32_0 : i32
    scf.if %2 {
      %cst_10 = arith.constant 0.000000e+00 : f32
      %12 = vector.broadcast %cst_10 : f32 to vector<16x128xf32>
      %c0_11 = arith.constant 0 : index
      %c0_12 = arith.constant 0 : index
      %13 = vector.load %arg8[%c0_11, %c0_12] : memref<16x128xf32, #tpu.memory_space<vmem>>, vector<16x128xf32>
      tpu.vector_store %arg8[%c0_11, %c0_12], %12 {strides = array<i32>} : memref<16x128xf32, #tpu.memory_space<vmem>>, vector<16x128xf32>,
    } else {
    }
    %c0 = arith.constant 0 : index
    %c0_1 = arith.constant 0 : index
    %3 = vector.load %arg8[%c0, %c0_1] : memref<16x128xf32, #tpu.memory_space<vmem>>, vector<16x128xf32>
    %c0_2 = arith.constant 0 : index
    %c0_3 = arith.constant 0 : index
    %4 = vector.load %arg3[%c0_2, %c0_3] : memref<16x256xf32, #tpu.memory_space<vmem>>, vector<16x256xf32>
    %c0_4 = arith.constant 0 : index
    %c0_5 = arith.constant 0 : index
    %5 = vector.load %arg4[%c0_4, %c0_5] : memref<256x128xf32, #tpu.memory_space<vmem>>, vector<256x128xf32>
    %cst = arith.constant dense<0.000000e+00> : vector<16x128xf32>
    %6 = tpu.matmul %4, %5, %cst {dimension_numbers = #tpu.dot_dimension_numbers<[1], [0], [0], [1], [0, 0, 1, 1], [], []>} : vector<16x256xf32>, vector<256x128xf32>, vector<16x128xf32> -> vector<16x128xf32>
    %7 = arith.addf %3, %6 : vector<16x128xf32>
    %c0_6 = arith.constant 0 : index
    %c0_7 = arith.constant 0 : index
    %8 = vector.load %arg8[%c0_6, %c0_7] : memref<16x128xf32, #tpu.memory_space<vmem>>, vector<16x128xf32>
    tpu.vector_store %arg8[%c0_6, %c0_7], %7 {strides = array<i32>} : memref<16x128xf32, #tpu.memory_space<vmem>>, vector<16x128xf32>,
    %c0_i32_8 = arith.constant 0 : i32
    %9 = arith.cmpi eq, %arg2, %c0_i32_8 : i32
    %10 = arith.extui %9 : i1 to i32
    %c0_i32_9 = arith.constant 0 : i32
    %11 = arith.cmpi ne, %10, %c0_i32_9 : i32
    scf.if %11 {
      %c0_10 = arith.constant 0 : index
      %c0_11 = arith.constant 0 : index
      %12 = vector.load %arg8[%c0_10, %c0_11] : memref<16x128xf32, #tpu.memory_space<vmem>>, vector<16x128xf32>
      %c0_12 = arith.constant 0 : index
      %c0_13 = arith.constant 0 : index
      %13 = vector.load %arg5[%c0_12, %c0_13] : memref<1x128xf32, #tpu.memory_space<vmem>>, vector<1x128xf32>
      %14 = vector.broadcast %13 : vector<1x128xf32> to vector<16x128xf32>
      %15 = arith.addf %12, %14 : vector<16x128xf32>
      %c0_14 = arith.constant 0 : index
      %c0_15 = arith.constant 0 : index
      %16 = vector.load %arg6[%c0_14, %c0_15] : memref<16x128xf32, #tpu.memory_space<vmem>>, vector<16x128xf32>
      %17 = arith.addf %15, %16 : vector<16x128xf32>
      %c0_16 = arith.constant 0 : index
      %c0_17 = arith.constant 0 : index
      %18 = vector.load %arg7[%c0_16, %c0_17] : memref<16x128xf32, #tpu.memory_space<vmem>>, vector<16x128xf32>
      tpu.vector_store %arg7[%c0_16, %c0_17], %17 {strides = array<i32>} : memref<16x128xf32, #tpu.memory_space<vmem>>, vector<16x128xf32>,
    } else {
    }
    return
  }
  func.func @transform_0(%arg0: i32, %arg1: i32, %arg2: i32) -> (i32, i32) {
    %c0_i32 = arith.constant 0 : i32
    return %arg0, %arg2 : i32, i32
  }
  func.func @transform_1(%arg0: i32, %arg1: i32, %arg2: i32) -> (i32, i32) {
    %c0_i32 = arith.constant 0 : i32
    return %arg2, %arg1 : i32, i32
  }
  func.func @transform_2(%arg0: i32, %arg1: i32, %arg2: i32) -> (i32, i32) {
    %c0_i32 = arith.constant 0 : i32
    %c0_i32_0 = arith.constant 0 : i32
    return %c0_i32, %arg1 : i32, i32
  }
  func.func @transform_3(%arg0: i32, %arg1: i32, %arg2: i32) -> (i32, i32) {
    %c0_i32 = arith.constant 0 : i32
    return %arg0, %arg1 : i32, i32
  }
  func.func @transform_4(%arg0: i32, %arg1: i32, %arg2: i32) -> (i32, i32) {
    %c0_i32 = arith.constant 0 : i32
    return %arg0, %arg1 : i32, i32
  }
}

</mosaic_0001>

<bundles_post_ra>
// kernel: decoder_layer_forward.11
= control target key start
LH: loop header
LB: loop body
LE: loop exit
PB: predicated region body
PF: predicated region fallthrough
CT: control target
= control target key end

     0   :  { %s326_s1 = inlined_call_operand.vmem [shape: f32[128,128], index: 1, kind: input, shape index: {}]   ;;  %s327_s0 = inlined_call_operand.vmem [shape: f32[16,128], index: 0, kind: input, shape index: {}]   ;;  %s328_s2 = inlined_call_operand.vmem [shape: f32[1,128], index: 2, kind: input, shape index: {}]   ;;  %s329_s3 = inlined_call_operand.vmem [shape: f32[16,128], index: 3, kind: input, shape index: {}]   ;;  %s330_s4 = inlined_call_operand.vmem [shape: f32[16,128], index: 4, kind: output, shape index: {}]  }
   0x1   :  { %v27_v0 = vld [vmem:[%s326_s1] sm:$0xff]  ;;  %v28_v1 = vld [vmem:[%s326_s1 + $0x8] sm:$0xff]  ;;  %v29_v2 = vld [vmem:[%s326_s1 + $0x10] sm:$0xff] }
   0x2   :  { %v200_v3 = vpack.c.bf16 %v28_v1, %v27_v0  ;;  %v30_v4 = vld [vmem:[%s326_s1 + $0x18] sm:$0xff]  ;;  %v31_v6 = vld [vmem:[%s326_s1 + $0x20] sm:$0xff]  ;;  %v32_v7 = vld [vmem:[%s326_s1 + $0x28] sm:$0xff] }
   0x3   :  { %v204_v5 = vpack.c.bf16 %v30_v4, %v29_v2  ;;  %v208_v8 = vpack.c.bf16 %v32_v7, %v31_v6  ;;  %v25_v9 = vld [vmem:[%s327_s0] sm:$0xff]  ;;  %v33_v10 = vld [vmem:[%s326_s1 + $0x30] sm:$0xff]  ;;  %v34_v11 = vld [vmem:[%s326_s1 + $0x38] sm:$0xff] }
   0x4   :  { %201 = vmatprep.subr.bf16.mxu0 %v200_v3  ;;  %197 = vmatprep.mubr.f32.mxu0 %v25_v9  ;;  %v212_v12 = vpack.c.bf16 %v34_v11, %v33_v10  ;;  %v35_v13 = vld [vmem:[%s326_s1 + $0x40] sm:$0xff]  ;;  %v36_v14 = vld [vmem:[%s326_s1 + $0x48] sm:$0xff]  ;;  %v37_v16 = vld [vmem:[%s326_s1 + $0x50] sm:$0xff] }
   0x5   :  { %203 = vmatpush3.bf16.msra.mxu0 %v200_v3  ;;  %v216_v15 = vpack.c.bf16 %v36_v14, %v35_v13  ;;  %v38_v17 = vld [vmem:[%s326_s1 + $0x58] sm:$0xff]  ;;  %v39_v19 = vld [vmem:[%s326_s1 + $0x60] sm:$0xff]  ;;  %v40_v20 = vld [vmem:[%s326_s1 + $0x68] sm:$0xff] }
   0x6   :  { %205 = vmatprep.subr.bf16.mxu0 %v204_v5  ;;  %v220_v18 = vpack.c.bf16 %v38_v17, %v37_v16  ;;  %v224_v21 = vpack.c.bf16 %v40_v20, %v39_v19  ;;  %v41_v22 = vld [vmem:[%s326_s1 + $0x70] sm:$0xff]  ;;  %v42_v23 = vld [vmem:[%s326_s1 + $0x78] sm:$0xff]  ;;  %v26_v25 = vld [vmem:[%s327_s0 + $0x8] sm:$0xff] }
   0x7   :  { %v228_v24 = vpack.c.bf16 %v42_v23, %v41_v22  ;;  %v146_v26 = vld [vmem:[%s328_s2] ss:$0 sm:$0xff]  ;;  %v137_v28 = vld [vmem:[%s329_s3 + $0x8] sm:$0xff] }
   0x8   :  { %v136_v31 = vld [vmem:[%s329_s3] sm:$0xff] }
   0x9   :  { %207 = vmatpush3.bf16.msra.mxu0 %v204_v5 }
   0xa   :  { %209 = vmatprep.subr.bf16.mxu0 %v208_v8 }
   0xd   :  { %211 = vmatpush3.bf16.msra.mxu0 %v208_v8 }
   0xe   :  { %213 = vmatprep.subr.bf16.mxu0 %v212_v12 }
  0x11   :  { %215 = vmatpush3.bf16.msra.mxu0 %v212_v12 }
  0x12   :  { %217 = vmatprep.subr.bf16.mxu0 %v216_v15 }
  0x15   :  { %219 = vmatpush3.bf16.msra.mxu0 %v216_v15 }
  0x16   :  { %221 = vmatprep.subr.bf16.mxu0 %v220_v18 }
  0x19   :  { %223 = vmatpush3.bf16.msra.mxu0 %v220_v18 }
  0x1a   :  { %225 = vmatprep.subr.bf16.mxu0 %v224_v21 }
  0x1d   :  { %227 = vmatpush3.bf16.msra.mxu0 %v224_v21 }
  0x1e   :  { %229 = vmatprep.subr.bf16.mxu0 %v228_v24 }
  0x21   :  { %231 = vmatpush3.bf16.msra.mxu0 %v228_v24 }
  0x24   :  { %198 = vmatmul.mubr.f32.vlgmr.msra.gmra.mrb[0].mxu0 %v26_v25 }
  0xf7   :  { %v199_v27 = vpop.f32.mrb[0].mxu0 }
  0xf8   :  { %v135_v29 = vadd.f32 %v199_v27, %v146_v26  ;;  %v109_v30 = vpop.f32.mrb[1].mxu0 }
  0xf9   :  { %v134_v32 = vadd.f32 %v146_v26, %v109_v30 }
  0xfa   :  { %v139_v33 = vadd.f32 %v137_v28, %v135_v29 }
  0xfb   :  { %v138_v34 = vadd.f32 %v136_v31, %v134_v32 }
  0xfc   :  { %141 = vst [vmem:[%s330_s4 + $0x8] sm:$0xff] %v139_v33 }
  0xfd   :  { %140 = vst [vmem:[%s330_s4] sm:$0xff] %v138_v34 }

// kernel: decoder_layer_forward.9
= control target key start
LH: loop header
LB: loop body
LE: loop exit
PB: predicated region body
PF: predicated region fallthrough
CT: control target
= control target key end

     0   :  { %10 = vsyncpa [#allocation4], 0  ;;  %s464_s18 = smov [#allocation3]   ;;  %s553_s0 = inlined_call_operand.vmem [shape: f32[16,128], index: 0, kind: input, shape index: {}]   ;;  %s554_s1 = inlined_call_operand.vmem [shape: f32[1,128], index: 1, kind: input, shape index: {}]   ;;  %s555_s2 = inlined_call_operand.vmem [shape: f32[1,128], index: 2, kind: input, shape index: {}]   ;;  %s556_s3 = inlined_call_operand.hbm [shape: f32[128,384], index: 3, kind: input, shape index: {}]   ;;  %s557_s4 = inlined_call_operand.vmem [shape: f32[1,384], index: 4, kind: input, shape index: {}]   ;;  %s558_s5 = inlined_call_operand.vmem [shape: f32[16,384], index: 5, kind: output, shape index: {}]  }
   0x1   :  { %s22_s19 = sshll.u32 %s464_s18, 4  ;;  %s440_s22 = scalar_lea.hbm %s556_s3, 6144  ;;  %s23_s19 = int_to_ptr.vmem [resolvable:$true] %s22_s19 }
   0x2   :  { %p441_p0 = scmp.ne.s32.totalorder %s556_s3, %s440_s22  ;;  %p444_p1 = scmp.lt.u32.totalorder %s440_s22, %s556_s3 }
   0x4   :  { %p446_p2 = pnand %p444_p1, %p441_p0 }
   0x6   :  { %449 = shalt.err (!%p446_p2)
}
   0x7   :  { %s450_s27 = scalar_lea.vmem %s23_s19, 6144  ;;  %p455_p4 = scmp.lt.s32.totalorder %s23_s19, %s23_s19 }
   0x8   :  { %p451_p3 = scmp.ne.s32.totalorder %s23_s19, %s450_s27  ;;  %p456_p5 = scmp.lt.s32.totalorder %s450_s27, %s450_s27 }
   0xa   :  { %p457_p6 = por %p456_p5, %p455_p4 }
   0xc   :  { %p458_p7 = pnand %p457_p6, %p451_p3 }
   0xe   :  { %461 = shalt.err (!%p458_p7)
}
   0xf   :  { %s465_s28 = smov 384   ;;  %s466_s29 = smov 24  }
  0x10   :  { %28 = dma.hbm_to_vmem [thread:$0]  %s556_s3, 6144, %s23_s19, [#allocation4], %s465_s28, %s465_s28, %s466_s29  }
  0x11   :  { %462 = dma.done.wait [#allocation4], 6144  }
  0x12   :  { %463 = vsyncadd [#allocation4], 4294961152  ;;  %v38_v0 = vld [vmem:[%s553_s0] sm:$0xff]  ;;  %v39_v1 = vld [vmem:[%s553_s0 + $0x8] sm:$0xff] }
  0x13   :  { %40 = vadd.xlane.f32.xlu0 %v38_v0  ;;  %v86_v2 = vld [vmem:[#allocation3 + $0x8] sm:$0xff]  ;;  %v89_v3 = vld [vmem:[#allocation3 + $0x20] sm:$0xff]  ;;  %v88_v6 = vld [vmem:[#allocation3 + $0x18] sm:$0xff] }
  0x14   :  { %v85_v4 = vld [vmem:[#allocation3] sm:$0xff]  ;;  %v368_v5 = vpack.c.bf16 %v89_v3, %v86_v2  ;;  %v92_v7 = vld [vmem:[#allocation3 + $0x38] sm:$0xff]  ;;  %v95_v8 = vld [vmem:[#allocation3 + $0x50] sm:$0xff] }
  0x15   :  { %v370_v9 = vpack.c.bf16 %v88_v6, %v85_v4  ;;  %v372_v10 = vpack.c.bf16 %v95_v8, %v92_v7  ;;  %v87_v11 = vld [vmem:[#allocation3 + $0x10] sm:$0xff]  ;;  %v90_v12 = vld [vmem:[#allocation3 + $0x28] sm:$0xff]  ;;  %v101_v17 = vld [vmem:[#allocation3 + $0x80] sm:$0xff]  ;;  %v467_v4 = vmov 0.0  }
  0x16   :  { %v91_v13 = vld [vmem:[#allocation3 + $0x30] sm:$0xff]  ;;  %369 = vmatprep.subr.bf16.mxu0 %v368_v5  ;;  %v400_v14 = vpack.c.bf16 %v90_v12, %v87_v11  ;;  %v94_v15 = vld [vmem:[#allocation3 + $0x48] sm:$0xff]  ;;  %v93_v19 = vld [vmem:[#allocation3 + $0x40] sm:$0xff]  ;;  %214 = vmatprep.mubr.f32.mxu0 %v467_v4 }
  0x17   :  { %42 = vadd.xlane.f32.xlu0 %v39_v1  ;;  %v98_v16 = vld [vmem:[#allocation3 + $0x68] sm:$0xff]  ;;  %371 = vmatpush1.bf16.msra.mxu0 %v370_v9  ;;  %v374_v18 = vpack.c.bf16 %v94_v15, %v91_v13  ;;  %v96_v20 = vld [vmem:[#allocation3 + $0x58] sm:$0xff]  ;;  %v97_v23 = vld [vmem:[#allocation3 + $0x60] sm:$0xff] }
  0x18   :  { %373 = vmatprep.subr.bf16.mxu0 %v372_v10  ;;  %401 = vmatprep.subr.bf16.mxu1 %v400_v14  ;;  %v376_v21 = vpack.c.bf16 %v101_v17, %v98_v16  ;;  %v404_v22 = vpack.c.bf16 %v96_v20, %v93_v19  ;;  %v100_v24 = vld [vmem:[#allocation3 + $0x78] sm:$0xff]  ;;  %v107_v35 = vld [vmem:[#allocation3 + $0xb0] sm:$0xff]  ;;  %v102_v38 = vld [vmem:[#allocation3 + $0x88] sm:$0xff] }
  0x19   :  { %403 = vmatpush3.bf16.msra.mxu1 %v400_v14  ;;  %v378_v25 = vpack.c.bf16 %v100_v24, %v97_v23  ;;  %v104_v34 = vld [vmem:[#allocation3 + $0x98] sm:$0xff]  ;;  %v99_v36 = vld [vmem:[#allocation3 + $0x70] sm:$0xff]  ;;  %v106_v40 = vld [vmem:[#allocation3 + $0xa8] sm:$0xff] }
  0x1a   :  { %405 = vmatprep.subr.bf16.mxu1 %v404_v22  ;;  %v380_v37 = vpack.c.bf16 %v107_v35, %v104_v34  ;;  %v103_v39 = vld [vmem:[#allocation3 + $0x90] sm:$0xff]  ;;  %v408_v41 = vpack.c.bf16 %v102_v38, %v99_v36  ;;  %v110_v43 = vld [vmem:[#allocation3 + $0xc8] sm:$0xff]  ;;  %v113_v44 = vld [vmem:[#allocation3 + $0xe0] sm:$0xff] }
  0x1b   :  { %375 = vmatpush1.bf16.msra.mxu0 %v374_v18  ;;  %v382_v42 = vpack.c.bf16 %v106_v40, %v103_v39  ;;  %v105_v45 = vld [vmem:[#allocation3 + $0xa0] sm:$0xff]  ;;  %v384_v46 = vpack.c.bf16 %v113_v44, %v110_v43  ;;  %v108_v47 = vld [vmem:[#allocation3 + $0xb8] sm:$0xff]  ;;  %v119_v53 = vld [vmem:[#allocation3 + $0x110] sm:$0xff] }
  0x1c   :  { %377 = vmatprep.subr.bf16.mxu0 %v376_v21  ;;  %v109_v48 = vld [vmem:[#allocation3 + $0xc0] sm:$0xff]  ;;  %v112_v49 = vld [vmem:[#allocation3 + $0xd8] sm:$0xff]  ;;  %v412_v50 = vpack.c.bf16 %v108_v47, %v105_v45  ;;  %v111_v54 = vld [vmem:[#allocation3 + $0xd0] sm:$0xff] }
  0x1d   :  { %407 = vmatpush3.bf16.msra.mxu1 %v404_v22  ;;  %v386_v51 = vpack.c.bf16 %v112_v49, %v109_v48  ;;  %v116_v52 = vld [vmem:[#allocation3 + $0xf8] sm:$0xff]  ;;  %v114_v56 = vld [vmem:[#allocation3 + $0xe8] sm:$0xff]  ;;  %v115_v57 = vld [vmem:[#allocation3 + $0xf0] sm:$0xff] }
  0x1e   :  { %409 = vmatprep.subr.bf16.mxu1 %v408_v41  ;;  %v388_v55 = vpack.c.bf16 %v119_v53, %v116_v52  ;;  %v118_v58 = vld [vmem:[#allocation3 + $0x108] sm:$0xff]  ;;  %v416_v59 = vpack.c.bf16 %v114_v56, %v111_v54  ;;  %v125_v62 = vld [vmem:[#allocation3 + $0x140] sm:$0xff]  ;;  %v124_v3 = vld [vmem:[#allocation3 + $0x138] sm:$0xff] }
  0x1f   :  { %379 = vmatpush1.bf16.msra.mxu0 %v378_v25  ;;  %v390_v60 = vpack.c.bf16 %v118_v58, %v115_v57  ;;  %v122_v61 = vld [vmem:[#allocation3 + $0x128] sm:$0xff]  ;;  %v117_v63 = vld [vmem:[#allocation3 + $0x100] sm:$0xff]  ;;  %v128_v7 = vld [vmem:[#allocation3 + $0x158] sm:$0xff] }
  0x20   :  { %381 = vmatprep.subr.bf16.mxu0 %v380_v37  ;;  %v121_v2 = vld [vmem:[#allocation3 + $0x120] sm:$0xff]  ;;  %v131_v8 = vld [vmem:[#allocation3 + $0x170] sm:$0xff]  ;;  %v126_v11 = vld [vmem:[#allocation3 + $0x148] sm:$0xff]  ;;  %v135_v37 = vlaneseq }
  0x21   :  { %411 = vmatpush3.bf16.msra.mxu1 %v408_v41  ;;  %v394_v6 = vpack.c.bf16 %v124_v3, %v121_v2  ;;  %v123_v9 = vld [vmem:[#allocation3 + $0x130] sm:$0xff]  ;;  %v396_v10 = vpack.c.bf16 %v131_v8, %v128_v7  ;;  %v130_v13 = vld [vmem:[#allocation3 + $0x168] sm:$0xff]  ;;  %v129_v16 = vld [vmem:[#allocation3 + $0x160] sm:$0xff] }
  0x22   :  { %413 = vmatprep.subr.bf16.mxu1 %v412_v50  ;;  %v127_v12 = vld [vmem:[#allocation3 + $0x150] sm:$0xff]  ;;  %v424_v14 = vpack.c.bf16 %v126_v11, %v123_v9  ;;  %v132_v17 = vld [vmem:[#allocation3 + $0x178] sm:$0xff]  ;;  %v136_v38 = vshrl.u32 %v135_v37, 7 }
  0x23   :  { %383 = vmatpush1.bf16.msra.mxu0 %v382_v42  ;;  %v398_v15 = vpack.c.bf16 %v130_v13, %v127_v12  ;;  %v428_v18 = vpack.c.bf16 %v132_v17, %v129_v16 }
  0x24   :  { %385 = vmatprep.subr.bf16.mxu0 %v384_v46  ;;  %v137_v39 = vsub.s32 0, %v136_v38  ;;  %v141_v40 = vsub.s32 1, %v136_v38  ;;  %v145_v42 = vsub.s32 2, %v136_v38 }
  0x25   :  { %415 = vmatpush3.bf16.msra.mxu1 %v412_v50 }
  0x26   :  { %417 = vmatprep.subr.bf16.mxu1 %v416_v59 }
  0x27   :  { %387 = vmatpush1.bf16.msra.mxu0 %v386_v51 }
  0x28   :  { %389 = vmatprep.subr.bf16.mxu0 %v388_v55 }
  0x29   :  { %419 = vmatpush3.bf16.msra.mxu1 %v416_v59 }
  0x2b   :  { %391 = vmatpush1.bf16.msra.mxu0 %v390_v60 }
  0xa0   :  { %v41_v26 = vpop.xlane.xlu0 %40 }
  0xa1   :  { %v45_v27 = vmul.f32 0.0078125, %v41_v26  ;;  %v313_v26 = vld [vmem:[%s554_s1] ss:$0 sm:$0xff] }
  0xa3   :  { %v516_v28 = vsub.f32 %v38_v0, %v45_v27  ;;  %v392_v0 = vpack.c.bf16 %v125_v62, %v122_v61 }
  0xa4   :  { %v43_v29 = vpop.xlane.xlu0 %42 }
  0xa5   :  { %v46_v30 = vmul.f32 0.0078125, %v43_v29  ;;  %v49_v31 = vmul.f32 %v516_v28, %v516_v28  ;;  %393 = vmatprep.subr.bf16.mxu0 %v392_v0  ;;  %v314_v29 = vld [vmem:[%s555_s2] ss:$0 sm:$0xff] }
  0xa6   :  { %395 = vmatpush1.bf16.msra.mxu0 %v394_v6 }
  0xa7   :  { %v520_v32 = vsub.f32 %v39_v1, %v46_v30  ;;  %51 = vadd.xlane.f32.xlu1 %v49_v31  ;;  %v120_v1 = vld [vmem:[#allocation3 + $0x118] sm:$0xff]  ;;  %397 = vmatprep.subr.bf16.mxu0 %v396_v10 }
  0xa8   :  { %v420_v5 = vpack.c.bf16 %v120_v1, %v117_v63 }
  0xa9   :  { %v50_v33 = vmul.f32 %v520_v32, %v520_v32 }
  0xaa   :  { %421 = vmatprep.subr.bf16.mxu1 %v420_v5  ;;  %399 = vmatpush1.bf16.msra.mxu0 %v398_v15 }
  0xab   :  { %53 = vadd.xlane.f32.xlu1 %v50_v33  ;;  %423 = vmatpush3.bf16.msra.mxu1 %v420_v5 }
  0xac   :  { %425 = vmatprep.subr.bf16.mxu1 %v424_v14 }
  0xaf   :  { %427 = vmatpush3.bf16.msra.mxu1 %v424_v14 }
  0xb0   :  { %429 = vmatprep.subr.bf16.mxu1 %v428_v18 }
  0xb3   :  { %431 = vmatpush3.bf16.msra.mxu1 %v428_v18 }
 0x134   :  { %v52_v19 = vpop.xlane.xlu1 %51 }
 0x135   :  { %v55_v20 = vmul.f32 0.0078125, %v52_v19 }
 0x137   :  { %v57_v21 = vadd.f32 1e-05, %v55_v20 }
 0x138   :  { %v54_v22 = vpop.xlane.xlu1 %53 }
 0x139   :  { %436 = vrsqrt.f32 %v57_v21  ;;  %v56_v23 = vmul.f32 0.0078125, %v54_v22 }
 0x13b   :  { %v58_v24 = vadd.f32 1e-05, %v56_v23 }
 0x13d   :  { %438 = vrsqrt.f32 %v58_v24 }
 0x143   :  { %v437_v25 = vpop.eup %436 }
 0x144   :  { %v61_v27 = vmul.f32 %v437_v25, %v516_v28  ;;  %v133_v28 = vld [vmem:[%s557_s4] sm:$0x7] }
 0x145   :  { %v138_v41 = vrot.slane %v133_v28, %v137_v39  ;;  %v142_v43 = vrot.slane %v133_v28, %v141_v40  ;;  %v146_v46 = vrot.slane %v133_v28, %v145_v42 }
 0x146   :  { %v70_v30 = vmul.f32 %v313_v26, %v61_v27 }
 0x147   :  { %v439_v31 = vpop.eup %438 }
 0x148   :  { %v79_v33 = vadd.f32 %v314_v29, %v70_v30  ;;  %v62_v34 = vmul.f32 %v439_v31, %v520_v32 }
 0x14a   :  { %215 = vmatmul.mubr.f32.vlgmr.msra.gmra.mrb[0].mxu0 %v79_v33  ;;  %365 = vmatprep.mubr.f32.mxu1 %v79_v33  ;;  %v71_v35 = vmul.f32 %v313_v26, %v62_v34 }
 0x14b   :  { %220 = vmatprep.mubr.f32.mxu0 %v467_v4 }
 0x14c   :  { %v80_v36 = vadd.f32 %v314_v29, %v71_v35 }
 0x14e   :  { %221 = vmatmul.mubr.f32.gmra.mrb[2].mxu0 %v80_v36  ;;  %366 = vmatmul.mubr.f32.vlgmr.msra.gmra.mrb[0].mxu1 %v80_v36 }
 0x21d   :  { %v216_v44 = vpop.f32.mrb[0].mxu0 }
 0x21e   :  { %v217_v32 = vadd.f32 %v216_v44, %v138_v41  ;;  %v218_v45 = vpop.f32.mrb[1].mxu0 }
 0x21f   :  { %v219_v47 = vadd.f32 %v218_v45, %v142_v43 }
 0x220   :  { %302 = vst [vmem:[%s558_s5] sm:$0xff] %v217_v32 }
 0x221   :  { %303 = vst [vmem:[%s558_s5 + $0x8] sm:$0xff] %v219_v47  ;;  %v222_v48 = vpop.f32.mrb[2].mxu0  ;;  %v367_v49 = vpop.f32.mrb[0].mxu1 }
 0x222   :  { %v223_v50 = vadd.f32 %v222_v48, %v138_v41  ;;  %v299_v51 = vadd.f32 %v367_v49, %v146_v46  ;;  %v224_v52 = vpop.f32.mrb[3].mxu0  ;;  %v293_v53 = vpop.f32.mrb[1].mxu1 }
 0x223   :  { %v225_v54 = vadd.f32 %v224_v52, %v142_v43  ;;  %v294_v55 = vadd.f32 %v293_v53, %v146_v46 }
 0x224   :  { %305 = vst [vmem:[%s558_s5 + $0x18] sm:$0xff] %v223_v50  ;;  %307 = vst [vmem:[%s558_s5 + $0x28] sm:$0xff] %v299_v51 }
 0x225   :  { %306 = vst [vmem:[%s558_s5 + $0x20] sm:$0xff] %v225_v54  ;;  %304 = vst [vmem:[%s558_s5 + $0x10] sm:$0xff] %v294_v55 }
 0x226   :  { %312 = vsyncpa [#allocation4], 1 }

// kernel: decoder_layer_forward.12
= control target key start
LH: loop header
LB: loop body
LE: loop exit
PB: predicated region body
PF: predicated region fallthrough
CT: control target
= control target key end

     0   :  { %s366_s0 = inlined_call_operand.vmem [shape: f32[16,128], index: 0, kind: input, shape index: {}]   ;;  %s367_s3 = inlined_call_operand.vmem [shape: f32[128,128], index: 3, kind: input, shape index: {}]   ;;  %s368_s1 = inlined_call_operand.vmem [shape: f32[1,128], index: 1, kind: input, shape index: {}]   ;;  %s369_s2 = inlined_call_operand.vmem [shape: f32[1,128], index: 2, kind: input, shape index: {}]   ;;  %s370_s4 = inlined_call_operand.vmem [shape: f32[1,128], index: 4, kind: input, shape index: {}]   ;;  %s371_s5 = inlined_call_operand.vmem [shape: f32[16,128], index: 5, kind: output, shape index: {}]  }
   0x1   :  { %v24_v0 = vld [vmem:[%s366_s0] sm:$0xff]  ;;  %v25_v1 = vld [vmem:[%s366_s0 + $0x8] sm:$0xff]  ;;  %v73_v4 = vld [vmem:[%s367_s3 + $0x10] sm:$0xff] }
   0x2   :  { %26 = vadd.xlane.f32.xlu0 %v24_v0  ;;  %v71_v2 = vld [vmem:[%s367_s3] sm:$0xff]  ;;  %v72_v3 = vld [vmem:[%s367_s3 + $0x8] sm:$0xff]  ;;  %v74_v6 = vld [vmem:[%s367_s3 + $0x18] sm:$0xff] }
   0x3   :  { %v231_v5 = vpack.c.bf16 %v72_v3, %v71_v2  ;;  %v235_v7 = vpack.c.bf16 %v74_v6, %v73_v4  ;;  %v75_v16 = vld [vmem:[%s367_s3 + $0x20] sm:$0xff]  ;;  %v76_v17 = vld [vmem:[%s367_s3 + $0x28] sm:$0xff]  ;;  %v77_v19 = vld [vmem:[%s367_s3 + $0x30] sm:$0xff] }
   0x4   :  { %v239_v18 = vpack.c.bf16 %v76_v17, %v75_v16  ;;  %v78_v20 = vld [vmem:[%s367_s3 + $0x38] sm:$0xff]  ;;  %v79_v22 = vld [vmem:[%s367_s3 + $0x40] sm:$0xff]  ;;  %v80_v23 = vld [vmem:[%s367_s3 + $0x48] sm:$0xff] }
   0x5   :  { %232 = vmatprep.subr.bf16.mxu0 %v231_v5  ;;  %v243_v21 = vpack.c.bf16 %v78_v20, %v77_v19  ;;  %v247_v24 = vpack.c.bf16 %v80_v23, %v79_v22  ;;  %v81_v25 = vld [vmem:[%s367_s3 + $0x50] sm:$0xff]  ;;  %v82_v26 = vld [vmem:[%s367_s3 + $0x58] sm:$0xff]  ;;  %v83_v27 = vld [vmem:[%s367_s3 + $0x60] sm:$0xff] }
   0x6   :  { %28 = vadd.xlane.f32.xlu0 %v25_v1  ;;  %234 = vmatpush3.bf16.msra.mxu0 %v231_v5  ;;  %v251_v28 = vpack.c.bf16 %v82_v26, %v81_v25  ;;  %v84_v29 = vld [vmem:[%s367_s3 + $0x68] sm:$0xff]  ;;  %v85_v31 = vld [vmem:[%s367_s3 + $0x70] sm:$0xff]  ;;  %v86_v32 = vld [vmem:[%s367_s3 + $0x78] sm:$0xff] }
   0x7   :  { %236 = vmatprep.subr.bf16.mxu0 %v235_v7  ;;  %v255_v30 = vpack.c.bf16 %v84_v29, %v83_v27  ;;  %v259_v33 = vpack.c.bf16 %v86_v32, %v85_v31  ;;  %v175_v41 = vld [vmem:[%s368_s1] ss:$0 sm:$0xff] }
   0x8   :  { %v176_v43 = vld [vmem:[%s369_s2] ss:$0 sm:$0xff] }
   0x9   :  { %v177_v50 = vld [vmem:[%s370_s4] ss:$0 sm:$0xff] }
   0xa   :  { %238 = vmatpush3.bf16.msra.mxu0 %v235_v7 }
   0xb   :  { %240 = vmatprep.subr.bf16.mxu0 %v239_v18 }
   0xe   :  { %242 = vmatpush3.bf16.msra.mxu0 %v239_v18 }
   0xf   :  { %244 = vmatprep.subr.bf16.mxu0 %v243_v21 }
  0x12   :  { %246 = vmatpush3.bf16.msra.mxu0 %v243_v21 }
  0x13   :  { %248 = vmatprep.subr.bf16.mxu0 %v247_v24 }
  0x16   :  { %250 = vmatpush3.bf16.msra.mxu0 %v247_v24 }
  0x17   :  { %252 = vmatprep.subr.bf16.mxu0 %v251_v28 }
  0x1a   :  { %254 = vmatpush3.bf16.msra.mxu0 %v251_v28 }
  0x1b   :  { %256 = vmatprep.subr.bf16.mxu0 %v255_v30 }
  0x1e   :  { %258 = vmatpush3.bf16.msra.mxu0 %v255_v30 }
  0x1f   :  { %260 = vmatprep.subr.bf16.mxu0 %v259_v33 }
  0x22   :  { %262 = vmatpush3.bf16.msra.mxu0 %v259_v33 }
  0x8f   :  { %v27_v8 = vpop.xlane.xlu0 %26 }
  0x90   :  { %v31_v9 = vmul.f32 0.0078125, %v27_v8 }
  0x92   :  { %v33_v10 = vsub.f32 %v24_v0, %v31_v9 }
  0x93   :  { %v29_v11 = vpop.xlane.xlu0 %28 }
  0x94   :  { %v32_v12 = vmul.f32 0.0078125, %v29_v11  ;;  %v35_v13 = vmul.f32 %v33_v10, %v33_v10 }
  0x96   :  { %v34_v14 = vsub.f32 %v25_v1, %v32_v12  ;;  %37 = vadd.xlane.f32.xlu1 %v35_v13 }
  0x98   :  { %v36_v15 = vmul.f32 %v34_v14, %v34_v14 }
  0x9a   :  { %39 = vadd.xlane.f32.xlu1 %v36_v15 }
 0x123   :  { %v38_v34 = vpop.xlane.xlu1 %37 }
 0x124   :  { %v41_v35 = vmul.f32 0.0078125, %v38_v34 }
 0x126   :  { %v43_v36 = vadd.f32 1e-05, %v41_v35 }
 0x127   :  { %v40_v37 = vpop.xlane.xlu1 %39 }
 0x128   :  { %263 = vrsqrt.f32 %v43_v36  ;;  %v42_v38 = vmul.f32 0.0078125, %v40_v37 }
 0x12a   :  { %v44_v39 = vadd.f32 1e-05, %v42_v38 }
 0x12c   :  { %265 = vrsqrt.f32 %v44_v39 }
 0x132   :  { %v264_v40 = vpop.eup %263 }
 0x133   :  { %v47_v42 = vmul.f32 %v264_v40, %v33_v10 }
 0x135   :  { %v56_v44 = vmul.f32 %v175_v41, %v47_v42 }
 0x136   :  { %v266_v45 = vpop.eup %265 }
 0x137   :  { %v48_v46 = vmul.f32 %v266_v45, %v34_v14  ;;  %v65_v47 = vadd.f32 %v176_v43, %v56_v44 }
 0x139   :  { %v57_v48 = vmul.f32 %v175_v41, %v48_v46  ;;  %228 = vmatprep.mubr.f32.mxu0 %v65_v47 }
 0x13b   :  { %v66_v49 = vadd.f32 %v176_v43, %v57_v48 }
 0x13d   :  { %229 = vmatmul.mubr.f32.vlgmr.msra.gmra.mrb[0].mxu0 %v66_v49 }
 0x210   :  { %v230_v51 = vpop.f32.mrb[0].mxu0 }
 0x211   :  { %v166_v52 = vadd.f32 %v230_v51, %v177_v50  ;;  %v160_v53 = vpop.f32.mrb[1].mxu0 }
 0x212   :  { %v161_v54 = vadd.f32 %v177_v50, %v160_v53 }
 0x213   :  { %170 = vst [vmem:[%s371_s5 + $0x8] sm:$0xff] %v166_v52 }
 0x214   :  { %169 = vst [vmem:[%s371_s5] sm:$0xff] %v161_v54 }

// kernel: decoder_layer_forward.10
= control target key start
LH: loop header
LB: loop body
LE: loop exit
PB: predicated region body
PF: predicated region fallthrough
CT: control target
= control target key end

     0   :  { %s1467_s12 = smov 0   ;;  %s1469_s13 = smov 0   ;;  %s1637_s0 = inlined_call_operand.vmem [shape: f32[2,8,384], index: 0, kind: input, shape index: {}, may-alias: {0,1,2}]   ;;  %s1638_s1 = inlined_call_operand.vmem [shape: f32[2,8,384], index: 1, kind: input, shape index: {}, may-alias: {0,1,2}]   ;;  %s1639_s2 = inlined_call_operand.vmem [shape: f32[2,8,384], index: 2, kind: input, shape index: {}, may-alias: {0,1,2}]   ;;  %s1640_s3 = inlined_call_operand.vmem [shape: f32[2,8,128], index: 3, kind: output, shape index: {}]  }
   0x1   :  { %s1471_s14 = smov 0  }
   0x2 LB: > { %s32_s15 = sadd.s32 1, %s1434_s13  ;;  %p1281_p0 = scmp.ge.s32.totalorder %s1438_s14, 1  ;;  %s1438_s14 = sphi %s1471_s14, %s13_s14   ;;  %s1434_s13 = sphi %s1469_s13, %s1642_s13   ;;  %s1430_s12 = sphi %s1467_s12, %s1641_s12  }
   0x3   : > { %p34_p1 = scmp.ge.s32.totalorder %s32_s15, 2  ;;  %p198_p2 = scmp.lt.s32.totalorder %s1438_s14, 3 }
   0x5   : > { %s1644_s15 = smov (%p34_p1, %s32_s15), 0  ;;  %p199_p3 = pnand %p1281_p0, %p198_p2 }
   0x6   : > { %p248_p4 = scmp.lt.s32.totalorder (!%p199_p3), %s1430_s12, 1  ;;  %vm299_vm0 = vcmask (!%p199_p3), 261120   ;;  %v1440_v0 = vmov (!%p199_p3), 0.0   ;;  %vm1441_vm1 = vmmov (!%p199_p3), 0   ;;  %vm290_vm2 = vcmask (!%p199_p3), 7168   ;;  %s1444_s23 = smov (!%p199_p3), 96  }
   0x7   : > { %202 = sbr.rel (%p199_p3) target bundleno = 1447 (0x5a7), region = 32  ;;  %1318 = vmatprep.subr.mxu0 (!%p199_p3), %v1440_v0  ;;  %300 = vst.msk [vmem:[#allocation4] sm:$0xff] (!%p199_p3), %vm299_vm0, %v1440_v0  ;;  %301 = vst.msk [vmem:[#allocation4 + $0x8] sm:$0xff] (!%p199_p3), %vm299_vm0, %v1440_v0  ;;  %1320 = vmatprep.mubr.msk.f32.mxu0 (!%p199_p3), %vm1441_vm1, %v1440_v0  ;;  %v1442_v4 = vmov (!%p199_p3), -inf   ;;  %v313_v5 = vlaneseq (!%p199_p3)  ;;  %vm402_vm4 = vcmask (!%p199_p3), 64512   ;;  %v1443_v12 = vmov (!%p199_p3), 0  }
   0x8   : > { %302 = vst.msk [vmem:[#allocation4 + $0x10] sm:$0xff] (!%p199_p3), %vm299_vm0, %v1440_v0  ;;  %303 = vst.msk [vmem:[#allocation4 + $0x18] sm:$0xff] (!%p199_p3), %vm299_vm0, %v1440_v0  ;;  %1323 = vmatprep.subr.mxu1 (!%p199_p3), %v1440_v0  ;;  %1325 = vmatprep.mubr.msk.f32.mxu1 (!%p199_p3), %vm1441_vm1, %v1440_v0  ;;  %s1445_s24 = smov (!%p199_p3), 64   ;;  %s1446_s25 = smov (!%p199_p3), 32   ;;  %vm1141_vm5 = vcmask (!%p199_p3), 523264   ;;  %vm1143_vm6 = vcmask (!%p199_p3), 785408  }
   0x9   : > { %291 = vst.msk [vmem:[#allocation2] sm:$0xff] (!%p199_p3), %vm290_vm2, %v1442_v4  ;;  %292 = vst.msk [vmem:[#allocation2 + $0x8] sm:$0xff] (!%p199_p3), %vm290_vm2, %v1442_v4  ;;  %v1529_v6 = vshrl.u32 (!%p199_p3), %v313_v5, 7  ;;  %v1531_v7 = vand.u32 (!%p199_p3), 127, %v313_v5  ;;  %1390 = vset.pattern.permute.xlu0 (!%p199_p3), %v1443_v12  ;;  %1391 = vset.pattern.permute.xlu1 (!%p199_p3), %v1443_v12 }
   0xa   : > { %293 = vst.msk [vmem:[#allocation2 + $0x10] sm:$0xff] (!%p199_p3), %vm290_vm2, %v1442_v4  ;;  %294 = vst.msk [vmem:[#allocation2 + $0x18] sm:$0xff] (!%p199_p3), %vm290_vm2, %v1442_v4 }
   0xb   : > { %295 = vst.msk [vmem:[#allocation3] sm:$0xff] (!%p199_p3), %vm290_vm2, %v1440_v0  ;;  %296 = vst.msk [vmem:[#allocation3 + $0x8] sm:$0xff] (!%p199_p3), %vm290_vm2, %v1440_v0  ;;  %vm321_vm3 = vcmp.gt.s32.totalorder (!%p199_p3), %v1531_v7, %v1529_v6 }
   0xc   : > { %297 = vst.msk [vmem:[#allocation3 + $0x10] sm:$0xff] (!%p199_p3), %vm290_vm2, %v1440_v0  ;;  %298 = vst.msk [vmem:[#allocation3 + $0x18] sm:$0xff] (!%p199_p3), %vm290_vm2, %v1440_v0 }
   0xe   : > { %s1646_s12 = smov (!%p248_p4, %s1430_s12), 1 }
   0xf   : > { %s1502_s16 = smul.u32 24, %s1646_s12  ;;  %s1285_s29 = sshll.u32 %s1646_s12, 3 }
  0x10   : > { %v1545_v13 = vld [vmem:[#allocation2] sm:$0xff]  ;;  %v588_v42 = vld [vmem:[#allocation2 + $0x8] sm:$0xff]  ;;  %s283_s5 = scalar_lea.vmem %s1640_s3, %s1285_s29 }
  0x11   : > { %s1217_s19 = scalar_lea.vmem %s1638_s1, %s1502_s16  ;;  %s256_s22 = scalar_lea.vmem %s1637_s0, %s1502_s16  ;;  %v780_v45 = vld [vmem:[#allocation2 + $0x10] sm:$0xff]  ;;  %v971_v49 = vld [vmem:[#allocation2 + $0x18] sm:$0xff] }
  0x12   : > { %v1286_v1 = vld [vmem:[%s1217_s19 + $0x8] sm:$0xff]  ;;  %v309_v2 = vld [vmem:[%s256_s22] sm:$0xff]  ;;  %s1223_s28 = scalar_lea.vmem %s1639_s2, %s1502_s16 }
  0x13   : > { %1319 = vmatpush3.xpose.msk.msra.mxu0 %vm299_vm0, %v1286_v1  ;;  %v310_v3 = vmul.f32 0.17677669, %v309_v2  ;;  %510 = vrot.lane.b32.xlu1 %v1286_v1, %s1444_s23  ;;  %v1287_v17 = vld [vmem:[%s1223_s28 + $0x10] sm:$0xff] }
  0x14   : > { %1333 = vmatprep.subr.mxu0 %v1440_v0  ;;  %1324 = vmatpush3.msra.mxu1 %v1287_v17 }
  0x15   : > { %1328 = vmatprep.subr.mxu1 %v1440_v0 }
  0x16   : > { %1321 = vmatmul.mubr.msk.f32.vlgmr.msra.gmra.mrb[0].mxu0 %vm299_vm0, %v310_v3 }
  0x17   : > { %1335 = vmatprep.mubr.msk.f32.mxu0 %vm1441_vm1, %v1440_v0  ;;  %508 = vrot.lane.b32.xlu1 %v310_v3, %s1444_s23 }
  0x1b   : > { %702 = vrot.lane.b32.xlu1 %v1286_v1, %s1445_s24 }
  0x1f   : > { %700 = vrot.lane.b32.xlu1 %v310_v3, %s1445_s24 }
  0x23   : > { %893 = vrot.lane.b32.xlu1 %v1286_v1, %s1446_s25 }
  0x27   : > { %891 = vrot.lane.b32.xlu1 %v310_v3, %s1446_s25 }
  0x85   : > { %v511_v18 = vpop.permute.xlu1 %510 }
  0x89   : > { %v509_v21 = vpop.permute.xlu1 %508 }
  0x8d   : > { %v703_v23 = vpop.permute.xlu1 %702 }
  0x91   : > { %v701_v24 = vpop.permute.xlu1 %700 }
  0x95   : > { %v894_v26 = vpop.permute.xlu1 %893 }
  0x99   : > { %v892_v27 = vpop.permute.xlu1 %891 }
  0xe9   : > { %v395_v8 = vpop.f32.mrb[0].mxu0 }
  0xea   : > { %v399_v9 = vsel %vm321_vm3, -1e+30, %v395_v8  ;;  %v1322_v10 = vpop.f32.mrb[1].mxu0 }
  0xeb   : > { %v403_v11 = vsel %vm402_vm4, %v399_v9, -inf }
  0xec   : > { %404 = vmax.xlane.f32.xlu0 %v403_v11 }
 0x179   : > { %v405_v14 = vpop.xlane.xlu0 %404 }
 0x17a   : > { %v1548_v15 = vmax.f32 %v1545_v13, %v405_v14 }
 0x17c   : > { %v407_v16 = vsub.f32 %v1545_v13, %v1548_v15  ;;  %506 = vst.msk [vmem:[#allocation2] sm:$0xff] %vm290_vm2, %v1548_v15  ;;  %412 = vperm.xlu0 %1390, %v1548_v15   ;;  %v590_v15 = vld [vmem:[#allocation3 + $0x8] sm:$0xff] }
 0x17e   : > { %v408_v12 = vmul.f32 1.442695, %v407_v16 }
 0x1fb   : > { %v413_v19 = vpop.permute.xlu0 %412 }
 0x1fc   : > { %v415_v20 = vsub.f32 %v399_v9, %v413_v19 }
 0x1fe   : > { %v416_v22 = vmul.f32 1.442695, %v415_v20  ;;  %v401_v20 = vld [vmem:[#allocation3] sm:$0xff] }
 0x200   : > { %1392 = vpow2.f32 %v416_v22 }
 0x20a   : > { %v1393_v25 = vpop.eup %1392 }
 0x20b   : > { %1326 = vmatmul.mubr.msk.f32.vlgmr.msra.gmra.mrb[0].mxu1 %vm402_vm4, %v1393_v25  ;;  %v419_v54 = vsel %vm402_vm4, %v1393_v25, 0.0 }
 0x20c   : > { %1329 = vmatpush3.xpose.msk.msra.mxu1 %vm299_vm0, %v511_v18  ;;  %1330 = vmatprep.mubr.msk.f32.mxu1 %vm1441_vm1, %v1440_v0 }
 0x20d   : > { %1338 = vmatprep.subr.mxu1 %v1440_v0 }
 0x20f   : > { %1331 = vmatmul.mubr.msk.f32.vlgmr.msra.gmra.mrb[2].mxu1 %vm299_vm0, %v509_v21 }
 0x210   : > { %1339 = vmatpush3.xpose.msk.msra.mxu1 %vm299_vm0, %v703_v23  ;;  %1340 = vmatprep.mubr.msk.f32.mxu1 %vm1441_vm1, %v1440_v0 }
 0x211   : > { %1348 = vmatprep.subr.mxu1 %v1440_v0 }
 0x213   : > { %1341 = vmatmul.mubr.msk.f32.vlgmr.msra.gmra.mrb[4].mxu1 %vm299_vm0, %v701_v24 }
 0x214   : > { %1349 = vmatpush3.xpose.msk.msra.mxu1 %vm299_vm0, %v894_v26  ;;  %1350 = vmatprep.mubr.msk.f32.mxu1 %vm1441_vm1, %v1440_v0  ;;  %v782_v26 = vld [vmem:[#allocation3 + $0x10] sm:$0xff] }
 0x217   : > { %1351 = vmatmul.mubr.msk.f32.vlgmr.msra.gmra.mrb[6].mxu1 %vm299_vm0, %v892_v27 }
 0x2de   : > { %v1575_v28 = vpop.f32.mrb[0].mxu1 }
 0x2df   : > { %v1327_v29 = vpop.f32.mrb[1].mxu1 }
 0x2e2   : > { %v582_v30 = vpop.f32.mrb[2].mxu1 }
 0x2e3   : > { %v586_v31 = vsel %vm321_vm3, -1e+30, %v582_v30  ;;  %v1332_v32 = vpop.f32.mrb[3].mxu1 }
 0x2e4   : > { %v591_v33 = vsel %vm402_vm4, %v586_v31, -inf }
 0x2e5   : > { %592 = vmax.xlane.f32.xlu1 %v591_v33 }
 0x2e6   : > { %v774_v34 = vpop.f32.mrb[4].mxu1 }
 0x2e7   : > { %v778_v35 = vsel %vm321_vm3, -1e+30, %v774_v34  ;;  %v1342_v36 = vpop.f32.mrb[5].mxu1 }
 0x2e8   : > { %v783_v37 = vsel %vm402_vm4, %v778_v35, -inf }
 0x2e9   : > { %784 = vmax.xlane.f32.xlu0 %v783_v37  ;;  %v423_v37 = vld [vmem:[#allocation4] sm:$0xff] }
 0x2ea   : > { %v965_v38 = vpop.f32.mrb[6].mxu1 }
 0x2eb   : > { %v969_v39 = vsel %vm321_vm3, -1e+30, %v965_v38  ;;  %v1352_v40 = vpop.f32.mrb[7].mxu1 }
 0x2ec   : > { %v974_v41 = vsel %vm402_vm4, %v969_v39, -inf }
 0x2ed   : > { %975 = vmax.xlane.f32.xlu1 %v974_v41 }
 0x372   : > { %v593_v43 = vpop.xlane.xlu1 %592 }
 0x373   : > { %v594_v44 = vmax.f32 %v588_v42, %v593_v43 }
 0x375   : > { %v595_v46 = vsub.f32 %v588_v42, %v594_v44  ;;  %698 = vst.msk [vmem:[#allocation2 + $0x8] sm:$0xff] %vm290_vm2, %v594_v44  ;;  %600 = vperm.xlu1 %1391, %v594_v44  }
 0x376   : > { %v785_v47 = vpop.xlane.xlu0 %784 }
 0x377   : > { %v786_v48 = vmax.f32 %v780_v45, %v785_v47  ;;  %v596_v9 = vmul.f32 1.442695, %v595_v46  ;;  %v612_v46 = vld [vmem:[#allocation4 + $0x8] sm:$0xff] }
 0x379   : > { %v787_v50 = vsub.f32 %v780_v45, %v786_v48  ;;  %889 = vst.msk [vmem:[#allocation2 + $0x10] sm:$0xff] %vm290_vm2, %v786_v48  ;;  %792 = vperm.xlu0 %1390, %v786_v48  }
 0x37a   : > { %v976_v51 = vpop.xlane.xlu1 %975 }
 0x37b   : > { %v977_v52 = vmax.f32 %v971_v49, %v976_v51  ;;  %v788_v14 = vmul.f32 1.442695, %v787_v50 }
 0x37d   : > { %v978_v53 = vsub.f32 %v971_v49, %v977_v52  ;;  %1080 = vst.msk [vmem:[#allocation2 + $0x18] sm:$0xff] %vm290_vm2, %v977_v52  ;;  %983 = vperm.xlu1 %1391, %v977_v52   ;;  %v804_v49 = vld [vmem:[#allocation4 + $0x10] sm:$0xff] }
 0x37f   : > { %v979_v11 = vmul.f32 1.442695, %v978_v53 }
 0x381   : > { %620 = vrot.lane.b32.xlu1 %v1287_v17, %s1444_s23 }
 0x385   : > { %811 = vrot.lane.b32.xlu1 %v1287_v17, %s1445_s24 }
 0x389   : > { %1002 = vrot.lane.b32.xlu1 %v1287_v17, %s1446_s25 }
 0x3ad   : > { %420 = vadd.xlane.f32.xlu1 %v419_v54 }
 0x3f4   : > { %v601_v55 = vpop.permute.xlu1 %600 }
 0x3f5   : > { %v603_v56 = vsub.f32 %v586_v31, %v601_v55  ;;  %v973_v31 = vld [vmem:[#allocation3 + $0x18] sm:$0xff] }
 0x3f7   : > { %v604_v57 = vmul.f32 1.442695, %v603_v56 }
 0x3f8   : > { %v793_v58 = vpop.permute.xlu0 %792 }
 0x3f9   : > { %1394 = vpow2.f32 %v604_v57  ;;  %v795_v59 = vsub.f32 %v778_v35, %v793_v58 }
 0x3fb   : > { %v796_v60 = vmul.f32 1.442695, %v795_v59 }
 0x3fc   : > { %v984_v61 = vpop.permute.xlu1 %983 }
 0x3fd   : > { %1396 = vpow2.f32 %v796_v60  ;;  %v986_v62 = vsub.f32 %v969_v39, %v984_v61 }
 0x3ff   : > { %v987_v63 = vmul.f32 1.442695, %v986_v62 }
 0x400   : > { %v621_v1 = vpop.permute.xlu1 %620 }
 0x401   : > { %1398 = vpow2.f32 %v987_v63  ;;  %1334 = vmatpush3.msra.mxu0 %v621_v1 }
 0x402   : > { %1343 = vmatprep.subr.mxu0 %v1440_v0  ;;  %1400 = vpow2.f32 %v596_v9 }
 0x403   : > { %v1395_v2 = vpop.eup %1394  ;;  %1402 = vpow2.f32 %v979_v11 }
 0x404   : > { %1336 = vmatmul.mubr.msk.f32.vlgmr.msra.gmra.mrb[2].mxu0 %vm402_vm4, %v1395_v2  ;;  %v607_v3 = vsel %vm402_vm4, %v1395_v2, 0.0  ;;  %v812_v4 = vpop.permute.xlu1 %811  ;;  %1404 = vpow2.f32 %v408_v12 }
 0x405   : > { %608 = vadd.xlane.f32.xlu0 %v607_v3  ;;  %1344 = vmatpush3.msra.mxu0 %v812_v4  ;;  %1406 = vpow2.f32 %v788_v14 }
 0x406   : > { %1345 = vmatprep.mubr.msk.f32.mxu0 %vm1441_vm1, %v1440_v0  ;;  %1353 = vmatprep.subr.mxu0 %v1440_v0 }
 0x407   : > { %v1397_v5 = vpop.eup %1396 }
 0x408   : > { %1346 = vmatmul.mubr.msk.f32.vlgmr.msra.gmra.mrb[4].mxu0 %vm402_vm4, %v1397_v5  ;;  %v799_v6 = vsel %vm402_vm4, %v1397_v5, 0.0  ;;  %v1003_v7 = vpop.permute.xlu1 %1002 }
 0x409   : > { %800 = vadd.xlane.f32.xlu1 %v799_v6  ;;  %1354 = vmatpush3.msra.mxu0 %v1003_v7 }
 0x40a   : > { %1355 = vmatprep.mubr.msk.f32.mxu0 %vm1441_vm1, %v1440_v0 }
 0x40b   : > { %v1399_v8 = vpop.eup %1398 }
 0x40c   : > { %1356 = vmatmul.mubr.msk.f32.vlgmr.msra.gmra.mrb[6].mxu0 %vm402_vm4, %v1399_v8  ;;  %v990_v10 = vsel %vm402_vm4, %v1399_v8, 0.0  ;;  %v1401_v17 = vpop.eup %1400 }
 0x40d   : > { %991 = vadd.xlane.f32.xlu0 %v990_v10  ;;  %v1403_v0 = vpop.eup %1402  ;;  %v606_v16 = vmul.f32 %v1401_v17, %v590_v15 }
 0x40e   : > { %v1405_v18 = vpop.eup %1404  ;;  %v989_v33 = vmul.f32 %v1403_v0, %v973_v31 }
 0x40f   : > { %v1407_v19 = vpop.eup %1406  ;;  %v418_v21 = vmul.f32 %v1405_v18, %v401_v20 }
 0x410   : > { %v798_v29 = vmul.f32 %v1407_v19, %v782_v26 }
 0x41a   : > { %615 = vperm.xlu1 %1391, %v1401_v17  }
 0x41e   : > { %998 = vperm.xlu1 %1391, %v1403_v0  }
 0x423   : > { %426 = vperm.xlu0 %1390, %v1405_v18  }
 0x427   : > { %807 = vperm.xlu0 %1390, %v1407_v19  }
 0x43a   : > { %v421_v22 = vpop.xlane.xlu1 %420 }
 0x43b   : > { %v422_v23 = vadd.f32 %v421_v22, %v418_v21 }
 0x43d   : > { %507 = vst.msk [vmem:[#allocation3] sm:$0xff] %vm290_vm2, %v422_v23 }
 0x444   : > { %v1086_v24 = vld [vmem:[#allocation3] sm:$0xff] }
 0x445   : > { %1408 = vrcp.f32 %v1086_v24 }
 0x44f   : > { %v1409_v13 = vpop.eup %1408 }
 0x450   : > { %1090 = vperm.xlu1 %1391, %v1409_v13  }
 0x492   : > { %v609_v25 = vpop.xlane.xlu0 %608 }
 0x493   : > { %v610_v27 = vadd.f32 %v609_v25, %v606_v16 }
 0x495   : > { %699 = vst.msk [vmem:[#allocation3 + $0x8] sm:$0xff] %vm290_vm2, %v610_v27 }
 0x496   : > { %v801_v30 = vpop.xlane.xlu1 %800 }
 0x497   : > { %v802_v32 = vadd.f32 %v801_v30, %v798_v29 }
 0x499   : > { %890 = vst.msk [vmem:[#allocation3 + $0x10] sm:$0xff] %vm290_vm2, %v802_v32 }
 0x49a   : > { %v992_v34 = vpop.xlane.xlu0 %991  ;;  %v616_v47 = vpop.permute.xlu1 %615 }
 0x49b   : > { %v993_v35 = vadd.f32 %v992_v34, %v989_v33  ;;  %v618_v48 = vmul.f32 %v616_v47, %v612_v46 }
 0x49c   : > { %v1097_v36 = vld [vmem:[#allocation3 + $0x8] sm:$0xff] }
 0x49d   : > { %1081 = vst.msk [vmem:[#allocation3 + $0x18] sm:$0xff] %vm290_vm2, %v993_v35  ;;  %1410 = vrcp.f32 %v1097_v36 }
 0x49e   : > { %v999_v55 = vpop.permute.xlu1 %998 }
 0x4a0   : > { %v1108_v38 = vld [vmem:[#allocation3 + $0x10] sm:$0xff] }
 0x4a1   : > { %1412 = vrcp.f32 %v1108_v38 }
 0x4a2   : > { %v427_v39 = vpop.permute.xlu0 %426 }
 0x4a3   : > { %v429_v40 = vmul.f32 %v427_v39, %v423_v37 }
 0x4a4   : > { %v1119_v41 = vld [vmem:[#allocation3 + $0x18] sm:$0xff] }
 0x4a5   : > { %v503_v42 = vadd.f32 %v1575_v28, %v429_v40  ;;  %1414 = vrcp.f32 %v1119_v41  ;;  %v995_v28 = vld [vmem:[#allocation4 + $0x18] sm:$0xff] }
 0x4a6   : > { %v808_v50 = vpop.permute.xlu0 %807  ;;  %v1001_v59 = vmul.f32 %v999_v55, %v995_v28 }
 0x4a7   : > { %v1411_v43 = vpop.eup %1410  ;;  %504 = vst.msk [vmem:[#allocation4] sm:$0xff] %vm299_vm0, %v503_v42  ;;  %v810_v54 = vmul.f32 %v808_v50, %v804_v49 }
 0x4a8   : > { %1101 = vperm.xlu0 %1390, %v1411_v43  }
 0x4ab   : > { %v1413_v44 = vpop.eup %1412 }
 0x4ac   : > { %1112 = vperm.xlu1 %1391, %v1413_v44  }
 0x4ae   : > { %v1085_v10 = vld [vmem:[#allocation4] sm:$0xff] }
 0x4af   : > { %v1415_v45 = vpop.eup %1414 }
 0x4b0   : > { %1123 = vperm.xlu0 %1390, %v1415_v45  }
 0x4cf   : > { %v1091_v63 = vpop.permute.xlu1 %1090 }
 0x4d0   : > { %v1093_v12 = vmul.f32 %v1091_v63, %v1085_v10 }
 0x4d7   : > { %v692_v51 = vpop.f32.mrb[2].mxu0 }
 0x4d8   : > { %v696_v52 = vadd.f32 %v692_v51, %v618_v48  ;;  %v1337_v53 = vpop.f32.mrb[3].mxu0 }
 0x4da   : > { %697 = vst.msk [vmem:[#allocation4 + $0x8] sm:$0xff] %vm299_vm0, %v696_v52 }
 0x4db   : > { %v883_v56 = vpop.f32.mrb[4].mxu0 }
 0x4dc   : > { %v887_v57 = vadd.f32 %v883_v56, %v810_v54  ;;  %v1347_v58 = vpop.f32.mrb[5].mxu0 }
 0x4de   : > { %888 = vst.msk [vmem:[#allocation4 + $0x10] sm:$0xff] %vm299_vm0, %v887_v57 }
 0x4df   : > { %v1074_v60 = vpop.f32.mrb[6].mxu0 }
 0x4e0   : > { %v1078_v61 = vadd.f32 %v1074_v60, %v1001_v59  ;;  %v1357_v62 = vpop.f32.mrb[7].mxu0 }
 0x4e1   : > { %v1095_v2 = vld [vmem:[#allocation4 + $0x8] sm:$0xff] }
 0x4e2   : > { %1079 = vst.msk [vmem:[#allocation4 + $0x18] sm:$0xff] %vm299_vm0, %v1078_v61 }
 0x4e5   : > { %v1106_v5 = vld [vmem:[#allocation4 + $0x10] sm:$0xff] }
 0x4e9   : > { %v1117_v8 = vld [vmem:[#allocation4 + $0x18] sm:$0xff] }
 0x527   : > { %v1102_v1 = vpop.permute.xlu0 %1101 }
 0x528   : > { %v1104_v3 = vmul.f32 %v1102_v1, %v1095_v2 }
 0x52a   : > { %1128 = vrot.lane.b32.xlu1 %v1104_v3, %s1446_s25 }
 0x52b   : > { %v1113_v4 = vpop.permute.xlu1 %1112 }
 0x52c   : > { %v1115_v6 = vmul.f32 %v1113_v4, %v1106_v5 }
 0x52e   : > { %1132 = vrot.lane.b32.xlu0 %v1115_v6, %s1445_s24 }
 0x52f   : > { %v1124_v7 = vpop.permute.xlu0 %1123 }
 0x530   : > { %v1126_v9 = vmul.f32 %v1124_v7, %v1117_v8 }
 0x532   : > { %1136 = vrot.lane.b32.xlu1 %v1126_v9, %s1444_s23 }
 0x59c   : > { %v1129_v11 = vpop.permute.xlu1 %1128 }
 0x59d   : > { %v1140_v17 = vsel %vm299_vm0, %v1093_v12, %v1129_v11 }
 0x5a0   : > { %v1133_v14 = vpop.permute.xlu0 %1132 }
 0x5a1   : > { %v1142_v0 = vsel %vm1141_vm5, %v1140_v17, %v1133_v14 }
 0x5a4   : > { %v1137_v18 = vpop.permute.xlu1 %1136 }
 0x5a5   : > { %v1144_v19 = vsel %vm1143_vm6, %v1142_v0, %v1137_v18 }
 0x5a6   : > { %1145 = vst [vmem:[%s283_s5] sm:$0xff] %v1144_v19 }
 0x5a7 PF: > { %s13_s14 = sadd.s32 1, %s1438_s14   ;;  %s1641_s12 = smov %s1434_s13 }
 0x5a8   : > { %p10_p5 = scmp.ge.s32.totalorder %s13_s14, 4   ;;  %s1642_s13 = smov %s1644_s15 }
 0x5aa   :  { %12 = sbr.rel (!%p10_p5) target bundleno = 2 (0x2), region = 95 }

// kernel: decoder_layer_forward.13
= control target key start
LH: loop header
LB: loop body
LE: loop exit
PB: predicated region body
PF: predicated region fallthrough
CT: control target
= control target key end

     0   :  { %v267_v3 = vmov 0.0   ;;  %v188_v53 = vlaneseq  ;;  %s427_s1 = inlined_call_operand.vmem [shape: f32[128,256], index: 1, kind: input, shape index: {}]   ;;  %s428_s0 = inlined_call_operand.vmem [shape: f32[32,128], index: 0, kind: input, shape index: {}]   ;;  %s429_s2 = inlined_call_operand.vmem [shape: f32[1,256], index: 2, kind: input, shape index: {}]   ;;  %s430_s3 = inlined_call_operand.vmem [shape: f32[32,256], index: 3, kind: output, shape index: {}]  }
   0x1   :  { %v39_v0 = vld [vmem:[%s427_s1 + $0x8] sm:$0xff]  ;;  %v41_v1 = vld [vmem:[%s427_s1 + $0x18] sm:$0xff]  ;;  %v38_v2 = vld [vmem:[%s427_s1] sm:$0xff]  ;;  %134 = vmatprep.mubr.f32.mxu0 %v267_v3  ;;  %146 = vmatprep.mubr.f32.mxu1 %v267_v3 }
   0x2   :  { %v218_v4 = vpack.c.bf16 %v41_v1, %v39_v0  ;;  %v40_v5 = vld [vmem:[%s427_s1 + $0x10] sm:$0xff]  ;;  %v43_v6 = vld [vmem:[%s427_s1 + $0x28] sm:$0xff]  ;;  %v45_v7 = vld [vmem:[%s427_s1 + $0x38] sm:$0xff]  ;;  %v189_v54 = vshrl.u32 %v188_v53, 7 }
   0x3   :  { %v220_v8 = vpack.c.bf16 %v40_v5, %v38_v2  ;;  %v222_v9 = vpack.c.bf16 %v45_v7, %v43_v6  ;;  %v42_v10 = vld [vmem:[%s427_s1 + $0x20] sm:$0xff]  ;;  %v44_v11 = vld [vmem:[%s427_s1 + $0x30] sm:$0xff]  ;;  %v47_v12 = vld [vmem:[%s427_s1 + $0x48] sm:$0xff] }
   0x4   :  { %219 = vmatprep.subr.bf16.mxu0 %v218_v4  ;;  %250 = vmatprep.subr.bf16.mxu1 %v218_v4  ;;  %v49_v13 = vld [vmem:[%s427_s1 + $0x58] sm:$0xff]  ;;  %v224_v14 = vpack.c.bf16 %v44_v11, %v42_v10  ;;  %v46_v16 = vld [vmem:[%s427_s1 + $0x40] sm:$0xff]  ;;  %v48_v17 = vld [vmem:[%s427_s1 + $0x50] sm:$0xff]  ;;  %v190_v55 = vsub.s32 0, %v189_v54  ;;  %v194_v57 = vsub.s32 1, %v189_v54 }
   0x5   :  { %221 = vmatpush1.bf16.msra.mxu0 %v220_v8  ;;  %258 = vmatpush1.bf16.msra.mxu1 %v220_v8  ;;  %v226_v15 = vpack.c.bf16 %v49_v13, %v47_v12  ;;  %v51_v18 = vld [vmem:[%s427_s1 + $0x68] sm:$0xff]  ;;  %v53_v19 = vld [vmem:[%s427_s1 + $0x78] sm:$0xff]  ;;  %v228_v20 = vpack.c.bf16 %v48_v17, %v46_v16  ;;  %v50_v22 = vld [vmem:[%s427_s1 + $0x60] sm:$0xff] }
   0x6   :  { %223 = vmatprep.subr.bf16.mxu0 %v222_v9  ;;  %251 = vmatprep.subr.bf16.mxu1 %v222_v9  ;;  %v230_v21 = vpack.c.bf16 %v53_v19, %v51_v18  ;;  %v52_v23 = vld [vmem:[%s427_s1 + $0x70] sm:$0xff]  ;;  %v55_v24 = vld [vmem:[%s427_s1 + $0x88] sm:$0xff]  ;;  %v57_v25 = vld [vmem:[%s427_s1 + $0x98] sm:$0xff] }
   0x7   :  { %v232_v26 = vpack.c.bf16 %v52_v23, %v50_v22  ;;  %v234_v27 = vpack.c.bf16 %v57_v25, %v55_v24  ;;  %v54_v28 = vld [vmem:[%s427_s1 + $0x80] sm:$0xff]  ;;  %v56_v29 = vld [vmem:[%s427_s1 + $0x90] sm:$0xff]  ;;  %v59_v30 = vld [vmem:[%s427_s1 + $0xa8] sm:$0xff] }
   0x8   :  { %v61_v31 = vld [vmem:[%s427_s1 + $0xb8] sm:$0xff]  ;;  %v236_v32 = vpack.c.bf16 %v56_v29, %v54_v28  ;;  %v58_v34 = vld [vmem:[%s427_s1 + $0xa0] sm:$0xff]  ;;  %v60_v35 = vld [vmem:[%s427_s1 + $0xb0] sm:$0xff] }
   0x9   :  { %225 = vmatpush1.bf16.msra.mxu0 %v224_v14  ;;  %259 = vmatpush1.bf16.msra.mxu1 %v224_v14  ;;  %v238_v33 = vpack.c.bf16 %v61_v31, %v59_v30  ;;  %v63_v36 = vld [vmem:[%s427_s1 + $0xc8] sm:$0xff]  ;;  %v65_v37 = vld [vmem:[%s427_s1 + $0xd8] sm:$0xff]  ;;  %v240_v38 = vpack.c.bf16 %v60_v35, %v58_v34  ;;  %v62_v40 = vld [vmem:[%s427_s1 + $0xc0] sm:$0xff] }
   0xa   :  { %227 = vmatprep.subr.bf16.mxu0 %v226_v15  ;;  %252 = vmatprep.subr.bf16.mxu1 %v226_v15  ;;  %v242_v39 = vpack.c.bf16 %v65_v37, %v63_v36  ;;  %v64_v41 = vld [vmem:[%s427_s1 + $0xd0] sm:$0xff]  ;;  %v67_v42 = vld [vmem:[%s427_s1 + $0xe8] sm:$0xff]  ;;  %v69_v43 = vld [vmem:[%s427_s1 + $0xf8] sm:$0xff] }
   0xb   :  { %v244_v44 = vpack.c.bf16 %v64_v41, %v62_v40  ;;  %v246_v45 = vpack.c.bf16 %v69_v43, %v67_v42  ;;  %v66_v46 = vld [vmem:[%s427_s1 + $0xe0] sm:$0xff]  ;;  %v68_v47 = vld [vmem:[%s427_s1 + $0xf0] sm:$0xff]  ;;  %v35_v51 = vld [vmem:[%s428_s0 + $0x8] sm:$0xff] }
   0xc   :  { %v248_v48 = vpack.c.bf16 %v68_v47, %v66_v46  ;;  %v34_v49 = vld [vmem:[%s428_s0] sm:$0xff]  ;;  %v36_v50 = vld [vmem:[%s428_s0 + $0x10] sm:$0xff]  ;;  %v37_v52 = vld [vmem:[%s428_s0 + $0x18] sm:$0xff] }
   0xd   :  { %229 = vmatpush1.bf16.msra.mxu0 %v228_v20  ;;  %260 = vmatpush1.bf16.msra.mxu1 %v228_v20  ;;  %v186_v56 = vld [vmem:[%s429_s2] sm:$0x3] }
   0xe   :  { %231 = vmatprep.subr.bf16.mxu0 %v230_v21  ;;  %253 = vmatprep.subr.bf16.mxu1 %v230_v21  ;;  %v191_v58 = vrot.slane %v186_v56, %v190_v55  ;;  %v195_v59 = vrot.slane %v186_v56, %v194_v57 }
  0x11   :  { %233 = vmatpush1.bf16.msra.mxu0 %v232_v26  ;;  %261 = vmatpush1.bf16.msra.mxu1 %v232_v26 }
  0x12   :  { %235 = vmatprep.subr.bf16.mxu0 %v234_v27  ;;  %254 = vmatprep.subr.bf16.mxu1 %v234_v27 }
  0x15   :  { %237 = vmatpush1.bf16.msra.mxu0 %v236_v32  ;;  %262 = vmatpush1.bf16.msra.mxu1 %v236_v32 }
  0x16   :  { %239 = vmatprep.subr.bf16.mxu0 %v238_v33  ;;  %255 = vmatprep.subr.bf16.mxu1 %v238_v33 }
  0x19   :  { %241 = vmatpush1.bf16.msra.mxu0 %v240_v38  ;;  %263 = vmatpush1.bf16.msra.mxu1 %v240_v38 }
  0x1a   :  { %243 = vmatprep.subr.bf16.mxu0 %v242_v39  ;;  %256 = vmatprep.subr.bf16.mxu1 %v242_v39 }
  0x1d   :  { %245 = vmatpush1.bf16.msra.mxu0 %v244_v44  ;;  %264 = vmatpush1.bf16.msra.mxu1 %v244_v44 }
  0x1e   :  { %247 = vmatprep.subr.bf16.mxu0 %v246_v45  ;;  %257 = vmatprep.subr.bf16.mxu1 %v246_v45 }
  0x21   :  { %249 = vmatpush1.bf16.msra.mxu0 %v248_v48  ;;  %265 = vmatpush1.bf16.msra.mxu1 %v248_v48 }
  0x24   :  { %135 = vmatmul.mubr.f32.vlgmr.msra.gmra.mrb[0].mxu0 %v34_v49  ;;  %147 = vmatmul.mubr.f32.vlgmr.msra.gmra.mrb[0].mxu1 %v36_v50 }
  0x25   :  { %140 = vmatprep.mubr.f32.mxu0 %v267_v3  ;;  %152 = vmatprep.mubr.f32.mxu1 %v267_v3 }
  0x28   :  { %141 = vmatmul.mubr.f32.gmra.mrb[2].mxu0 %v35_v51  ;;  %153 = vmatmul.mubr.f32.gmra.mrb[2].mxu1 %v37_v52 }
  0xf7   :  { %v136_v60 = vpop.f32.mrb[0].mxu0  ;;  %v148_v61 = vpop.f32.mrb[0].mxu1 }
  0xf8   :  { %v198_v62 = vadd.f32 %v191_v58, %v136_v60  ;;  %v202_v63 = vadd.f32 %v191_v58, %v148_v61  ;;  %v138_v0 = vpop.f32.mrb[1].mxu0  ;;  %v150_v1 = vpop.f32.mrb[1].mxu1 }
  0xf9   :  { %v199_v2 = vadd.f32 %v195_v59, %v138_v0  ;;  %v203_v3 = vadd.f32 %v195_v59, %v150_v1 }
  0xfa   :  { %206 = vst [vmem:[%s430_s3] sm:$0xff] %v198_v62  ;;  %210 = vst [vmem:[%s430_s3 + $0x20] sm:$0xff] %v202_v63 }
  0xfb   :  { %207 = vst [vmem:[%s430_s3 + $0x8] sm:$0xff] %v199_v2  ;;  %211 = vst [vmem:[%s430_s3 + $0x28] sm:$0xff] %v203_v3  ;;  %v142_v4 = vpop.f32.mrb[2].mxu0  ;;  %v154_v5 = vpop.f32.mrb[2].mxu1 }
  0xfc   :  { %v200_v6 = vadd.f32 %v191_v58, %v142_v4  ;;  %v204_v7 = vadd.f32 %v191_v58, %v154_v5  ;;  %v144_v8 = vpop.f32.mrb[3].mxu0  ;;  %v156_v9 = vpop.f32.mrb[3].mxu1 }
  0xfd   :  { %v201_v10 = vadd.f32 %v195_v59, %v144_v8  ;;  %v205_v11 = vadd.f32 %v195_v59, %v156_v9 }
  0xfe   :  { %208 = vst [vmem:[%s430_s3 + $0x10] sm:$0xff] %v200_v6  ;;  %212 = vst [vmem:[%s430_s3 + $0x30] sm:$0xff] %v204_v7 }
  0xff   :  { %209 = vst [vmem:[%s430_s3 + $0x18] sm:$0xff] %v201_v10  ;;  %213 = vst [vmem:[%s430_s3 + $0x38] sm:$0xff] %v205_v11 }

// kernel: decoder_layer_forward.16
= control target key start
LH: loop header
LB: loop body
LE: loop exit
PB: predicated region body
PF: predicated region fallthrough
CT: control target
= control target key end

     0   :  { %v259_v57 = vmov 0.0   ;;  %s423_s0 = inlined_call_operand.vmem [shape: f32[16,128], index: 0, kind: input, shape index: {}]   ;;  %s424_s3 = inlined_call_operand.vmem [shape: f32[128,256], index: 3, kind: input, shape index: {}]   ;;  %s425_s1 = inlined_call_operand.vmem [shape: f32[1,128], index: 1, kind: input, shape index: {}]   ;;  %s426_s2 = inlined_call_operand.vmem [shape: f32[1,128], index: 2, kind: input, shape index: {}]   ;;  %s427_s4 = inlined_call_operand.vmem [shape: f32[1,256], index: 4, kind: input, shape index: {}]   ;;  %s428_s5 = inlined_call_operand.vmem [shape: f32[16,256], index: 5, kind: output, shape index: {}]  }
   0x1   :  { %v24_v0 = vld [vmem:[%s423_s0] sm:$0xff]  ;;  %v25_v1 = vld [vmem:[%s423_s0 + $0x8] sm:$0xff]  ;;  %v74_v3 = vld [vmem:[%s424_s3 + $0x18] sm:$0xff]  ;;  %179 = vmatprep.mubr.f32.mxu0 %v259_v57  ;;  %185 = vmatprep.mubr.f32.mxu1 %v259_v57 }
   0x2   :  { %26 = vadd.xlane.f32.xlu0 %v24_v0  ;;  %v72_v2 = vld [vmem:[%s424_s3 + $0x8] sm:$0xff]  ;;  %v71_v4 = vld [vmem:[%s424_s3] sm:$0xff]  ;;  %v73_v6 = vld [vmem:[%s424_s3 + $0x10] sm:$0xff] }
   0x3   :  { %v206_v5 = vpack.c.bf16 %v74_v3, %v72_v2  ;;  %v76_v7 = vld [vmem:[%s424_s3 + $0x28] sm:$0xff]  ;;  %v78_v8 = vld [vmem:[%s424_s3 + $0x38] sm:$0xff]  ;;  %v208_v9 = vpack.c.bf16 %v73_v6, %v71_v4  ;;  %v75_v11 = vld [vmem:[%s424_s3 + $0x20] sm:$0xff] }
   0x4   :  { %v210_v10 = vpack.c.bf16 %v78_v8, %v76_v7  ;;  %v77_v12 = vld [vmem:[%s424_s3 + $0x30] sm:$0xff]  ;;  %v80_v13 = vld [vmem:[%s424_s3 + $0x48] sm:$0xff]  ;;  %v82_v14 = vld [vmem:[%s424_s3 + $0x58] sm:$0xff] }
   0x5   :  { %207 = vmatprep.subr.bf16.mxu0 %v206_v5  ;;  %238 = vmatprep.subr.bf16.mxu1 %v206_v5  ;;  %v212_v15 = vpack.c.bf16 %v77_v12, %v75_v11  ;;  %v214_v16 = vpack.c.bf16 %v82_v14, %v80_v13  ;;  %v79_v17 = vld [vmem:[%s424_s3 + $0x40] sm:$0xff]  ;;  %v81_v18 = vld [vmem:[%s424_s3 + $0x50] sm:$0xff]  ;;  %v84_v28 = vld [vmem:[%s424_s3 + $0x68] sm:$0xff]  ;;  %v105_v11 = vlaneseq }
   0x6   :  { %28 = vadd.xlane.f32.xlu0 %v25_v1  ;;  %209 = vmatpush1.bf16.msra.mxu0 %v208_v9  ;;  %v216_v19 = vpack.c.bf16 %v81_v18, %v79_v17  ;;  %v86_v29 = vld [vmem:[%s424_s3 + $0x78] sm:$0xff]  ;;  %v83_v31 = vld [vmem:[%s424_s3 + $0x60] sm:$0xff]  ;;  %v85_v32 = vld [vmem:[%s424_s3 + $0x70] sm:$0xff] }
   0x7   :  { %246 = vmatpush1.bf16.msra.mxu1 %v208_v9  ;;  %211 = vmatprep.subr.bf16.mxu0 %v210_v10  ;;  %v218_v30 = vpack.c.bf16 %v86_v29, %v84_v28  ;;  %v220_v33 = vpack.c.bf16 %v85_v32, %v83_v31  ;;  %v88_v34 = vld [vmem:[%s424_s3 + $0x88] sm:$0xff]  ;;  %v90_v35 = vld [vmem:[%s424_s3 + $0x98] sm:$0xff]  ;;  %v87_v37 = vld [vmem:[%s424_s3 + $0x80] sm:$0xff]  ;;  %v106_v12 = vshrl.u32 %v105_v11, 7 }
   0x8   :  { %239 = vmatprep.subr.bf16.mxu1 %v210_v10  ;;  %v222_v36 = vpack.c.bf16 %v90_v35, %v88_v34  ;;  %v89_v38 = vld [vmem:[%s424_s3 + $0x90] sm:$0xff]  ;;  %v92_v40 = vld [vmem:[%s424_s3 + $0xa8] sm:$0xff]  ;;  %v94_v41 = vld [vmem:[%s424_s3 + $0xb8] sm:$0xff] }
   0x9   :  { %v224_v39 = vpack.c.bf16 %v89_v38, %v87_v37  ;;  %v226_v42 = vpack.c.bf16 %v94_v41, %v92_v40  ;;  %v91_v43 = vld [vmem:[%s424_s3 + $0xa0] sm:$0xff]  ;;  %v93_v44 = vld [vmem:[%s424_s3 + $0xb0] sm:$0xff]  ;;  %v96_v46 = vld [vmem:[%s424_s3 + $0xc8] sm:$0xff]  ;;  %v107_v13 = vsub.s32 0, %v106_v12 }
   0xa   :  { %213 = vmatpush1.bf16.msra.mxu0 %v212_v15  ;;  %v228_v45 = vpack.c.bf16 %v93_v44, %v91_v43  ;;  %v98_v47 = vld [vmem:[%s424_s3 + $0xd8] sm:$0xff]  ;;  %v95_v48 = vld [vmem:[%s424_s3 + $0xc0] sm:$0xff]  ;;  %v97_v50 = vld [vmem:[%s424_s3 + $0xd0] sm:$0xff] }
   0xb   :  { %247 = vmatpush1.bf16.msra.mxu1 %v212_v15  ;;  %215 = vmatprep.subr.bf16.mxu0 %v214_v16  ;;  %v230_v49 = vpack.c.bf16 %v98_v47, %v96_v46  ;;  %v100_v51 = vld [vmem:[%s424_s3 + $0xe8] sm:$0xff]  ;;  %v102_v52 = vld [vmem:[%s424_s3 + $0xf8] sm:$0xff]  ;;  %v232_v53 = vpack.c.bf16 %v97_v50, %v95_v48  ;;  %v99_v55 = vld [vmem:[%s424_s3 + $0xe0] sm:$0xff]  ;;  %v111_v15 = vsub.s32 1, %v106_v12 }
   0xc   :  { %240 = vmatprep.subr.bf16.mxu1 %v214_v16  ;;  %v234_v54 = vpack.c.bf16 %v102_v52, %v100_v51  ;;  %v101_v56 = vld [vmem:[%s424_s3 + $0xf0] sm:$0xff]  ;;  %v204_v2 = vld [vmem:[%s425_s1] ss:$0 sm:$0xff] }
   0xd   :  { %v236_v58 = vpack.c.bf16 %v101_v56, %v99_v55  ;;  %v205_v4 = vld [vmem:[%s426_s2] ss:$0 sm:$0xff] }
   0xe   :  { %217 = vmatpush1.bf16.msra.mxu0 %v216_v19  ;;  %v103_v14 = vld [vmem:[%s427_s4] sm:$0x3] }
   0xf   :  { %248 = vmatpush1.bf16.msra.mxu1 %v216_v19  ;;  %219 = vmatprep.subr.bf16.mxu0 %v218_v30  ;;  %v108_v16 = vrot.slane %v103_v14, %v107_v13  ;;  %v112_v17 = vrot.slane %v103_v14, %v111_v15 }
  0x10   :  { %241 = vmatprep.subr.bf16.mxu1 %v218_v30 }
  0x12   :  { %221 = vmatpush1.bf16.msra.mxu0 %v220_v33 }
  0x13   :  { %249 = vmatpush1.bf16.msra.mxu1 %v220_v33  ;;  %223 = vmatprep.subr.bf16.mxu0 %v222_v36 }
  0x14   :  { %242 = vmatprep.subr.bf16.mxu1 %v222_v36 }
  0x16   :  { %225 = vmatpush1.bf16.msra.mxu0 %v224_v39 }
  0x17   :  { %250 = vmatpush1.bf16.msra.mxu1 %v224_v39  ;;  %227 = vmatprep.subr.bf16.mxu0 %v226_v42 }
  0x18   :  { %243 = vmatprep.subr.bf16.mxu1 %v226_v42 }
  0x1a   :  { %229 = vmatpush1.bf16.msra.mxu0 %v228_v45 }
  0x1b   :  { %251 = vmatpush1.bf16.msra.mxu1 %v228_v45  ;;  %231 = vmatprep.subr.bf16.mxu0 %v230_v49 }
  0x1c   :  { %244 = vmatprep.subr.bf16.mxu1 %v230_v49 }
  0x1e   :  { %233 = vmatpush1.bf16.msra.mxu0 %v232_v53 }
  0x1f   :  { %252 = vmatpush1.bf16.msra.mxu1 %v232_v53  ;;  %235 = vmatprep.subr.bf16.mxu0 %v234_v54 }
  0x20   :  { %245 = vmatprep.subr.bf16.mxu1 %v234_v54 }
  0x22   :  { %237 = vmatpush1.bf16.msra.mxu0 %v236_v58 }
  0x23   :  { %253 = vmatpush1.bf16.msra.mxu1 %v236_v58 }
  0x8f   :  { %v27_v20 = vpop.xlane.xlu0 %26 }
  0x90   :  { %v31_v21 = vmul.f32 0.0078125, %v27_v20 }
  0x92   :  { %v332_v22 = vsub.f32 %v24_v0, %v31_v21 }
  0x93   :  { %v29_v23 = vpop.xlane.xlu0 %28 }
  0x94   :  { %v32_v24 = vmul.f32 0.0078125, %v29_v23  ;;  %v35_v25 = vmul.f32 %v332_v22, %v332_v22 }
  0x96   :  { %v336_v26 = vsub.f32 %v25_v1, %v32_v24  ;;  %37 = vadd.xlane.f32.xlu1 %v35_v25 }
  0x98   :  { %v36_v27 = vmul.f32 %v336_v26, %v336_v26 }
  0x9a   :  { %39 = vadd.xlane.f32.xlu1 %v36_v27 }
 0x123   :  { %v38_v59 = vpop.xlane.xlu1 %37 }
 0x124   :  { %v41_v60 = vmul.f32 0.0078125, %v38_v59 }
 0x126   :  { %v43_v61 = vadd.f32 1e-05, %v41_v60 }
 0x127   :  { %v40_v62 = vpop.xlane.xlu1 %39 }
 0x128   :  { %255 = vrsqrt.f32 %v43_v61  ;;  %v42_v63 = vmul.f32 0.0078125, %v40_v62 }
 0x12a   :  { %v44_v0 = vadd.f32 1e-05, %v42_v63 }
 0x12c   :  { %257 = vrsqrt.f32 %v44_v0 }
 0x132   :  { %v256_v1 = vpop.eup %255 }
 0x133   :  { %v47_v3 = vmul.f32 %v256_v1, %v332_v22 }
 0x135   :  { %v56_v5 = vmul.f32 %v204_v2, %v47_v3 }
 0x136   :  { %v258_v6 = vpop.eup %257 }
 0x137   :  { %v65_v7 = vadd.f32 %v205_v4, %v56_v5  ;;  %v48_v8 = vmul.f32 %v258_v6, %v336_v26 }
 0x139   :  { %180 = vmatmul.mubr.f32.vlgmr.msra.gmra.mrb[0].mxu0 %v65_v7  ;;  %v57_v9 = vmul.f32 %v204_v2, %v48_v8 }
 0x13b   :  { %v66_v10 = vadd.f32 %v205_v4, %v57_v9 }
 0x13d   :  { %186 = vmatmul.mubr.f32.vlgmr.msra.gmra.mrb[0].mxu1 %v66_v10 }
 0x20c   :  { %v181_v18 = vpop.f32.mrb[0].mxu0 }
 0x20d   :  { %v182_v19 = vadd.f32 %v181_v18, %v108_v16  ;;  %v183_v20 = vpop.f32.mrb[1].mxu0 }
 0x20e   :  { %v184_v21 = vadd.f32 %v183_v20, %v112_v17 }
 0x20f   :  { %v192_v22 = vmax.f32 %v182_v19, 0.0 }
 0x210   :  { %v193_v23 = vmax.f32 %v184_v21, 0.0  ;;  %v187_v24 = vpop.f32.mrb[0].mxu1 }
 0x211   :  { %196 = vst [vmem:[%s428_s5] sm:$0xff] %v192_v22  ;;  %v188_v25 = vadd.f32 %v187_v24, %v108_v16  ;;  %v189_v26 = vpop.f32.mrb[1].mxu1 }
 0x212   :  { %197 = vst [vmem:[%s428_s5 + $0x8] sm:$0xff] %v193_v23  ;;  %v190_v27 = vadd.f32 %v189_v26, %v112_v17 }
 0x213   :  { %v194_v28 = vmax.f32 %v188_v25, 0.0 }
 0x214   :  { %v195_v29 = vmax.f32 %v190_v27, 0.0 }
 0x215   :  { %198 = vst [vmem:[%s428_s5 + $0x10] sm:$0xff] %v194_v28 }
 0x216   :  { %199 = vst [vmem:[%s428_s5 + $0x18] sm:$0xff] %v195_v29 }

// kernel: decoder_layer_forward.17
= control target key start
LH: loop header
LB: loop body
LE: loop exit
PB: predicated region body
PF: predicated region fallthrough
CT: control target
= control target key end

     0   :  { %s399_s1 = inlined_call_operand.vmem [shape: f32[256,128], index: 1, kind: input, shape index: {}]   ;;  %s400_s0 = inlined_call_operand.vmem [shape: f32[16,256], index: 0, kind: input, shape index: {}]   ;;  %s401_s2 = inlined_call_operand.vmem [shape: f32[1,128], index: 2, kind: input, shape index: {}]   ;;  %s402_s3 = inlined_call_operand.vmem [shape: f32[16,128], index: 3, kind: input, shape index: {}]   ;;  %s403_s4 = inlined_call_operand.vmem [shape: f32[16,128], index: 4, kind: output, shape index: {}]  }
   0x1   :  { %v45_v0 = vld [vmem:[%s399_s1 + $0x80] sm:$0xff]  ;;  %v46_v1 = vld [vmem:[%s399_s1 + $0x88] sm:$0xff]  ;;  %v47_v5 = vld [vmem:[%s399_s1 + $0x90] sm:$0xff] }
   0x2   :  { %v29_v2 = vld [vmem:[%s399_s1] sm:$0xff]  ;;  %v203_v3 = vpack.c.bf16 %v46_v1, %v45_v0  ;;  %v30_v4 = vld [vmem:[%s399_s1 + $0x8] sm:$0xff]  ;;  %v48_v6 = vld [vmem:[%s399_s1 + $0x98] sm:$0xff] }
   0x3   :  { %v205_v7 = vpack.c.bf16 %v30_v4, %v29_v2  ;;  %v207_v8 = vpack.c.bf16 %v48_v6, %v47_v5  ;;  %v31_v9 = vld [vmem:[%s399_s1 + $0x10] sm:$0xff]  ;;  %v32_v10 = vld [vmem:[%s399_s1 + $0x18] sm:$0xff]  ;;  %v49_v11 = vld [vmem:[%s399_s1 + $0xa0] sm:$0xff] }
   0x4   :  { %204 = vmatprep.subr.bf16.mxu0 %v203_v3  ;;  %235 = vmatprep.subr.bf16.mxu1 %v203_v3  ;;  %v50_v12 = vld [vmem:[%s399_s1 + $0xa8] sm:$0xff]  ;;  %v209_v13 = vpack.c.bf16 %v32_v10, %v31_v9  ;;  %v33_v15 = vld [vmem:[%s399_s1 + $0x20] sm:$0xff]  ;;  %v51_v17 = vld [vmem:[%s399_s1 + $0xb0] sm:$0xff] }
   0x5   :  { %206 = vmatpush3.bf16.msra.mxu0 %v205_v7  ;;  %243 = vmatpush3.bf16.msra.mxu1 %v205_v7  ;;  %v211_v14 = vpack.c.bf16 %v50_v12, %v49_v11  ;;  %v34_v16 = vld [vmem:[%s399_s1 + $0x28] sm:$0xff]  ;;  %v52_v18 = vld [vmem:[%s399_s1 + $0xb8] sm:$0xff]  ;;  %v35_v21 = vld [vmem:[%s399_s1 + $0x30] sm:$0xff] }
   0x6   :  { %208 = vmatprep.subr.bf16.mxu0 %v207_v8  ;;  %236 = vmatprep.subr.bf16.mxu1 %v207_v8  ;;  %v213_v19 = vpack.c.bf16 %v34_v16, %v33_v15  ;;  %v215_v20 = vpack.c.bf16 %v52_v18, %v51_v17  ;;  %v36_v22 = vld [vmem:[%s399_s1 + $0x38] sm:$0xff]  ;;  %v53_v23 = vld [vmem:[%s399_s1 + $0xc0] sm:$0xff]  ;;  %v54_v24 = vld [vmem:[%s399_s1 + $0xc8] sm:$0xff] }
   0x7   :  { %v26_v25 = vld [vmem:[%s400_s0 + $0x8] sm:$0xff]  ;;  %v28_v26 = vld [vmem:[%s400_s0 + $0x18] sm:$0xff]  ;;  %v217_v27 = vpack.c.bf16 %v36_v22, %v35_v21  ;;  %v219_v28 = vpack.c.bf16 %v54_v24, %v53_v23  ;;  %v37_v29 = vld [vmem:[%s399_s1 + $0x40] sm:$0xff] }
   0x8   :  { %125 = vmatprep.mubr.f32.mxu0 %v26_v25  ;;  %v38_v30 = vld [vmem:[%s399_s1 + $0x48] sm:$0xff]  ;;  %v55_v31 = vld [vmem:[%s399_s1 + $0xd0] sm:$0xff]  ;;  %v56_v32 = vld [vmem:[%s399_s1 + $0xd8] sm:$0xff]  ;;  %130 = vmatprep.mubr.f32.mxu1 %v28_v26 }
   0x9   :  { %210 = vmatpush3.bf16.msra.mxu0 %v209_v13  ;;  %244 = vmatpush3.bf16.msra.mxu1 %v209_v13  ;;  %v221_v33 = vpack.c.bf16 %v38_v30, %v37_v29  ;;  %v223_v34 = vpack.c.bf16 %v56_v32, %v55_v31  ;;  %v39_v35 = vld [vmem:[%s399_s1 + $0x50] sm:$0xff]  ;;  %v40_v36 = vld [vmem:[%s399_s1 + $0x58] sm:$0xff]  ;;  %v57_v37 = vld [vmem:[%s399_s1 + $0xe0] sm:$0xff] }
   0xa   :  { %212 = vmatprep.subr.bf16.mxu0 %v211_v14  ;;  %237 = vmatprep.subr.bf16.mxu1 %v211_v14  ;;  %v58_v38 = vld [vmem:[%s399_s1 + $0xe8] sm:$0xff]  ;;  %v225_v39 = vpack.c.bf16 %v40_v36, %v39_v35  ;;  %v41_v41 = vld [vmem:[%s399_s1 + $0x60] sm:$0xff]  ;;  %v59_v43 = vld [vmem:[%s399_s1 + $0xf0] sm:$0xff] }
   0xb   :  { %v227_v40 = vpack.c.bf16 %v58_v38, %v57_v37  ;;  %v42_v42 = vld [vmem:[%s399_s1 + $0x68] sm:$0xff]  ;;  %v60_v44 = vld [vmem:[%s399_s1 + $0xf8] sm:$0xff]  ;;  %v43_v47 = vld [vmem:[%s399_s1 + $0x70] sm:$0xff] }
   0xc   :  { %v229_v45 = vpack.c.bf16 %v42_v42, %v41_v41  ;;  %v231_v46 = vpack.c.bf16 %v60_v44, %v59_v43  ;;  %v44_v48 = vld [vmem:[%s399_s1 + $0x78] sm:$0xff]  ;;  %v25_v50 = vld [vmem:[%s400_s0] sm:$0xff]  ;;  %v27_v51 = vld [vmem:[%s400_s0 + $0x10] sm:$0xff] }
   0xd   :  { %214 = vmatpush3.bf16.msra.mxu0 %v213_v19  ;;  %245 = vmatpush3.bf16.msra.mxu1 %v213_v19  ;;  %v233_v49 = vpack.c.bf16 %v44_v48, %v43_v47  ;;  %v164_v55 = vld [vmem:[%s401_s2] ss:$0 sm:$0xff]  ;;  %v155_v60 = vld [vmem:[%s402_s3 + $0x8] sm:$0xff] }
   0xe   :  { %216 = vmatprep.subr.bf16.mxu0 %v215_v20  ;;  %238 = vmatprep.subr.bf16.mxu1 %v215_v20  ;;  %v154_v59 = vld [vmem:[%s402_s3] sm:$0xff] }
  0x11   :  { %218 = vmatpush3.bf16.msra.mxu0 %v217_v27  ;;  %246 = vmatpush3.bf16.msra.mxu1 %v217_v27 }
  0x12   :  { %220 = vmatprep.subr.bf16.mxu0 %v219_v28  ;;  %239 = vmatprep.subr.bf16.mxu1 %v219_v28 }
  0x15   :  { %222 = vmatpush3.bf16.msra.mxu0 %v221_v33  ;;  %247 = vmatpush3.bf16.msra.mxu1 %v221_v33 }
  0x16   :  { %224 = vmatprep.subr.bf16.mxu0 %v223_v34  ;;  %240 = vmatprep.subr.bf16.mxu1 %v223_v34 }
  0x19   :  { %226 = vmatpush3.bf16.msra.mxu0 %v225_v39  ;;  %248 = vmatpush3.bf16.msra.mxu1 %v225_v39 }
  0x1a   :  { %228 = vmatprep.subr.bf16.mxu0 %v227_v40  ;;  %241 = vmatprep.subr.bf16.mxu1 %v227_v40 }
  0x1d   :  { %230 = vmatpush3.bf16.msra.mxu0 %v229_v45  ;;  %249 = vmatpush3.bf16.msra.mxu1 %v229_v45 }
  0x1e   :  { %232 = vmatprep.subr.bf16.mxu0 %v231_v46  ;;  %242 = vmatprep.subr.bf16.mxu1 %v231_v46 }
  0x21   :  { %234 = vmatpush3.bf16.msra.mxu0 %v233_v49  ;;  %250 = vmatpush3.bf16.msra.mxu1 %v233_v49 }
  0x24   :  { %126 = vmatmul.mubr.f32.vlgmr.msra.gmra.mrb[0].mxu0 %v25_v50  ;;  %131 = vmatmul.mubr.f32.vlgmr.msra.gmra.mrb[0].mxu1 %v27_v51 }
  0xf7   :  { %v197_v52 = vpop.f32.mrb[0].mxu0  ;;  %v200_v53 = vpop.f32.mrb[0].mxu1 }
  0xf8   :  { %v198_v54 = vpop.f32.mrb[1].mxu0  ;;  %v201_v56 = vpop.f32.mrb[1].mxu1 }
  0xf9   :  { %v199_v57 = vadd.f32 %v198_v54, %v197_v52  ;;  %v202_v58 = vadd.f32 %v201_v56, %v200_v53 }
  0xfb   :  { %v152_v61 = vadd.f32 %v199_v57, %v164_v55  ;;  %v153_v62 = vadd.f32 %v202_v58, %v164_v55 }
  0xfd   :  { %v156_v63 = vadd.f32 %v154_v59, %v152_v61  ;;  %v157_v0 = vadd.f32 %v155_v60, %v153_v62 }
  0xff   :  { %158 = vst [vmem:[%s403_s4] sm:$0xff] %v156_v63  ;;  %159 = vst [vmem:[%s403_s4 + $0x8] sm:$0xff] %v157_v0 }

// kernel: decoder_layer_forward.14
= control target key start
LH: loop header
LB: loop body
LE: loop exit
PB: predicated region body
PF: predicated region fallthrough
CT: control target
= control target key end

     0   :  { %10 = vsyncpa [#allocation8], 0  ;;  %s2163_s0 = inlined_call_operand.vmem [shape: f32[2,8,128], index: 0, kind: input, shape index: {}]   ;;  %s2164_s1 = inlined_call_operand.vmem [shape: f32[2,16,256], index: 1, kind: input, shape index: {}, may-alias: {1,2}]   ;;  %s2165_s2 = inlined_call_operand.vmem [shape: f32[2,16,256], index: 2, kind: input, shape index: {}, may-alias: {1,2}]   ;;  %s2166_s3 = inlined_call_operand.vmem [shape: f32[2,8,128], index: 3, kind: output, shape index: {0}]   ;;  %s2167_s4 = inlined_call_operand.hbm [shape: f32[2,8,16], index: 4, kind: output, shape index: {1}]  }
   0x1   :  { %12 = vsyncpa [#allocation8 + $0x1], 0  ;;  %s1833_s15 = smov 0   ;;  %s1835_s16 = smov 0  }
   0x2   :  { %s1837_s17 = smov 0   ;;  %s1839_s18 = smov 0  }
   0x3   :  { %s1841_s19 = smov 0   ;;  %s1843_s20 = smov 0  }
   0x4 LB: > { %s1444_s21 = sadd.s32 4294967295, %s1797_s20   ;;  %s1445_s22 = sadd.s32 4294967294, %s1797_s20   ;;  %s1797_s20 = sphi %s1843_s20, %s18_s20   ;;  %s1793_s19 = sphi %s1841_s19, %s2177_s19   ;;  %s1789_s18 = sphi %s1839_s18, %s2176_s18   ;;  %s1785_s17 = sphi %s1837_s17, %s2175_s17   ;;  %s1781_s16 = sphi %s1835_s16, %s2174_s16   ;;  %s1777_s15 = sphi %s1833_s15, %s2173_s15  }
   0x5   : > { %s37_s23 = sadd.s32 1, %s1793_s19  ;;  %s74_s24 = sadd.s32 1, %s1785_s17 }
   0x6   : > { %p39_p0 = scmp.ge.s32.totalorder %s37_s23, 2  ;;  %p81_p1 = scmp.ne.s32.totalorder %s1785_s17, %s1781_s16 }
   0x7   : > { %p82_p2 = scmp.eq.s32.totalorder %s1797_s20, 0  ;;  %p169_p3 = scmp.eq.s32.totalorder %s1444_s21, 1 }
   0x8   : > { %s2179_s23 = smov (%p39_p0, %s37_s23), 0  ;;  %p174_p6 = scmp.ne.s32.totalorder %s1781_s16, %s1777_s15 }
   0x9   : > { %p1872_p4 = por %p82_p2, %p81_p1  ;;  %p1876_p5 = por %p169_p3, %p81_p1 }
   0xa   : > { %s69_s27 = ssub.s32 %s1793_s19, %s2179_s23  ;;  %p175_p8 = scmp.eq.s32.totalorder %s1445_s22, 1 }
   0xb   : > { %p72_p7 = scmp.eq.s32.totalorder %s69_s27, 0  ;;  %p1447_p10 = scmp.ge.s32.totalorder %s1797_s20, 2 }
   0xc   : > { %p1887_p9 = por %p175_p8, %p174_p6 }
   0xd   : > { %s1885_s28 = scalar_select %p72_p7, %s1785_s17, %s74_s24  }
   0xe   : > { %191 = sbr.rel (%p1447_p10) target bundleno = 35 (0x23), region = 16 }
  0x15   : > { %204 = sbr.rel (!%p1872_p4) target bundleno = 28 (0x1c), region = 24  ;;  %s206_s30 = sand.u32 (%p1872_p4), 1, %s1785_s17  }
  0x16   : > { %s1482_s5 = sshll.u32 (%p1872_p4), %s1793_s19, 5  ;;  %s1448_s6 = sshll.u32 (%p1872_p4), %s206_s30, 4 }
  0x17   : > { %s214_s9 = scalar_lea.vmem (%p1872_p4), %s2164_s1, %s1482_s5  ;;  %s208_s10 = scalar_lea.vmem (%p1872_p4), [#allocation5], %s1448_s6 }
  0x18   : > { %v244_v0 = vld [vmem:[%s214_s9] sm:$0xff] (%p1872_p4)  ;;  %v246_v1 = vld [vmem:[%s214_s9 + $0x10] sm:$0xff] (%p1872_p4) }
  0x19   : > { %245 = vst [vmem:[%s208_s10] sm:$0xff] (%p1872_p4), %v244_v0  ;;  %247 = vst [vmem:[%s208_s10 + $0x8] sm:$0xff] (%p1872_p4), %v246_v1 }
  0x1c PF: > { %253 = sbr.rel (!%p1872_p4) target bundleno = 35 (0x23), region = 62  ;;  %s255_s11 = sand.u32 (%p1872_p4), 1, %s1785_s17  }
  0x1d   : > { %s1483_s12 = sshll.u32 (%p1872_p4), %s1793_s19, 5  ;;  %s1451_s13 = sshll.u32 (%p1872_p4), %s255_s11, 4 }
  0x1e   : > { %s1343_s22 = scalar_lea.vmem (%p1872_p4), %s2165_s2, %s1483_s12  ;;  %s257_s24 = scalar_lea.vmem (%p1872_p4), [#allocation6], %s1451_s13 }
  0x1f   : > { %v1454_v2 = vld [vmem:[%s1343_s22 + $0x8] sm:$0xff] (%p1872_p4)  ;;  %v1455_v3 = vld [vmem:[%s1343_s22 + $0x18] sm:$0xff] (%p1872_p4) }
  0x20   : > { %295 = vst [vmem:[%s257_s24] sm:$0xff] (%p1872_p4), %v1454_v2  ;;  %297 = vst [vmem:[%s257_s24 + $0x8] sm:$0xff] (%p1872_p4), %v1455_v3 }
  0x23 PF: > { %p1456_p11 = scmp.ge.s32.totalorder %s1797_s20, 1  ;;  %p302_p12 = scmp.lt.s32.totalorder %s1797_s20, 3 }
  0x25   : > { %p303_p13 = pnand %p1456_p11, %p302_p12 }
  0x26   : > { %s1911_s25 = sand.u32 (!%p303_p13), 1, %s1781_s16   ;;  %vm388_vm0 = vcmask (!%p303_p13), 261120   ;;  %p359_p0 = scmp.lt.s32.totalorder (!%p303_p13), %s1789_s18, 1  ;;  %v1799_v4 = vmov (!%p303_p13), 0.0|0.0   ;;  %vm1800_vm1 = vmmov (!%p303_p13), 0   ;;  %v1801_v5 = vmov (!%p303_p13), 0.0  }
  0x27   : > { %306 = sbr.rel (%p303_p13) target bundleno = 2498 (0x9c2), region = 100  ;;  %1564 = vmatprep.subr.bf16.mxu0 (!%p303_p13), %v1799_v4  ;;  %s1457_s27 = sshll.u32 (!%p303_p13), %s1911_s25, 4  ;;  %1512 = vmatprep.mubr.msk.f32.mxu0 (!%p303_p13), %vm1800_vm1, %v1801_v5  ;;  %389 = vst.msk [vmem:[#allocation4] sm:$0xff] (!%p303_p13), %vm388_vm0, %v1801_v5  ;;  %390 = vst.msk [vmem:[#allocation4 + $0x8] sm:$0xff] (!%p303_p13), %vm388_vm0, %v1801_v5  ;;  %vm379_vm3 = vcmask (!%p303_p13), 7168   ;;  %v1802_v12 = vmov (!%p303_p13), -inf  }
  0x28   : > { %391 = vst.msk [vmem:[#allocation4 + $0x10] sm:$0xff] (!%p303_p13), %vm388_vm0, %v1801_v5  ;;  %392 = vst.msk [vmem:[#allocation4 + $0x18] sm:$0xff] (!%p303_p13), %vm388_vm0, %v1801_v5  ;;  %1568 = vmatprep.subr.bf16.mxu1 (!%p303_p13), %v1799_v4  ;;  %1519 = vmatprep.mubr.msk.f32.mxu1 (!%p303_p13), %vm1800_vm1, %v1801_v5  ;;  %s311_s30 = scalar_lea.vmem (!%p303_p13), [#allocation5], %s1457_s27  ;;  %vm481_vm4 = vcmask (!%p303_p13), 130048   ;;  %v1803_v16 = vmov (!%p303_p13), 0   ;;  %s1804_s10 = smov (!%p303_p13), 96  }
  0x29   : > { %v395_v6 = vld [vmem:[%s311_s30] sm:$0xff] (!%p303_p13)  ;;  %v396_v7 = vld [vmem:[%s311_s30 + $0x8] sm:$0xff] (!%p303_p13)  ;;  %vm1933_vm2 = vmpackc.low (!%p303_p13), %vm388_vm0, %vm388_vm0  ;;  %380 = vst.msk [vmem:[#allocation2] sm:$0xff] (!%p303_p13), %vm379_vm3, %v1802_v12  ;;  %1655 = vset.pattern.permute.xlu0 (!%p303_p13), %v1803_v16  ;;  %1661 = vset.pattern.permute.xlu1 (!%p303_p13), %v1803_v16  ;;  %s318_s11 = scalar_lea.vmem (!%p303_p13), [#allocation6], %s1457_s27  ;;  %s1805_s12 = smov (!%p303_p13), 64  }
  0x2a   : > { %v1565_v9 = vpack.c.bf16 (!%p303_p13), %v396_v7, %v395_v6  ;;  %381 = vst.msk [vmem:[#allocation2 + $0x8] sm:$0xff] (!%p303_p13), %vm379_vm3, %v1802_v12  ;;  %382 = vst.msk [vmem:[#allocation2 + $0x10] sm:$0xff] (!%p303_p13), %vm379_vm3, %v1802_v12  ;;  %v1970_v17 = vpack.i.bf16 (!%p303_p13), %v396_v7, %v395_v6  ;;  %v397_v22 = vld [vmem:[%s318_s11] sm:$0xff] (!%p303_p13)  ;;  %v398_v23 = vld [vmem:[%s318_s11 + $0x8] sm:$0xff] (!%p303_p13)  ;;  %s1806_s13 = smov (!%p303_p13), 32   ;;  %s1459_s14 = sshll.u32 (!%p303_p13), %s1911_s25, 3 }
  0x2b   : > { %383 = vst.msk [vmem:[#allocation2 + $0x18] sm:$0xff] (!%p303_p13), %vm379_vm3, %v1802_v12  ;;  %384 = vst.msk [vmem:[#allocation3] sm:$0xff] (!%p303_p13), %vm379_vm3, %v1801_v5  ;;  %v1569_v24 = vpack.c.bf16 (!%p303_p13), %v398_v23, %v397_v22  ;;  %v2004_v39 = vpack.i.bf16 (!%p303_p13), %v398_v23, %v397_v22  ;;  %s1479_s21 = sshll.u32 (!%p303_p13), %s1789_s18, 7  ;;  %s358_s22 = scalar_lea.vmem (!%p303_p13), [#allocation7], %s1459_s14 }
  0x2c   : > { %1567 = vmatpush3.bf16.xpose.msk.msra.mxu0 (!%p303_p13), %vm1933_vm2, %v1565_v9  ;;  %385 = vst.msk [vmem:[#allocation3 + $0x8] sm:$0xff] (!%p303_p13), %vm379_vm3, %v1801_v5  ;;  %386 = vst.msk [vmem:[#allocation3 + $0x10] sm:$0xff] (!%p303_p13), %vm379_vm3, %v1801_v5  ;;  %1657 = vrot.lane.b32.xlu1 (!%p303_p13), %v1970_v17, %s1804_s10  ;;  %s1296_s24 = sshll.u32 (!%p303_p13), %s358_s22, 4  ;;  %s2107_s7 = scalar_lea.hbm (!%p303_p13), %s2167_s4, %s1479_s21  ;;  %s2109_s24 = int_to_ptr.vmem [resolvable:$true] %s1296_s24 }
  0x2d   : > { %1575 = vmatprep.subr.bf16.mxu0 (!%p303_p13), %v1799_v4  ;;  %387 = vst.msk [vmem:[#allocation3 + $0x18] sm:$0xff] (!%p303_p13), %vm379_vm3, %v1801_v5  ;;  %1570 = vmatpush3.bf16.msra.mxu1 (!%p303_p13), %v1569_v24  ;;  %s1279_s8 = scalar_lea.sflag (!%p303_p13), [#allocation8], %s1911_s25 }
  0x2e   : > { %s1940_s5 = scalar_select %p359_p0, %s1789_s18, 1  ;;  %1571 = vmatprep.subr.bf16.mxu1 %v1799_v4 }
  0x2f   : > { %s1807_s18 = smov [#allocation7]  }
  0x30   : > { %s1460_s6 = sshll.u32 %s1940_s5, 3  ;;  %v1976_v18 = vld [vmem:[#allocation2] sm:$0xff] }
  0x31   : > { %s365_s9 = scalar_lea.vmem %s2163_s0, %s1460_s6  ;;  %v2012_v40 = vld [vmem:[#allocation2 + $0x8] sm:$0xff]  ;;  %v885_v62 = vld [vmem:[#allocation2 + $0x10] sm:$0xff] }
  0x32   : > { %v393_v10 = vld [vmem:[%s365_s9] sm:$0xff]  ;;  %v1090_v8 = vld [vmem:[#allocation2 + $0x18] sm:$0xff]  ;;  %s1719_s9 = scalar_lea.vmem %s2109_s24, 128 }
  0x33   : > { %v1951_v11 = vmul.f32 0.17677669, %v393_v10  ;;  %p1720_p1 = scmp.ne.s32.totalorder %s2109_s24, %s1719_s9 }
  0x35   : > { %1513 = vmatmul.mubr.msk.f32.vlgmr.msra.gmra.mrb[0].mxu0 %vm388_vm0, %v1951_v11  ;;  %595 = vrot.lane.b32.xlu1 %v1951_v11, %s1804_s10  ;;  %p1721_p2 = pnand %p1720_p1, %p1876_p5 }
  0x36   : > { %1533 = vmatprep.mubr.msk.f32.mxu0 %vm1800_vm1, %v1801_v5 }
  0x37   : > { %p1722_p3 = pneg %p1721_p2 }
  0x9e   : > { %v1658_v28 = vpop.permute.xlu1 %1657 }
  0x9f   : > { %v1660_v29 = vunpack.i.h.bf16 %v1658_v28  ;;  %v1659_v30 = vunpack.i.l.bf16 %v1658_v28  ;;  %v680_v28 = vld [vmem:[#allocation3 + $0x8] sm:$0xff] }
  0xa1   : > { %v1572_v31 = vpack.c.bf16 %v1660_v29, %v1659_v30 }
  0xa7   : > { %v596_v33 = vpop.permute.xlu1 %595 }
 0x108   : > { %v475_v13 = vpop.f32.mrb[0].mxu0 }
 0x109   : > { %v1514_v14 = vpop.f32.mrb[1].mxu0  ;;  %v482_v15 = vsel %vm481_vm4, %v475_v13, -inf }
 0x10a   : > { %483 = vmax.xlane.f32.xlu0 %v482_v15 }
 0x197   : > { %v484_v19 = vpop.xlane.xlu0 %483 }
 0x198   : > { %v1979_v20 = vmax.f32 %v1976_v18, %v484_v19 }
 0x19a   : > { %v486_v21 = vsub.f32 %v1976_v18, %v1979_v20  ;;  %585 = vst.msk [vmem:[#allocation2] sm:$0xff] %vm379_vm3, %v1979_v20  ;;  %491 = vperm.xlu0 %1655, %v1979_v20   ;;  %v1092_v20 = vld [vmem:[#allocation3 + $0x18] sm:$0xff] }
 0x19e   : > { %1663 = vrot.lane.b32.xlu0 %v2004_v39, %s1804_s10 }
 0x1a2   : > { %1668 = vrot.lane.b32.xlu0 %v1970_v17, %s1805_s12 }
 0x1a6   : > { %802 = vrot.lane.b32.xlu0 %v1951_v11, %s1805_s12 }
 0x219   : > { %v492_v25 = vpop.permute.xlu0 %491 }
 0x21a   : > { %v494_v26 = vsub.f32 %v475_v13, %v492_v25 }
 0x21c   : > { %v495_v27 = vmul.f32 1.442695, %v494_v26 }
 0x21d   : > { %v1664_v44 = vpop.permute.xlu0 %1663 }
 0x21e   : > { %1687 = vpow2.f32 %v495_v27  ;;  %v1666_v45 = vunpack.i.h.bf16 %v1664_v44  ;;  %v1665_v46 = vunpack.i.l.bf16 %v1664_v44 }
 0x220   : > { %v1576_v47 = vpack.c.bf16 %v1666_v45, %v1665_v46 }
 0x221   : > { %v1669_v51 = vpop.permute.xlu0 %1668 }
 0x222   : > { %1577 = vmatpush3.bf16.msra.mxu0 %v1576_v47  ;;  %v1671_v52 = vunpack.i.h.bf16 %v1669_v51  ;;  %v1670_v53 = vunpack.i.l.bf16 %v1669_v51  ;;  %v887_v51 = vld [vmem:[#allocation3 + $0x10] sm:$0xff] }
 0x223   : > { %1578 = vmatprep.subr.bf16.mxu0 %v1799_v4 }
 0x224   : > { %v1579_v54 = vpack.c.bf16 %v1671_v52, %v1670_v53 }
 0x225   : > { %v803_v56 = vpop.permute.xlu0 %802 }
 0x228   : > { %v1989_v32 = vpop.eup %1687 }
 0x229   : > { %1520 = vmatmul.mubr.msk.f32.vlgmr.msra.gmra.mrb[0].mxu1 %vm481_vm4, %v1989_v32 }
 0x22a   : > { %1574 = vmatpush3.bf16.xpose.msk.msra.mxu1 %vm1933_vm2, %v1572_v31  ;;  %1526 = vmatprep.mubr.msk.f32.mxu1 %vm1800_vm1, %v1801_v5 }
 0x22b   : > { %1582 = vmatprep.subr.bf16.mxu1 %v1799_v4 }
 0x231   : > { %1527 = vmatmul.mubr.msk.f32.vlgmr.msra.gmra.mrb[2].mxu1 %vm388_vm0, %v596_v33 }
 0x232   : > { %1547 = vmatprep.mubr.msk.f32.mxu1 %vm1800_vm1, %v1801_v5 }
 0x2fc   : > { %v2001_v34 = vpop.f32.mrb[0].mxu1 }
 0x2fd   : > { %v1521_v35 = vpop.f32.mrb[1].mxu1 }
 0x304   : > { %v673_v36 = vpop.f32.mrb[2].mxu1 }
 0x305   : > { %v1528_v37 = vpop.f32.mrb[3].mxu1  ;;  %v681_v38 = vsel %vm481_vm4, %v673_v36, -inf }
 0x306   : > { %682 = vmax.xlane.f32.xlu1 %v681_v38 }
 0x393   : > { %v683_v41 = vpop.xlane.xlu1 %682 }
 0x394   : > { %v2015_v42 = vmax.f32 %v2012_v40, %v683_v41 }
 0x396   : > { %v685_v43 = vsub.f32 %v2012_v40, %v2015_v42  ;;  %792 = vst.msk [vmem:[#allocation2 + $0x8] sm:$0xff] %vm379_vm3, %v2015_v42  ;;  %690 = vperm.xlu1 %1661, %v2015_v42  }
 0x415   : > { %v691_v48 = vpop.permute.xlu1 %690 }
 0x416   : > { %v693_v49 = vsub.f32 %v673_v36, %v691_v48  ;;  %v498_v48 = vsel %vm481_vm4, %v1989_v32, 0.0 }
 0x418   : > { %v694_v50 = vmul.f32 1.442695, %v693_v49  ;;  %v487_v49 = vmul.f32 1.442695, %v486_v21 }
 0x41a   : > { %1689 = vpow2.f32 %v694_v50 }
 0x424   : > { %v2023_v55 = vpop.eup %1689 }
 0x425   : > { %1534 = vmatmul.mubr.msk.f32.vlgmr.msra.gmra.mrb[2].mxu0 %vm481_vm4, %v2023_v55  ;;  %v697_v25 = vsel %vm481_vm4, %v2023_v55, 0.0 }
 0x426   : > { %1581 = vmatpush3.bf16.xpose.msk.msra.mxu0 %vm1933_vm2, %v1579_v54  ;;  %1540 = vmatprep.mubr.msk.f32.mxu0 %vm1800_vm1, %v1801_v5 }
 0x427   : > { %1589 = vmatprep.subr.bf16.mxu0 %v1799_v4 }
 0x42d   : > { %1541 = vmatmul.mubr.msk.f32.vlgmr.msra.gmra.mrb[4].mxu0 %vm388_vm0, %v803_v56  ;;  %v909_v56 = vld [vmem:[#allocation4 + $0x10] sm:$0xff] }
 0x42e   : > { %1561 = vmatprep.mubr.msk.f32.mxu0 %vm1800_vm1, %v1801_v5 }
 0x4f8   : > { %v2035_v57 = vpop.f32.mrb[2].mxu0 }
 0x4f9   : > { %v1535_v58 = vpop.f32.mrb[3].mxu0 }
 0x500   : > { %v880_v59 = vpop.f32.mrb[4].mxu0 }
 0x501   : > { %v1542_v60 = vpop.f32.mrb[5].mxu0  ;;  %v888_v61 = vsel %vm481_vm4, %v880_v59, -inf }
 0x502   : > { %889 = vmax.xlane.f32.xlu0 %v888_v61 }
 0x58f   : > { %v890_v63 = vpop.xlane.xlu0 %889 }
 0x590   : > { %v891_v0 = vmax.f32 %v885_v62, %v890_v63  ;;  %v480_v63 = vld [vmem:[#allocation3] sm:$0xff] }
 0x592   : > { %v892_v1 = vsub.f32 %v885_v62, %v891_v0  ;;  %997 = vst.msk [vmem:[#allocation2 + $0x10] sm:$0xff] %vm379_vm3, %v891_v0  ;;  %897 = vperm.xlu1 %1661, %v891_v0  }
 0x594   : > { %v893_v37 = vmul.f32 1.442695, %v892_v1 }
 0x596   : > { %1673 = vrot.lane.b32.xlu1 %v2004_v39, %s1805_s12 }
 0x59a   : > { %1678 = vrot.lane.b32.xlu1 %v1970_v17, %s1806_s13 }
 0x59e   : > { %1007 = vrot.lane.b32.xlu1 %v1951_v11, %s1806_s13 }
 0x611   : > { %v898_v2 = vpop.permute.xlu1 %897 }
 0x612   : > { %v900_v3 = vsub.f32 %v880_v59, %v898_v2 }
 0x614   : > { %v901_v6 = vmul.f32 1.442695, %v900_v3 }
 0x615   : > { %v1674_v7 = vpop.permute.xlu1 %1673 }
 0x616   : > { %1691 = vpow2.f32 %v901_v6  ;;  %v1676_v9 = vunpack.i.h.bf16 %v1674_v7  ;;  %v1675_v10 = vunpack.i.l.bf16 %v1674_v7  ;;  %v502_v6 = vld [vmem:[#allocation4] sm:$0xff] }
 0x618   : > { %v1583_v12 = vpack.c.bf16 %v1676_v9, %v1675_v10 }
 0x619   : > { %v1679_v13 = vpop.permute.xlu1 %1678 }
 0x61a   : > { %1584 = vmatpush3.bf16.msra.mxu1 %v1583_v12  ;;  %v1681_v14 = vunpack.i.h.bf16 %v1679_v13  ;;  %v1680_v15 = vunpack.i.l.bf16 %v1679_v13 }
 0x61b   : > { %1585 = vmatprep.subr.bf16.mxu1 %v1799_v4 }
 0x61c   : > { %v1586_v16 = vpack.c.bf16 %v1681_v14, %v1680_v15 }
 0x61d   : > { %v1008_v11 = vpop.permute.xlu1 %1007 }
 0x620   : > { %v2046_v19 = vpop.eup %1691 }
 0x621   : > { %1548 = vmatmul.mubr.msk.f32.vlgmr.msra.gmra.mrb[4].mxu1 %vm481_vm4, %v2046_v19  ;;  %v904_v36 = vsel %vm481_vm4, %v2046_v19, 0.0 }
 0x622   : > { %1554 = vmatprep.mubr.msk.f32.mxu1 %vm1800_vm1, %v1801_v5  ;;  %v686_v5 = vmul.f32 1.442695, %v685_v43 }
 0x623   : > { %1588 = vmatpush3.bf16.xpose.msk.msra.mxu1 %vm1933_vm2, %v1586_v16 }
 0x624   : > { %1693 = vpow2.f32 %v686_v5 }
 0x625   : > { %1695 = vpow2.f32 %v893_v37 }
 0x62a   : > { %1555 = vmatmul.mubr.msk.f32.vlgmr.msra.gmra.mrb[6].mxu1 %vm388_vm0, %v1008_v11 }
 0x62e   : > { %v2061_v26 = vpop.eup %1693 }
 0x62f   : > { %v696_v31 = vmul.f32 %v2061_v26, %v680_v28  ;;  %v1696_v38 = vpop.eup %1695 }
 0x630   : > { %v903_v52 = vmul.f32 %v1696_v38, %v887_v51 }
 0x6f4   : > { %v991_v17 = vpop.f32.mrb[4].mxu1 }
 0x6f5   : > { %v1549_v22 = vpop.f32.mrb[5].mxu1 }
 0x6fd   : > { %v1085_v23 = vpop.f32.mrb[6].mxu1 }
 0x6fe   : > { %v1556_v24 = vpop.f32.mrb[7].mxu1  ;;  %v1093_v4 = vsel %vm481_vm4, %v1085_v23, -inf }
 0x6ff   : > { %1094 = vmax.xlane.f32.xlu1 %v1093_v4  ;;  %v702_v4 = vld [vmem:[#allocation4 + $0x8] sm:$0xff] }
 0x703   : > { %698 = vadd.xlane.f32.xlu1 %v697_v25 }
 0x78c   : > { %v1095_v27 = vpop.xlane.xlu1 %1094 }
 0x78d   : > { %v1096_v29 = vmax.f32 %v1090_v8, %v1095_v27 }
 0x78f   : > { %v1097_v30 = vsub.f32 %v1090_v8, %v1096_v29  ;;  %1202 = vst.msk [vmem:[#allocation2 + $0x18] sm:$0xff] %vm379_vm3, %v1096_v29  ;;  %1102 = vperm.xlu0 %1655, %v1096_v29   ;;  %v1114_v8 = vld [vmem:[#allocation4 + $0x18] sm:$0xff] }
 0x790   : > { %v699_v33 = vpop.xlane.xlu1 %698 }
 0x791   : > { %v2065_v35 = vadd.f32 %v699_v33, %v696_v31  ;;  %v1098_v61 = vmul.f32 1.442695, %v1097_v30 }
 0x793   : > { %793 = vst.msk [vmem:[#allocation3 + $0x8] sm:$0xff] %vm379_vm3, %v2065_v35  ;;  %1683 = vrot.lane.b32.xlu0 %v2004_v39, %s1806_s13 }
 0x79a   : > { %v1227_v10 = vld [vmem:[#allocation3 + $0x8] sm:$0xff] }
 0x7b2   : > { %905 = vadd.xlane.f32.xlu0 %v904_v36 }
 0x7c8   : > { %912 = vperm.xlu0 %1655, %v1696_v38  }
 0x80e   : > { %v1103_v40 = vpop.permute.xlu0 %1102 }
 0x80f   : > { %v1105_v41 = vsub.f32 %v1085_v23, %v1103_v40 }
 0x811   : > { %v1106_v42 = vmul.f32 1.442695, %v1105_v41 }
 0x812   : > { %v1684_v43 = vpop.permute.xlu0 %1683 }
 0x813   : > { %1697 = vpow2.f32 %v1106_v42  ;;  %v1686_v44 = vunpack.i.h.bf16 %v1684_v43  ;;  %v1685_v45 = vunpack.i.l.bf16 %v1684_v43 }
 0x814   : > { %1699 = vpow2.f32 %v487_v49 }
 0x815   : > { %v1590_v46 = vpack.c.bf16 %v1686_v44, %v1685_v45  ;;  %1701 = vpow2.f32 %v1098_v61 }
 0x816   : > { %1703 = vrcp.f32 %v1227_v10 }
 0x817   : > { %1591 = vmatpush3.bf16.msra.mxu0 %v1590_v46 }
 0x81d   : > { %v2073_v47 = vpop.eup %1697 }
 0x81e   : > { %1562 = vmatmul.mubr.msk.f32.vlgmr.msra.gmra.mrb[6].mxu0 %vm481_vm4, %v2073_v47  ;;  %v1109_v39 = vsel %vm481_vm4, %v2073_v47, 0.0  ;;  %v1700_v50 = vpop.eup %1699 }
 0x81f   : > { %1110 = vadd.xlane.f32.xlu1 %v1109_v39  ;;  %v1702_v18 = vpop.eup %1701  ;;  %v497_v1 = vmul.f32 %v1700_v50, %v480_v63 }
 0x820   : > { %v1108_v21 = vmul.f32 %v1702_v18, %v1092_v20  ;;  %v1704_v16 = vpop.eup %1703 }
 0x823   : > { %499 = vadd.xlane.f32.xlu1 %v498_v48 }
 0x834   : > { %505 = vperm.xlu1 %1661, %v1700_v50  }
 0x83f   : > { %v906_v53 = vpop.xlane.xlu0 %905 }
 0x840   : > { %v907_v54 = vadd.f32 %v906_v53, %v903_v52 }
 0x842   : > { %998 = vst.msk [vmem:[#allocation3 + $0x10] sm:$0xff] %vm379_vm3, %v907_v54  ;;  %1001 = vperm.xlu0 %1655, %v907_v54  }
 0x847   : > { %v913_v58 = vpop.permute.xlu0 %912 }
 0x848   : > { %v915_v59 = vmul.f32 %v913_v58, %v909_v56 }
 0x849   : > { %v1236_v13 = vld [vmem:[#allocation3 + $0x10] sm:$0xff] }
 0x84a   : > { %v995_v60 = vadd.f32 %v991_v17, %v915_v59 }
 0x84c   : > { %996 = vst.msk [vmem:[#allocation4 + $0x10] sm:$0xff] %vm388_vm0, %v995_v60 }
 0x853   : > { %v1235_v36 = vld [vmem:[#allocation4 + $0x10] sm:$0xff] }
 0x8ac   : > { %v1111_v62 = vpop.xlane.xlu1 %1110 }
 0x8ad   : > { %v1112_v0 = vadd.f32 %v1111_v62, %v1108_v21 }
 0x8af   : > { %1203 = vst.msk [vmem:[#allocation3 + $0x18] sm:$0xff] %vm379_vm3, %v1112_v0 }
 0x8b0   : > { %v500_v2 = vpop.xlane.xlu1 %499 }
 0x8b1   : > { %v501_v3 = vadd.f32 %v500_v2, %v497_v1 }
 0x8b3   : > { %586 = vst.msk [vmem:[#allocation3] sm:$0xff] %vm379_vm3, %v501_v3  ;;  %589 = vperm.xlu1 %1661, %v501_v3  }
 0x8b4   : > { %v506_v7 = vpop.permute.xlu1 %505 }
 0x8b5   : > { %v508_v9 = vmul.f32 %v506_v7, %v502_v6 }
 0x8b6   : > { %v1245_v15 = vld [vmem:[#allocation3 + $0x18] sm:$0xff] }
 0x8b7   : > { %v582_v12 = vadd.f32 %v2001_v34, %v508_v9  ;;  %705 = vperm.xlu1 %1661, %v2061_v26  }
 0x8b9   : > { %583 = vst.msk [vmem:[#allocation4] sm:$0xff] %vm388_vm0, %v582_v12 }
 0x8ba   : > { %v1218_v14 = vld [vmem:[#allocation3] sm:$0xff] }
 0x8bb   : > { %1117 = vperm.xlu1 %1661, %v1702_v18   ;;  %1705 = vrcp.f32 %v1218_v14 }
 0x8bc   : > { %1707 = vrcp.f32 %v1236_v13 }
 0x8bd   : > { %1709 = vrcp.f32 %v1245_v15 }
 0x8bf   : > { %796 = vperm.xlu1 %1661, %v2065_v35  }
 0x8c3   : > { %1231 = vperm.xlu1 %1661, %v1704_v16  }
 0x8c5   : > { %v1706_v11 = vpop.eup %1705 }
 0x8c6   : > { %v1708_v17 = vpop.eup %1707  ;;  %1222 = vperm.xlu0 %1655, %v1706_v11  }
 0x8c7   : > { %1240 = vperm.xlu1 %1661, %v1708_v17   ;;  %v1710_v34 = vpop.eup %1709 }
 0x8cb   : > { %1249 = vperm.xlu1 %1661, %v1710_v34  }
 0x8cf   : > { %1206 = vperm.xlu1 %1661, %v1112_v0  }
 0x8f1   : > { %v1196_v22 = vpop.f32.mrb[6].mxu0 }
 0x8f2   : > { %v1563_v23 = vpop.f32.mrb[7].mxu0 }
 0x932   : > { %v590_v24 = vpop.permute.xlu1 %589 }
 0x936   : > { %v706_v25 = vpop.permute.xlu1 %705 }
 0x937   : > { %v708_v5 = vmul.f32 %v706_v25, %v702_v4 }
 0x939   : > { %v790_v26 = vadd.f32 %v2035_v57, %v708_v5  ;;  %v1002_v57 = vpop.permute.xlu0 %1001 }
 0x93a   : > { %v1118_v27 = vpop.permute.xlu1 %1117 }
 0x93b   : > { %791 = vst.msk [vmem:[#allocation4 + $0x8] sm:$0xff] %vm388_vm0, %v790_v26  ;;  %v1120_v28 = vmul.f32 %v1118_v27, %v1114_v8 }
 0x93d   : > { %v1200_v29 = vadd.f32 %v1196_v22, %v1120_v28 }
 0x93e   : > { %v797_v30 = vpop.permute.xlu1 %796 }
 0x93f   : > { %1201 = vst.msk [vmem:[#allocation4 + $0x18] sm:$0xff] %vm388_vm0, %v1200_v29  ;;  %1711 = vrcp.f32 %v797_v30 }
 0x940   : > { %1713 = vrcp.f32 %v590_v24 }
 0x941   : > { %1715 = vrcp.f32 %v1002_v57 }
 0x942   : > { %v1226_v31 = vld [vmem:[#allocation4 + $0x8] sm:$0xff]  ;;  %v1232_v33 = vpop.permute.xlu1 %1231 }
 0x943   : > { %v1234_v35 = vmul.f32 %v1232_v33, %v1226_v31 }
 0x945   : > { %1254 = vrot.lane.b32.xlu1 %v1234_v35, %s1806_s13 }
 0x946   : > { %v1241_v37 = vpop.permute.xlu1 %1240  ;;  %v1244_v41 = vld [vmem:[#allocation4 + $0x18] sm:$0xff] }
 0x947   : > { %v1243_v38 = vmul.f32 %v1241_v37, %v1235_v36 }
 0x949   : > { %1258 = vrot.lane.b32.xlu0 %v1243_v38, %s1805_s12  ;;  %v1712_v44 = vpop.eup %1711 }
 0x94a   : > { %v1250_v40 = vpop.permute.xlu1 %1249  ;;  %v1714_v45 = vpop.eup %1713  ;;  %v800_v46 = vmul.f32 %v1712_v44, %v2023_v55 }
 0x94b   : > { %v1252_v42 = vmul.f32 %v1250_v40, %v1244_v41  ;;  %v593_v39 = vmul.f32 %v1714_v45, %v1989_v32  ;;  %v1716_v48 = vpop.eup %1715 }
 0x94c   : > { %v1005_v50 = vmul.f32 %v1716_v48, %v2046_v19 }
 0x94d   : > { %1262 = vrot.lane.b32.xlu1 %v1252_v42, %s1804_s10  ;;  %v801_v49 = vadd.f32 %v800_v46, %v593_v39  ;;  %s1723_s10 = sshll.u32 %s1807_s18, 4  ;;  %s1724_s10 = int_to_ptr.vmem [resolvable:$false] %s1723_s10 }
 0x94e   : > { %v1207_v43 = vpop.permute.xlu1 %1206  ;;  %s1725_s11 = scalar_lea.vmem %s1724_s10, 256  ;;  %p1726_p4 = scmp.lt.s32.totalorder %s2109_s24, %s1724_s10 }
 0x94f   : > { %1717 = vrcp.f32 %v1207_v43  ;;  %v1006_v52 = vadd.f32 %v1005_v50, %v801_v49  ;;  %p1727_p6 = scmp.lt.s32.totalorder %s1725_s11, %s1719_s9 }
 0x951   : > { %p1728_p7 = por %p1727_p6, %p1726_p4 }
 0x953   : > { %p1729_p8 = pnand %p1728_p7, %p1722_p3 }
 0x959   : > { %v1718_v51 = vpop.eup %1717 }
 0x95a   : > { %v1210_v53 = vmul.f32 %v1718_v51, %v2073_v47 }
 0x95c   : > { %v1211_v54 = vadd.f32 %v1210_v53, %v1006_v52 }
 0x95e   : > { %v1212_v56 = vmul.f32 0.25, %v1211_v54 }
 0x960   : > { %1213 = vst.msk [vmem:[%s358_s22] sm:$0xff] %vm481_vm4, %v1212_v56 }
 0x961   : > { %1732 = shalt.err (!%p1729_p8)
}
 0x962   : > { %s1733_s25 = scalar_lea.hbm %s2107_s7, 128  ;;  %s1737_s14 = scalar_lea.hbm %s2167_s4, 256 }
 0x963   : > { %p1734_p11 = scmp.ne.s32.totalorder %s2107_s7, %s1733_s25  ;;  %p1738_p0 = scmp.lt.u32.totalorder %s2107_s7, %s2167_s4 }
 0x964   : > { %p1739_p1 = scmp.lt.u32.totalorder %s1737_s14, %s1733_s25  ;;  %p1741_p3 = scmp.lt.u32.totalorder %s1733_s25, %s2107_s7 }
 0x965   : > { %p1735_p12 = pnand %p1734_p11, %p1876_p5 }
 0x966   : > { %p1740_p2 = por %p1739_p1, %p1738_p0 }
 0x967   : > { %p1736_p13 = pneg %p1735_p12 }
 0x968   : > { %p1742_p4 = por %p1741_p3, %p1740_p2 }
 0x96a   : > { %p1743_p6 = pnand %p1742_p4, %p1736_p13 }
 0x96c   : > { %1746 = shalt.err (!%p1743_p6)
}
 0x96d   : > { %1592 = dma.vmem_to_hbm [thread:$0]  (%p1876_p5), %s2109_s24, 128, %s2107_s7, %s1279_s8   ;;  %v1223_v32 = vpop.permute.xlu0 %1222  ;;  %v1217_v55 = vld [vmem:[#allocation4] sm:$0xff]  ;;  %vm1266_vm5 = vcmask 523264   ;;  %vm1268_vm6 = vcmask 785408  }
 0x96e   : > { %v1225_v47 = vmul.f32 %v1223_v32, %v1217_v55  ;;  %s374_s9 = scalar_lea.vmem %s2166_s3, %s1460_s6 }
 0x9b7   : > { %v1255_v19 = vpop.permute.xlu1 %1254 }
 0x9b8   : > { %v1265_v59 = vsel %vm388_vm0, %v1225_v47, %v1255_v19 }
 0x9bb   : > { %v1259_v58 = vpop.permute.xlu0 %1258 }
 0x9bc   : > { %v1267_v60 = vsel %vm1266_vm5, %v1265_v59, %v1259_v58 }
 0x9bf   : > { %v1263_v61 = vpop.permute.xlu1 %1262 }
 0x9c0   : > { %v1269_v18 = vsel %vm1268_vm6, %v1267_v60, %v1263_v61 }
 0x9c1   : > { %1270 = vst [vmem:[%s374_s9] sm:$0xff] %v1269_v18 }
 0x9c2 PF: > { %s1318_s26 = sand.u32 1, %s1777_s15   ;;  %p1595_p5 = pnand %p1447_p10, %p1887_p9 }
 0x9c3   : > { %s1319_s24 = scalar_lea.sflag [#allocation8], %s1318_s26 }
 0x9c4   : > { %1772 = dma.done.wait (!%p1595_p5), %s1319_s24, 128  }
 0x9c5   : > { %1774 = vsyncadd (!%p1595_p5), %s1319_s24, 4294967168  ;;  %s18_s20 = sadd.s32 1, %s1797_s20   ;;  %s2173_s15 = smov %s1781_s16 }
 0x9c6   : > { %p15_p7 = scmp.ge.s32.totalorder %s18_s20, 4   ;;  %s2174_s16 = smov %s1785_s17 }
 0x9c7   : > { %s2175_s17 = smov %s1885_s28  ;;  %s2176_s18 = smov %s1793_s19 }
 0x9c8   : > { %s2177_s19 = smov %s2179_s23  ;;  %17 = sbr.rel (!%p15_p7) target bundleno = 4 (0x4), region = 188 }
 0x9cf   :  { %1324 = vsyncpa [#allocation8], 1 }
 0x9d0   :  { %1326 = vsyncpa [#allocation8 + $0x1], 1 }

</bundles_post_ra>
